<compile_context>
chip_gen: v7x
topology: tpu7x:2x2x1
jax: 0.10.0
libtpu: 0.0.40
codegen_flags: <defaults>
</compile_context>

<pallas_src>
import functools

import jax
import jax.numpy as jnp
from jax import lax
from jax.experimental import pallas as pl
from jax.experimental.pallas import tpu as pltpu

LN_EPS = 1e-5  # torch LayerNorm / TransformerEncoderLayer default eps


def _layernorm(x, gamma, beta):
    """LayerNorm over the last (feature) axis; shared by kernel and reference."""
    mean = jnp.mean(x, axis=-1, keepdims=True)
    xc = x - mean
    var = jnp.mean(xc * xc, axis=-1, keepdims=True)
    return xc * lax.rsqrt(var + LN_EPS) * gamma + beta


# ---------------------------------------------------------------------------
# Single fused kernel: embedding -> L encoder layers -> mean-pool -> FC head.
# All operands are whole-array VMEM residents (no grid).
# ---------------------------------------------------------------------------
def fused_forward_kernel(x_ref, ew_ref, eb_ref,
                         wqkv_ref, bqkv_ref, wo_ref, bo_ref,
                         ln1g_ref, ln1b_ref,
                         w1_ref, b1_ref, w2_ref, b2_ref,
                         ln2g_ref, ln2b_ref,
                         fcw_ref, fcb_ref,
                         o_ref, *, batch, num_points, num_heads):
    B, N, H = batch, num_points, num_heads
    BN, C_in = x_ref.shape
    D = ew_ref.shape[1]
    L = wqkv_ref.shape[0]
    dh = D // H
    scale = 1.0 / float(dh) ** 0.5
    inv_n = 1.0 / float(N)

    # ---- embedding Linear(C_in -> D): tiny-K contraction via VPU FMAs ----
    pts = x_ref[...].astype(jnp.float32)                      # (BN, C_in)
    ew = ew_ref[...]
    x = jnp.zeros((BN, D), jnp.float32) + eb_ref[...]
    for c in range(C_in):                                     # static, K = 3
        x = x + pts[:, c:c + 1] * ew[c:c + 1, :]

    # ---- encoder layers (post-norm), static unroll over L ----
    for l in range(L):
        # fused QKV projection: one lane-dense (BN, D) x (D, 3D) matmul
        qkv = jnp.dot(x, wqkv_ref[l],
                      preferred_element_type=jnp.float32) + bqkv_ref[l]     # (BN, 3D)

        # stack (batch, head) along a leading batch axis -> batched MXU dots
        q_bh = jnp.stack([qkv[b * N:(b + 1) * N, h * dh:(h + 1) * dh]
                          for b in range(B) for h in range(H)], axis=0)     # (B*H, N, dh)
        k_bh = jnp.stack([qkv[b * N:(b + 1) * N, D + h * dh:D + (h + 1) * dh]
                          for b in range(B) for h in range(H)], axis=0)
        v_bh = jnp.stack([qkv[b * N:(b + 1) * N, 2 * D + h * dh:2 * D + (h + 1) * dh]
                          for b in range(B) for h in range(H)], axis=0)

        s = jnp.einsum("bnd,bmd->bnm", q_bh, k_bh,
                       preferred_element_type=jnp.float32) * scale          # (B*H, N, N)
        s = s - jnp.max(s, axis=-1, keepdims=True)
        p = jnp.exp(s)
        # softmax denominator on the EUP (approximate reciprocal), not the VALU
        p = p * pl.reciprocal(jnp.sum(p, axis=-1, keepdims=True), approx=True)
        ctx = jnp.einsum("bnm,bmd->bnd", p, v_bh,
                         preferred_element_type=jnp.float32)                # (B*H, N, dh)

        # reassemble heads (lanes) and batches (sublanes) -> (BN, D),
        # then one fused lane-dense output projection.
        ctx_flat = jnp.concatenate(
            [jnp.concatenate([ctx[b * H + h] for h in range(H)], axis=-1)
             for b in range(B)], axis=0)                                    # (BN, D)
        attn = jnp.dot(ctx_flat, wo_ref[l],
                       preferred_element_type=jnp.float32) + bo_ref[l]

        # residual + LayerNorm 1 (norm_first=False -> post-norm)
        y = _layernorm(x + attn, ln1g_ref[l], ln1b_ref[l])

        # feed-forward: Linear(D,4D) -> ReLU -> Linear(4D,D)
        f = jnp.dot(y, w1_ref[l], preferred_element_type=jnp.float32) + b1_ref[l]
        f = jnp.maximum(f, 0.0)
        f = jnp.dot(f, w2_ref[l], preferred_element_type=jnp.float32) + b2_ref[l]

        # residual + LayerNorm 2
        x = _layernorm(y + f, ln2g_ref[l], ln2b_ref[l])

    # ---- mean-pool over points (1/N folded into a scale) + final Linear ----
    pooled = jnp.concatenate(
        [jnp.sum(x[b * N:(b + 1) * N, :], axis=0, keepdims=True) for b in range(B)],
        axis=0) * inv_n                                                     # (B, D)
    o_ref[...] = jnp.dot(pooled, fcw_ref[...],
                         preferred_element_type=jnp.float32) + fcb_ref[...]


_PARAM_KEYS = ("embed_w", "embed_b", "w_qkv", "b_qkv", "w_o", "b_o",
               "ln1_g", "ln1_b", "w1", "b1", "w2", "b2", "ln2_g", "ln2_b",
               "fc_w", "fc_b")


def transformer_classifier(points, params, *, num_heads):
    """points: (B, N, input_dim) -> logits (B, output_dim). Single pallas_call."""
    B, N, C = points.shape
    D = params["embed_w"].shape[1]
    C_out = params["fc_w"].shape[1]
    assert D % num_heads == 0

    args = (points.reshape(B * N, C),) + tuple(params[k] for k in _PARAM_KEYS)
    kernel = functools.partial(fused_forward_kernel,
                               batch=B, num_points=N, num_heads=num_heads)
    vmem_spec = pl.BlockSpec(memory_space=pltpu.MemorySpace.VMEM)
    return pl.pallas_call(
        kernel,
        out_shape=jax.ShapeDtypeStruct((B, C_out), jnp.float32),
        in_specs=[vmem_spec] * len(args),
        out_specs=vmem_spec,
    )(*args)


# ---------------------------------------------------------------------------
# Deterministic synthetic parameters (kernel-friendly layout: weights stored
# (in, out); QKV fused as (D, 3D) with heads = contiguous dh-lane chunks,
# matching PyTorch's in_proj layout; per-layer tensors stacked over L).
# ---------------------------------------------------------------------------
def init_params(key, input_dim, hidden_dim, num_layers, output_dim):
    D, ffn = hidden_dim, hidden_dim * 4
    keys = iter(jax.random.split(key, 4 + 12 * num_layers))

    def w_(shape, fan_in):
        return jax.random.normal(next(keys), shape, jnp.float32) / jnp.sqrt(float(fan_in))

    def b_(shape, s=0.05):
        return s * jax.random.normal(next(keys), shape, jnp.float32)

    def per_layer(fn, *a):
        return jnp.stack([fn(*a) for _ in range(num_layers)], axis=0)

    return {
        "embed_w": w_((input_dim, D), input_dim),
        "embed_b": b_((1, D)),
        "fc_w": w_((D, output_dim), D),
        "fc_b": b_((1, output_dim)),
        "w_qkv": per_layer(w_, (D, 3 * D), D),
        "b_qkv": per_layer(b_, (1, 3 * D)),
        "w_o": per_layer(w_, (D, D), D),
        "b_o": per_layer(b_, (1, D)),
        "ln1_g": 1.0 + per_layer(b_, (1, D)),
        "ln1_b": per_layer(b_, (1, D)),
        "w1": per_layer(w_, (D, ffn), D),
        "b1": per_layer(b_, (1, ffn)),
        "w2": per_layer(w_, (ffn, D), ffn),
        "b2": per_layer(b_, (1, D)),
        "ln2_g": 1.0 + per_layer(b_, (1, D)),
        "ln2_b": per_layer(b_, (1, D)),
    }


# ---------------------------------------------------------------------------
# Pure-JAX reference of the PyTorch forward (eval mode, post-norm encoder).
# ---------------------------------------------------------------------------
def reference_forward(points, params, *, num_heads):
    B, N, _ = points.shape
    D = params["embed_w"].shape[1]
    dh = D // num_heads
    x = points @ params["embed_w"] + params["embed_b"]                    # (B, N, D)
    for l in range(params["w_qkv"].shape[0]):
        qkv = x @ params["w_qkv"][l] + params["b_qkv"][l]                 # (B, N, 3D)
        q, k, v = qkv[..., :D], qkv[..., D:2 * D], qkv[..., 2 * D:]

        def split(t):
            return t.reshape(B, N, num_heads, dh).transpose(0, 2, 1, 3)

        q, k, v = split(q), split(k), split(v)
        s = jnp.einsum("bhqd,bhkd->bhqk", q, k) / jnp.sqrt(float(dh))
        p = jax.nn.softmax(s, axis=-1)
        ctx = jnp.einsum("bhqk,bhkd->bhqd", p, v)
        ctx = ctx.transpose(0, 2, 1, 3).reshape(B, N, D)
        attn = ctx @ params["w_o"][l] + params["b_o"][l]
        y = _layernorm(x + attn, params["ln1_g"][l], params["ln1_b"][l])
        f = jnp.maximum(y @ params["w1"][l] + params["b1"][l], 0.0)
        f = f @ params["w2"][l] + params["b2"][l]
        x = _layernorm(y + f, params["ln2_g"][l], params["ln2_b"][l])
    pooled = x.mean(axis=1)
    return pooled @ params["fc_w"] + params["fc_b"]


if __name__ == "__main__":
    B, N = 2, 16                      # batch, num_points
    INPUT_DIM, HIDDEN_DIM = 3, 64     # xyz coords -> d_model
    NUM_HEADS, NUM_LAYERS, OUTPUT_DIM = 4, 2, 10

    key = jax.random.PRNGKey(0)
    k_pts, k_par = jax.random.split(key)
    points = jax.random.normal(k_pts, (B, N, INPUT_DIM), jnp.float32)
    params = init_params(k_par, INPUT_DIM, HIDDEN_DIM, NUM_LAYERS, OUTPUT_DIM)

    fwd = jax.jit(functools.partial(transformer_classifier, num_heads=NUM_HEADS))
    out = jax.block_until_ready(fwd(points, params))

    ref = reference_forward(points, params, num_heads=NUM_HEADS)
    assert out.shape == (B, OUTPUT_DIM), out.shape
    max_err = float(jnp.max(jnp.abs(out - ref)))
    # 2e-3 tolerance: the only approximation vs the f32 reference is the EUP
    # approximate reciprocal used for the softmax denominator.
    assert jnp.allclose(out, ref, atol=2e-3, rtol=2e-3), (
        f"mismatch vs reference, max_abs_err={max_err}")
    print("KERNEL_OK")
</pallas_src>

<mosaic_0001>
module attributes {stable_mosaic.version = 11 : i64} {
  func.func @fused_forward_kernel(%arg0: memref<32x3xf32, #tpu.memory_space<vmem>>, %arg1: memref<3x64xf32, #tpu.memory_space<vmem>>, %arg2: memref<1x64xf32, #tpu.memory_space<vmem>>, %arg3: memref<2x64x192xf32, #tpu.memory_space<vmem>>, %arg4: memref<2x1x192xf32, #tpu.memory_space<vmem>>, %arg5: memref<2x64x64xf32, #tpu.memory_space<vmem>>, %arg6: memref<2x1x64xf32, #tpu.memory_space<vmem>>, %arg7: memref<2x1x64xf32, #tpu.memory_space<vmem>>, %arg8: memref<2x1x64xf32, #tpu.memory_space<vmem>>, %arg9: memref<2x64x256xf32, #tpu.memory_space<vmem>>, %arg10: memref<2x1x256xf32, #tpu.memory_space<vmem>>, %arg11: memref<2x256x64xf32, #tpu.memory_space<vmem>>, %arg12: memref<2x1x64xf32, #tpu.memory_space<vmem>>, %arg13: memref<2x1x64xf32, #tpu.memory_space<vmem>>, %arg14: memref<2x1x64xf32, #tpu.memory_space<vmem>>, %arg15: memref<64x10xf32, #tpu.memory_space<vmem>>, %arg16: memref<1x10xf32, #tpu.memory_space<vmem>>, %arg17: memref<2x10xf32, #tpu.memory_space<vmem>>) attributes {dimension_semantics = [], scalar_prefetch = 0 : i64, scratch_operands = 0 : i64, tpu.core_type = #tpu.core_type<tc>} {
    %c0 = arith.constant 0 : index
    %c0_0 = arith.constant 0 : index
    %0 = vector.load %arg0[%c0, %c0_0] : memref<32x3xf32, #tpu.memory_space<vmem>>, vector<32x3xf32>
    %c0_1 = arith.constant 0 : index
    %c0_2 = arith.constant 0 : index
    %1 = vector.load %arg1[%c0_1, %c0_2] : memref<3x64xf32, #tpu.memory_space<vmem>>, vector<3x64xf32>
    %cst = arith.constant 0.000000e+00 : f32
    %2 = vector.broadcast %cst : f32 to vector<32x64xf32>
    %c0_3 = arith.constant 0 : index
    %c0_4 = arith.constant 0 : index
    %3 = vector.load %arg2[%c0_3, %c0_4] : memref<1x64xf32, #tpu.memory_space<vmem>>, vector<1x64xf32>
    %4 = vector.broadcast %3 : vector<1x64xf32> to vector<32x64xf32>
    %5 = arith.addf %2, %4 : vector<32x64xf32>
    %6 = vector.extract_strided_slice %0 {offsets = [0, 0], sizes = [32, 1], strides = [1, 1]} : vector<32x3xf32> to vector<32x1xf32>
    %7 = vector.extract_strided_slice %1 {offsets = [0, 0], sizes = [1, 64], strides = [1, 1]} : vector<3x64xf32> to vector<1x64xf32>
    %8 = vector.broadcast %6 : vector<32x1xf32> to vector<32x64xf32>
    %9 = vector.broadcast %7 : vector<1x64xf32> to vector<32x64xf32>
    %10 = arith.mulf %8, %9 : vector<32x64xf32>
    %11 = arith.addf %5, %10 : vector<32x64xf32>
    %12 = vector.extract_strided_slice %0 {offsets = [0, 1], sizes = [32, 1], strides = [1, 1]} : vector<32x3xf32> to vector<32x1xf32>
    %13 = vector.extract_strided_slice %1 {offsets = [1, 0], sizes = [1, 64], strides = [1, 1]} : vector<3x64xf32> to vector<1x64xf32>
    %14 = vector.broadcast %12 : vector<32x1xf32> to vector<32x64xf32>
    %15 = vector.broadcast %13 : vector<1x64xf32> to vector<32x64xf32>
    %16 = arith.mulf %14, %15 : vector<32x64xf32>
    %17 = arith.addf %11, %16 : vector<32x64xf32>
    %18 = vector.extract_strided_slice %0 {offsets = [0, 2], sizes = [32, 1], strides = [1, 1]} : vector<32x3xf32> to vector<32x1xf32>
    %19 = vector.extract_strided_slice %1 {offsets = [2, 0], sizes = [1, 64], strides = [1, 1]} : vector<3x64xf32> to vector<1x64xf32>
    %20 = vector.broadcast %18 : vector<32x1xf32> to vector<32x64xf32>
    %21 = vector.broadcast %19 : vector<1x64xf32> to vector<32x64xf32>
    %22 = arith.mulf %20, %21 : vector<32x64xf32>
    %23 = arith.addf %17, %22 : vector<32x64xf32>
    %c0_5 = arith.constant 0 : index
    %c0_6 = arith.constant 0 : index
    %c0_7 = arith.constant 0 : index
    %24 = vector.load %arg3[%c0_5, %c0_6, %c0_7] : memref<2x64x192xf32, #tpu.memory_space<vmem>>, vector<1x64x192xf32>
    %25 = vector.shape_cast %24 : vector<1x64x192xf32> to vector<64x192xf32>
    %cst_8 = arith.constant dense<0.000000e+00> : vector<32x192xf32>
    %26 = tpu.matmul %23, %25, %cst_8 {dimension_numbers = #tpu.dot_dimension_numbers<[1], [0], [0], [1], [0, 0, 1, 1], [], []>} : vector<32x64xf32>, vector<64x192xf32>, vector<32x192xf32> -> vector<32x192xf32>
    %c0_9 = arith.constant 0 : index
    %c0_10 = arith.constant 0 : index
    %c0_11 = arith.constant 0 : index
    %27 = vector.load %arg4[%c0_9, %c0_10, %c0_11] : memref<2x1x192xf32, #tpu.memory_space<vmem>>, vector<1x1x192xf32>
    %28 = vector.shape_cast %27 : vector<1x1x192xf32> to vector<1x192xf32>
    %29 = vector.broadcast %28 : vector<1x192xf32> to vector<32x192xf32>
    %30 = arith.addf %26, %29 : vector<32x192xf32>
    %31 = vector.extract_strided_slice %30 {offsets = [0, 0], sizes = [16, 16], strides = [1, 1]} : vector<32x192xf32> to vector<16x16xf32>
    %32 = vector.extract_strided_slice %30 {offsets = [0, 16], sizes = [16, 16], strides = [1, 1]} : vector<32x192xf32> to vector<16x16xf32>
    %33 = vector.extract_strided_slice %30 {offsets = [0, 32], sizes = [16, 16], strides = [1, 1]} : vector<32x192xf32> to vector<16x16xf32>
    %34 = vector.extract_strided_slice %30 {offsets = [0, 48], sizes = [16, 16], strides = [1, 1]} : vector<32x192xf32> to vector<16x16xf32>
    %35 = vector.extract_strided_slice %30 {offsets = [16, 0], sizes = [16, 16], strides = [1, 1]} : vector<32x192xf32> to vector<16x16xf32>
    %36 = vector.extract_strided_slice %30 {offsets = [16, 16], sizes = [16, 16], strides = [1, 1]} : vector<32x192xf32> to vector<16x16xf32>
    %37 = vector.extract_strided_slice %30 {offsets = [16, 32], sizes = [16, 16], strides = [1, 1]} : vector<32x192xf32> to vector<16x16xf32>
    %38 = vector.extract_strided_slice %30 {offsets = [16, 48], sizes = [16, 16], strides = [1, 1]} : vector<32x192xf32> to vector<16x16xf32>
    %39 = vector.shape_cast %31 : vector<16x16xf32> to vector<1x16x16xf32>
    %40 = vector.shape_cast %32 : vector<16x16xf32> to vector<1x16x16xf32>
    %41 = vector.shape_cast %33 : vector<16x16xf32> to vector<1x16x16xf32>
    %42 = vector.shape_cast %34 : vector<16x16xf32> to vector<1x16x16xf32>
    %43 = vector.shape_cast %35 : vector<16x16xf32> to vector<1x16x16xf32>
    %44 = vector.shape_cast %36 : vector<16x16xf32> to vector<1x16x16xf32>
    %45 = vector.shape_cast %37 : vector<16x16xf32> to vector<1x16x16xf32>
    %46 = vector.shape_cast %38 : vector<16x16xf32> to vector<1x16x16xf32>
    %47 = tpu.concatenate %39, %40, %41, %42, %43, %44, %45, %46 in 0 : vector<1x16x16xf32>, vector<1x16x16xf32>, vector<1x16x16xf32>, vector<1x16x16xf32>, vector<1x16x16xf32>, vector<1x16x16xf32>, vector<1x16x16xf32>, vector<1x16x16xf32> -> vector<8x16x16xf32>
    %48 = vector.extract_strided_slice %30 {offsets = [0, 64], sizes = [16, 16], strides = [1, 1]} : vector<32x192xf32> to vector<16x16xf32>
    %49 = vector.extract_strided_slice %30 {offsets = [0, 80], sizes = [16, 16], strides = [1, 1]} : vector<32x192xf32> to vector<16x16xf32>
    %50 = vector.extract_strided_slice %30 {offsets = [0, 96], sizes = [16, 16], strides = [1, 1]} : vector<32x192xf32> to vector<16x16xf32>
    %51 = vector.extract_strided_slice %30 {offsets = [0, 112], sizes = [16, 16], strides = [1, 1]} : vector<32x192xf32> to vector<16x16xf32>
    %52 = vector.extract_strided_slice %30 {offsets = [16, 64], sizes = [16, 16], strides = [1, 1]} : vector<32x192xf32> to vector<16x16xf32>
    %53 = vector.extract_strided_slice %30 {offsets = [16, 80], sizes = [16, 16], strides = [1, 1]} : vector<32x192xf32> to vector<16x16xf32>
    %54 = vector.extract_strided_slice %30 {offsets = [16, 96], sizes = [16, 16], strides = [1, 1]} : vector<32x192xf32> to vector<16x16xf32>
    %55 = vector.extract_strided_slice %30 {offsets = [16, 112], sizes = [16, 16], strides = [1, 1]} : vector<32x192xf32> to vector<16x16xf32>
    %56 = vector.shape_cast %48 : vector<16x16xf32> to vector<1x16x16xf32>
    %57 = vector.shape_cast %49 : vector<16x16xf32> to vector<1x16x16xf32>
    %58 = vector.shape_cast %50 : vector<16x16xf32> to vector<1x16x16xf32>
    %59 = vector.shape_cast %51 : vector<16x16xf32> to vector<1x16x16xf32>
    %60 = vector.shape_cast %52 : vector<16x16xf32> to vector<1x16x16xf32>
    %61 = vector.shape_cast %53 : vector<16x16xf32> to vector<1x16x16xf32>
    %62 = vector.shape_cast %54 : vector<16x16xf32> to vector<1x16x16xf32>
    %63 = vector.shape_cast %55 : vector<16x16xf32> to vector<1x16x16xf32>
    %64 = tpu.concatenate %56, %57, %58, %59, %60, %61, %62, %63 in 0 : vector<1x16x16xf32>, vector<1x16x16xf32>, vector<1x16x16xf32>, vector<1x16x16xf32>, vector<1x16x16xf32>, vector<1x16x16xf32>, vector<1x16x16xf32>, vector<1x16x16xf32> -> vector<8x16x16xf32>
    %65 = vector.extract_strided_slice %30 {offsets = [0, 128], sizes = [16, 16], strides = [1, 1]} : vector<32x192xf32> to vector<16x16xf32>
    %66 = vector.extract_strided_slice %30 {offsets = [0, 144], sizes = [16, 16], strides = [1, 1]} : vector<32x192xf32> to vector<16x16xf32>
    %67 = vector.extract_strided_slice %30 {offsets = [0, 160], sizes = [16, 16], strides = [1, 1]} : vector<32x192xf32> to vector<16x16xf32>
    %68 = vector.extract_strided_slice %30 {offsets = [0, 176], sizes = [16, 16], strides = [1, 1]} : vector<32x192xf32> to vector<16x16xf32>
    %69 = vector.extract_strided_slice %30 {offsets = [16, 128], sizes = [16, 16], strides = [1, 1]} : vector<32x192xf32> to vector<16x16xf32>
    %70 = vector.extract_strided_slice %30 {offsets = [16, 144], sizes = [16, 16], strides = [1, 1]} : vector<32x192xf32> to vector<16x16xf32>
    %71 = vector.extract_strided_slice %30 {offsets = [16, 160], sizes = [16, 16], strides = [1, 1]} : vector<32x192xf32> to vector<16x16xf32>
    %72 = vector.extract_strided_slice %30 {offsets = [16, 176], sizes = [16, 16], strides = [1, 1]} : vector<32x192xf32> to vector<16x16xf32>
    %73 = vector.shape_cast %65 : vector<16x16xf32> to vector<1x16x16xf32>
    %74 = vector.shape_cast %66 : vector<16x16xf32> to vector<1x16x16xf32>
    %75 = vector.shape_cast %67 : vector<16x16xf32> to vector<1x16x16xf32>
    %76 = vector.shape_cast %68 : vector<16x16xf32> to vector<1x16x16xf32>
    %77 = vector.shape_cast %69 : vector<16x16xf32> to vector<1x16x16xf32>
    %78 = vector.shape_cast %70 : vector<16x16xf32> to vector<1x16x16xf32>
    %79 = vector.shape_cast %71 : vector<16x16xf32> to vector<1x16x16xf32>
    %80 = vector.shape_cast %72 : vector<16x16xf32> to vector<1x16x16xf32>
    %81 = tpu.concatenate %73, %74, %75, %76, %77, %78, %79, %80 in 0 : vector<1x16x16xf32>, vector<1x16x16xf32>, vector<1x16x16xf32>, vector<1x16x16xf32>, vector<1x16x16xf32>, vector<1x16x16xf32>, vector<1x16x16xf32>, vector<1x16x16xf32> -> vector<8x16x16xf32>
    "tpu.trace_start"() <{level = 10 : i32, message = "bnd,bmd->bnm"}> : () -> ()
    %cst_12 = arith.constant dense<0.000000e+00> : vector<8x16x16xf32>
    %82 = tpu.matmul %47, %64, %cst_12 {dimension_numbers = #tpu.dot_dimension_numbers<[2], [2], [1], [1], [0, 0, 0, 1, 1, 1], [0], [0]>} : vector<8x16x16xf32>, vector<8x16x16xf32>, vector<8x16x16xf32> -> vector<8x16x16xf32>
    "tpu.trace_stop"() : () -> ()
    %cst_13 = arith.constant 2.500000e-01 : f32
    %83 = vector.broadcast %cst_13 : f32 to vector<8x16x16xf32>
    %84 = arith.mulf %82, %83 : vector<8x16x16xf32>
    %cst_14 = arith.constant dense<0xFF800000> : vector<8x16xf32>
    %85 = vector.multi_reduction <maximumf>, %84, %cst_14 [2] : vector<8x16x16xf32> to vector<8x16xf32>
    %86 = vector.shape_cast %85 : vector<8x16xf32> to vector<8x16x1xf32>
    %87 = vector.broadcast %86 : vector<8x16x1xf32> to vector<8x16x16xf32>
    %88 = arith.subf %84, %87 : vector<8x16x16xf32>
    %89 = math.exp %88 : vector<8x16x16xf32>
    %cst_15 = arith.constant dense<0.000000e+00> : vector<8x16xf32>
    %90 = vector.multi_reduction <add>, %89, %cst_15 [2] : vector<8x16x16xf32> to vector<8x16xf32>
    %91 = vector.shape_cast %90 : vector<8x16xf32> to vector<8x16x1xf32>
    %92 = tpu.reciprocal %91 {approx = true} : vector<8x16x1xf32> -> vector<8x16x1xf32>
    %93 = vector.broadcast %92 : vector<8x16x1xf32> to vector<8x16x16xf32>
    %94 = arith.mulf %89, %93 : vector<8x16x16xf32>
    "tpu.trace_start"() <{level = 10 : i32, message = "bnm,bmd->bnd"}> : () -> ()
    %cst_16 = arith.constant dense<0.000000e+00> : vector<8x16x16xf32>
    %95 = tpu.matmul %94, %81, %cst_16 {dimension_numbers = #tpu.dot_dimension_numbers<[2], [1], [1], [2], [0, 0, 0, 1, 1, 2], [0], [0]>} : vector<8x16x16xf32>, vector<8x16x16xf32>, vector<8x16x16xf32> -> vector<8x16x16xf32>
    "tpu.trace_stop"() : () -> ()
    %96 = vector.extract_strided_slice %95 {offsets = [0, 0, 0], sizes = [1, 16, 16], strides = [1, 1, 1]} : vector<8x16x16xf32> to vector<1x16x16xf32>
    %97 = vector.shape_cast %96 : vector<1x16x16xf32> to vector<16x16xf32>
    %98 = vector.extract_strided_slice %95 {offsets = [1, 0, 0], sizes = [1, 16, 16], strides = [1, 1, 1]} : vector<8x16x16xf32> to vector<1x16x16xf32>
    %99 = vector.shape_cast %98 : vector<1x16x16xf32> to vector<16x16xf32>
    %100 = vector.extract_strided_slice %95 {offsets = [2, 0, 0], sizes = [1, 16, 16], strides = [1, 1, 1]} : vector<8x16x16xf32> to vector<1x16x16xf32>
    %101 = vector.shape_cast %100 : vector<1x16x16xf32> to vector<16x16xf32>
    %102 = vector.extract_strided_slice %95 {offsets = [3, 0, 0], sizes = [1, 16, 16], strides = [1, 1, 1]} : vector<8x16x16xf32> to vector<1x16x16xf32>
    %103 = vector.shape_cast %102 : vector<1x16x16xf32> to vector<16x16xf32>
    %104 = tpu.concatenate %97, %99, %101, %103 in 1 : vector<16x16xf32>, vector<16x16xf32>, vector<16x16xf32>, vector<16x16xf32> -> vector<16x64xf32>
    %105 = vector.extract_strided_slice %95 {offsets = [4, 0, 0], sizes = [1, 16, 16], strides = [1, 1, 1]} : vector<8x16x16xf32> to vector<1x16x16xf32>
    %106 = vector.shape_cast %105 : vector<1x16x16xf32> to vector<16x16xf32>
    %107 = vector.extract_strided_slice %95 {offsets = [5, 0, 0], sizes = [1, 16, 16], strides = [1, 1, 1]} : vector<8x16x16xf32> to vector<1x16x16xf32>
    %108 = vector.shape_cast %107 : vector<1x16x16xf32> to vector<16x16xf32>
    %109 = vector.extract_strided_slice %95 {offsets = [6, 0, 0], sizes = [1, 16, 16], strides = [1, 1, 1]} : vector<8x16x16xf32> to vector<1x16x16xf32>
    %110 = vector.shape_cast %109 : vector<1x16x16xf32> to vector<16x16xf32>
    %111 = vector.extract_strided_slice %95 {offsets = [7, 0, 0], sizes = [1, 16, 16], strides = [1, 1, 1]} : vector<8x16x16xf32> to vector<1x16x16xf32>
    %112 = vector.shape_cast %111 : vector<1x16x16xf32> to vector<16x16xf32>
    %113 = tpu.concatenate %106, %108, %110, %112 in 1 : vector<16x16xf32>, vector<16x16xf32>, vector<16x16xf32>, vector<16x16xf32> -> vector<16x64xf32>
    %114 = tpu.concatenate %104, %113 in 0 : vector<16x64xf32>, vector<16x64xf32> -> vector<32x64xf32>
    %c0_17 = arith.constant 0 : index
    %c0_18 = arith.constant 0 : index
    %c0_19 = arith.constant 0 : index
    %115 = vector.load %arg5[%c0_17, %c0_18, %c0_19] : memref<2x64x64xf32, #tpu.memory_space<vmem>>, vector<1x64x64xf32>
    %116 = vector.shape_cast %115 : vector<1x64x64xf32> to vector<64x64xf32>
    %cst_20 = arith.constant dense<0.000000e+00> : vector<32x64xf32>
    %117 = tpu.matmul %114, %116, %cst_20 {dimension_numbers = #tpu.dot_dimension_numbers<[1], [0], [0], [1], [0, 0, 1, 1], [], []>} : vector<32x64xf32>, vector<64x64xf32>, vector<32x64xf32> -> vector<32x64xf32>
    %c0_21 = arith.constant 0 : index
    %c0_22 = arith.constant 0 : index
    %c0_23 = arith.constant 0 : index
    %118 = vector.load %arg6[%c0_21, %c0_22, %c0_23] : memref<2x1x64xf32, #tpu.memory_space<vmem>>, vector<1x1x64xf32>
    %119 = vector.shape_cast %118 : vector<1x1x64xf32> to vector<1x64xf32>
    %120 = vector.broadcast %119 : vector<1x64xf32> to vector<32x64xf32>
    %121 = arith.addf %117, %120 : vector<32x64xf32>
    %122 = arith.addf %23, %121 : vector<32x64xf32>
    %c0_24 = arith.constant 0 : index
    %c0_25 = arith.constant 0 : index
    %c0_26 = arith.constant 0 : index
    %123 = vector.load %arg7[%c0_24, %c0_25, %c0_26] : memref<2x1x64xf32, #tpu.memory_space<vmem>>, vector<1x1x64xf32>
    %124 = vector.shape_cast %123 : vector<1x1x64xf32> to vector<1x64xf32>
    %c0_27 = arith.constant 0 : index
    %c0_28 = arith.constant 0 : index
    %c0_29 = arith.constant 0 : index
    %125 = vector.load %arg8[%c0_27, %c0_28, %c0_29] : memref<2x1x64xf32, #tpu.memory_space<vmem>>, vector<1x1x64xf32>
    %126 = vector.shape_cast %125 : vector<1x1x64xf32> to vector<1x64xf32>
    %cst_30 = arith.constant dense<0.000000e+00> : vector<32xf32>
    %127 = vector.multi_reduction <add>, %122, %cst_30 [1] : vector<32x64xf32> to vector<32xf32>
    %128 = vector.shape_cast %127 : vector<32xf32> to vector<32x1xf32>
    %cst_31 = arith.constant 6.400000e+01 : f32
    %129 = vector.broadcast %cst_31 : f32 to vector<32x1xf32>
    %130 = arith.divf %128, %129 : vector<32x1xf32>
    %131 = vector.broadcast %130 : vector<32x1xf32> to vector<32x64xf32>
    %132 = arith.subf %122, %131 : vector<32x64xf32>
    %133 = arith.mulf %132, %132 : vector<32x64xf32>
    %cst_32 = arith.constant dense<0.000000e+00> : vector<32xf32>
    %134 = vector.multi_reduction <add>, %133, %cst_32 [1] : vector<32x64xf32> to vector<32xf32>
    %135 = vector.shape_cast %134 : vector<32xf32> to vector<32x1xf32>
    %cst_33 = arith.constant 6.400000e+01 : f32
    %136 = vector.broadcast %cst_33 : f32 to vector<32x1xf32>
    %137 = arith.divf %135, %136 : vector<32x1xf32>
    %cst_34 = arith.constant 9.99999974E-6 : f32
    %138 = vector.broadcast %cst_34 : f32 to vector<32x1xf32>
    %139 = arith.addf %137, %138 : vector<32x1xf32>
    %140 = math.rsqrt %139 : vector<32x1xf32>
    %141 = vector.broadcast %140 : vector<32x1xf32> to vector<32x64xf32>
    %142 = arith.mulf %132, %141 : vector<32x64xf32>
    %143 = vector.broadcast %124 : vector<1x64xf32> to vector<32x64xf32>
    %144 = arith.mulf %142, %143 : vector<32x64xf32>
    %145 = vector.broadcast %126 : vector<1x64xf32> to vector<32x64xf32>
    %146 = arith.addf %144, %145 : vector<32x64xf32>
    %c0_35 = arith.constant 0 : index
    %c0_36 = arith.constant 0 : index
    %c0_37 = arith.constant 0 : index
    %147 = vector.load %arg9[%c0_35, %c0_36, %c0_37] : memref<2x64x256xf32, #tpu.memory_space<vmem>>, vector<1x64x256xf32>
    %148 = vector.shape_cast %147 : vector<1x64x256xf32> to vector<64x256xf32>
    %cst_38 = arith.constant dense<0.000000e+00> : vector<32x256xf32>
    %149 = tpu.matmul %146, %148, %cst_38 {dimension_numbers = #tpu.dot_dimension_numbers<[1], [0], [0], [1], [0, 0, 1, 1], [], []>} : vector<32x64xf32>, vector<64x256xf32>, vector<32x256xf32> -> vector<32x256xf32>
    %c0_39 = arith.constant 0 : index
    %c0_40 = arith.constant 0 : index
    %c0_41 = arith.constant 0 : index
    %150 = vector.load %arg10[%c0_39, %c0_40, %c0_41] : memref<2x1x256xf32, #tpu.memory_space<vmem>>, vector<1x1x256xf32>
    %151 = vector.shape_cast %150 : vector<1x1x256xf32> to vector<1x256xf32>
    %152 = vector.broadcast %151 : vector<1x256xf32> to vector<32x256xf32>
    %153 = arith.addf %149, %152 : vector<32x256xf32>
    %cst_42 = arith.constant 0.000000e+00 : f32
    %154 = vector.broadcast %cst_42 : f32 to vector<32x256xf32>
    %155 = arith.maximumf %153, %154 : vector<32x256xf32>
    %c0_43 = arith.constant 0 : index
    %c0_44 = arith.constant 0 : index
    %c0_45 = arith.constant 0 : index
    %156 = vector.load %arg11[%c0_43, %c0_44, %c0_45] : memref<2x256x64xf32, #tpu.memory_space<vmem>>, vector<1x256x64xf32>
    %157 = vector.shape_cast %156 : vector<1x256x64xf32> to vector<256x64xf32>
    %cst_46 = arith.constant dense<0.000000e+00> : vector<32x64xf32>
    %158 = tpu.matmul %155, %157, %cst_46 {dimension_numbers = #tpu.dot_dimension_numbers<[1], [0], [0], [1], [0, 0, 1, 1], [], []>} : vector<32x256xf32>, vector<256x64xf32>, vector<32x64xf32> -> vector<32x64xf32>
    %c0_47 = arith.constant 0 : index
    %c0_48 = arith.constant 0 : index
    %c0_49 = arith.constant 0 : index
    %159 = vector.load %arg12[%c0_47, %c0_48, %c0_49] : memref<2x1x64xf32, #tpu.memory_space<vmem>>, vector<1x1x64xf32>
    %160 = vector.shape_cast %159 : vector<1x1x64xf32> to vector<1x64xf32>
    %161 = vector.broadcast %160 : vector<1x64xf32> to vector<32x64xf32>
    %162 = arith.addf %158, %161 : vector<32x64xf32>
    %163 = arith.addf %146, %162 : vector<32x64xf32>
    %c0_50 = arith.constant 0 : index
    %c0_51 = arith.constant 0 : index
    %c0_52 = arith.constant 0 : index
    %164 = vector.load %arg13[%c0_50, %c0_51, %c0_52] : memref<2x1x64xf32, #tpu.memory_space<vmem>>, vector<1x1x64xf32>
    %165 = vector.shape_cast %164 : vector<1x1x64xf32> to vector<1x64xf32>
    %c0_53 = arith.constant 0 : index
    %c0_54 = arith.constant 0 : index
    %c0_55 = arith.constant 0 : index
    %166 = vector.load %arg14[%c0_53, %c0_54, %c0_55] : memref<2x1x64xf32, #tpu.memory_space<vmem>>, vector<1x1x64xf32>
    %167 = vector.shape_cast %166 : vector<1x1x64xf32> to vector<1x64xf32>
    %cst_56 = arith.constant dense<0.000000e+00> : vector<32xf32>
    %168 = vector.multi_reduction <add>, %163, %cst_56 [1] : vector<32x64xf32> to vector<32xf32>
    %169 = vector.shape_cast %168 : vector<32xf32> to vector<32x1xf32>
    %cst_57 = arith.constant 6.400000e+01 : f32
    %170 = vector.broadcast %cst_57 : f32 to vector<32x1xf32>
    %171 = arith.divf %169, %170 : vector<32x1xf32>
    %172 = vector.broadcast %171 : vector<32x1xf32> to vector<32x64xf32>
    %173 = arith.subf %163, %172 : vector<32x64xf32>
    %174 = arith.mulf %173, %173 : vector<32x64xf32>
    %cst_58 = arith.constant dense<0.000000e+00> : vector<32xf32>
    %175 = vector.multi_reduction <add>, %174, %cst_58 [1] : vector<32x64xf32> to vector<32xf32>
    %176 = vector.shape_cast %175 : vector<32xf32> to vector<32x1xf32>
    %cst_59 = arith.constant 6.400000e+01 : f32
    %177 = vector.broadcast %cst_59 : f32 to vector<32x1xf32>
    %178 = arith.divf %176, %177 : vector<32x1xf32>
    %cst_60 = arith.constant 9.99999974E-6 : f32
    %179 = vector.broadcast %cst_60 : f32 to vector<32x1xf32>
    %180 = arith.addf %178, %179 : vector<32x1xf32>
    %181 = math.rsqrt %180 : vector<32x1xf32>
    %182 = vector.broadcast %181 : vector<32x1xf32> to vector<32x64xf32>
    %183 = arith.mulf %173, %182 : vector<32x64xf32>
    %184 = vector.broadcast %165 : vector<1x64xf32> to vector<32x64xf32>
    %185 = arith.mulf %183, %184 : vector<32x64xf32>
    %186 = vector.broadcast %167 : vector<1x64xf32> to vector<32x64xf32>
    %187 = arith.addf %185, %186 : vector<32x64xf32>
    %c1 = arith.constant 1 : index
    %c0_61 = arith.constant 0 : index
    %c0_62 = arith.constant 0 : index
    %188 = vector.load %arg3[%c1, %c0_61, %c0_62] : memref<2x64x192xf32, #tpu.memory_space<vmem>>, vector<1x64x192xf32>
    %189 = vector.shape_cast %188 : vector<1x64x192xf32> to vector<64x192xf32>
    %cst_63 = arith.constant dense<0.000000e+00> : vector<32x192xf32>
    %190 = tpu.matmul %187, %189, %cst_63 {dimension_numbers = #tpu.dot_dimension_numbers<[1], [0], [0], [1], [0, 0, 1, 1], [], []>} : vector<32x64xf32>, vector<64x192xf32>, vector<32x192xf32> -> vector<32x192xf32>
    %c1_64 = arith.constant 1 : index
    %c0_65 = arith.constant 0 : index
    %c0_66 = arith.constant 0 : index
    %191 = vector.load %arg4[%c1_64, %c0_65, %c0_66] : memref<2x1x192xf32, #tpu.memory_space<vmem>>, vector<1x1x192xf32>
    %192 = vector.shape_cast %191 : vector<1x1x192xf32> to vector<1x192xf32>
    %193 = vector.broadcast %192 : vector<1x192xf32> to vector<32x192xf32>
    %194 = arith.addf %190, %193 : vector<32x192xf32>
    %195 = vector.extract_strided_slice %194 {offsets = [0, 0], sizes = [16, 16], strides = [1, 1]} : vector<32x192xf32> to vector<16x16xf32>
    %196 = vector.extract_strided_slice %194 {offsets = [0, 16], sizes = [16, 16], strides = [1, 1]} : vector<32x192xf32> to vector<16x16xf32>
    %197 = vector.extract_strided_slice %194 {offsets = [0, 32], sizes = [16, 16], strides = [1, 1]} : vector<32x192xf32> to vector<16x16xf32>
    %198 = vector.extract_strided_slice %194 {offsets = [0, 48], sizes = [16, 16], strides = [1, 1]} : vector<32x192xf32> to vector<16x16xf32>
    %199 = vector.extract_strided_slice %194 {offsets = [16, 0], sizes = [16, 16], strides = [1, 1]} : vector<32x192xf32> to vector<16x16xf32>
    %200 = vector.extract_strided_slice %194 {offsets = [16, 16], sizes = [16, 16], strides = [1, 1]} : vector<32x192xf32> to vector<16x16xf32>
    %201 = vector.extract_strided_slice %194 {offsets = [16, 32], sizes = [16, 16], strides = [1, 1]} : vector<32x192xf32> to vector<16x16xf32>
    %202 = vector.extract_strided_slice %194 {offsets = [16, 48], sizes = [16, 16], strides = [1, 1]} : vector<32x192xf32> to vector<16x16xf32>
    %203 = vector.shape_cast %195 : vector<16x16xf32> to vector<1x16x16xf32>
    %204 = vector.shape_cast %196 : vector<16x16xf32> to vector<1x16x16xf32>
    %205 = vector.shape_cast %197 : vector<16x16xf32> to vector<1x16x16xf32>
    %206 = vector.shape_cast %198 : vector<16x16xf32> to vector<1x16x16xf32>
    %207 = vector.shape_cast %199 : vector<16x16xf32> to vector<1x16x16xf32>
    %208 = vector.shape_cast %200 : vector<16x16xf32> to vector<1x16x16xf32>
    %209 = vector.shape_cast %201 : vector<16x16xf32> to vector<1x16x16xf32>
    %210 = vector.shape_cast %202 : vector<16x16xf32> to vector<1x16x16xf32>
    %211 = tpu.concatenate %203, %204, %205, %206, %207, %208, %209, %210 in 0 : vector<1x16x16xf32>, vector<1x16x16xf32>, vector<1x16x16xf32>, vector<1x16x16xf32>, vector<1x16x16xf32>, vector<1x16x16xf32>, vector<1x16x16xf32>, vector<1x16x16xf32> -> vector<8x16x16xf32>
    %212 = vector.extract_strided_slice %194 {offsets = [0, 64], sizes = [16, 16], strides = [1, 1]} : vector<32x192xf32> to vector<16x16xf32>
    %213 = vector.extract_strided_slice %194 {offsets = [0, 80], sizes = [16, 16], strides = [1, 1]} : vector<32x192xf32> to vector<16x16xf32>
    %214 = vector.extract_strided_slice %194 {offsets = [0, 96], sizes = [16, 16], strides = [1, 1]} : vector<32x192xf32> to vector<16x16xf32>
    %215 = vector.extract_strided_slice %194 {offsets = [0, 112], sizes = [16, 16], strides = [1, 1]} : vector<32x192xf32> to vector<16x16xf32>
    %216 = vector.extract_strided_slice %194 {offsets = [16, 64], sizes = [16, 16], strides = [1, 1]} : vector<32x192xf32> to vector<16x16xf32>
    %217 = vector.extract_strided_slice %194 {offsets = [16, 80], sizes = [16, 16], strides = [1, 1]} : vector<32x192xf32> to vector<16x16xf32>
    %218 = vector.extract_strided_slice %194 {offsets = [16, 96], sizes = [16, 16], strides = [1, 1]} : vector<32x192xf32> to vector<16x16xf32>
    %219 = vector.extract_strided_slice %194 {offsets = [16, 112], sizes = [16, 16], strides = [1, 1]} : vector<32x192xf32> to vector<16x16xf32>
    %220 = vector.shape_cast %212 : vector<16x16xf32> to vector<1x16x16xf32>
    %221 = vector.shape_cast %213 : vector<16x16xf32> to vector<1x16x16xf32>
    %222 = vector.shape_cast %214 : vector<16x16xf32> to vector<1x16x16xf32>
    %223 = vector.shape_cast %215 : vector<16x16xf32> to vector<1x16x16xf32>
    %224 = vector.shape_cast %216 : vector<16x16xf32> to vector<1x16x16xf32>
    %225 = vector.shape_cast %217 : vector<16x16xf32> to vector<1x16x16xf32>
    %226 = vector.shape_cast %218 : vector<16x16xf32> to vector<1x16x16xf32>
    %227 = vector.shape_cast %219 : vector<16x16xf32> to vector<1x16x16xf32>
    %228 = tpu.concatenate %220, %221, %222, %223, %224, %225, %226, %227 in 0 : vector<1x16x16xf32>, vector<1x16x16xf32>, vector<1x16x16xf32>, vector<1x16x16xf32>, vector<1x16x16xf32>, vector<1x16x16xf32>, vector<1x16x16xf32>, vector<1x16x16xf32> -> vector<8x16x16xf32>
    %229 = vector.extract_strided_slice %194 {offsets = [0, 128], sizes = [16, 16], strides = [1, 1]} : vector<32x192xf32> to vector<16x16xf32>
    %230 = vector.extract_strided_slice %194 {offsets = [0, 144], sizes = [16, 16], strides = [1, 1]} : vector<32x192xf32> to vector<16x16xf32>
    %231 = vector.extract_strided_slice %194 {offsets = [0, 160], sizes = [16, 16], strides = [1, 1]} : vector<32x192xf32> to vector<16x16xf32>
    %232 = vector.extract_strided_slice %194 {offsets = [0, 176], sizes = [16, 16], strides = [1, 1]} : vector<32x192xf32> to vector<16x16xf32>
    %233 = vector.extract_strided_slice %194 {offsets = [16, 128], sizes = [16, 16], strides = [1, 1]} : vector<32x192xf32> to vector<16x16xf32>
    %234 = vector.extract_strided_slice %194 {offsets = [16, 144], sizes = [16, 16], strides = [1, 1]} : vector<32x192xf32> to vector<16x16xf32>
    %235 = vector.extract_strided_slice %194 {offsets = [16, 160], sizes = [16, 16], strides = [1, 1]} : vector<32x192xf32> to vector<16x16xf32>
    %236 = vector.extract_strided_slice %194 {offsets = [16, 176], sizes = [16, 16], strides = [1, 1]} : vector<32x192xf32> to vector<16x16xf32>
    %237 = vector.shape_cast %229 : vector<16x16xf32> to vector<1x16x16xf32>
    %238 = vector.shape_cast %230 : vector<16x16xf32> to vector<1x16x16xf32>
    %239 = vector.shape_cast %231 : vector<16x16xf32> to vector<1x16x16xf32>
    %240 = vector.shape_cast %232 : vector<16x16xf32> to vector<1x16x16xf32>
    %241 = vector.shape_cast %233 : vector<16x16xf32> to vector<1x16x16xf32>
    %242 = vector.shape_cast %234 : vector<16x16xf32> to vector<1x16x16xf32>
    %243 = vector.shape_cast %235 : vector<16x16xf32> to vector<1x16x16xf32>
    %244 = vector.shape_cast %236 : vector<16x16xf32> to vector<1x16x16xf32>
    %245 = tpu.concatenate %237, %238, %239, %240, %241, %242, %243, %244 in 0 : vector<1x16x16xf32>, vector<1x16x16xf32>, vector<1x16x16xf32>, vector<1x16x16xf32>, vector<1x16x16xf32>, vector<1x16x16xf32>, vector<1x16x16xf32>, vector<1x16x16xf32> -> vector<8x16x16xf32>
    "tpu.trace_start"() <{level = 10 : i32, message = "bnd,bmd->bnm"}> : () -> ()
    %cst_67 = arith.constant dense<0.000000e+00> : vector<8x16x16xf32>
    %246 = tpu.matmul %211, %228, %cst_67 {dimension_numbers = #tpu.dot_dimension_numbers<[2], [2], [1], [1], [0, 0, 0, 1, 1, 1], [0], [0]>} : vector<8x16x16xf32>, vector<8x16x16xf32>, vector<8x16x16xf32> -> vector<8x16x16xf32>
    "tpu.trace_stop"() : () -> ()
    %cst_68 = arith.constant 2.500000e-01 : f32
    %247 = vector.broadcast %cst_68 : f32 to vector<8x16x16xf32>
    %248 = arith.mulf %246, %247 : vector<8x16x16xf32>
    %cst_69 = arith.constant dense<0xFF800000> : vector<8x16xf32>
    %249 = vector.multi_reduction <maximumf>, %248, %cst_69 [2] : vector<8x16x16xf32> to vector<8x16xf32>
    %250 = vector.shape_cast %249 : vector<8x16xf32> to vector<8x16x1xf32>
    %251 = vector.broadcast %250 : vector<8x16x1xf32> to vector<8x16x16xf32>
    %252 = arith.subf %248, %251 : vector<8x16x16xf32>
    %253 = math.exp %252 : vector<8x16x16xf32>
    %cst_70 = arith.constant dense<0.000000e+00> : vector<8x16xf32>
    %254 = vector.multi_reduction <add>, %253, %cst_70 [2] : vector<8x16x16xf32> to vector<8x16xf32>
    %255 = vector.shape_cast %254 : vector<8x16xf32> to vector<8x16x1xf32>
    %256 = tpu.reciprocal %255 {approx = true} : vector<8x16x1xf32> -> vector<8x16x1xf32>
    %257 = vector.broadcast %256 : vector<8x16x1xf32> to vector<8x16x16xf32>
    %258 = arith.mulf %253, %257 : vector<8x16x16xf32>
    "tpu.trace_start"() <{level = 10 : i32, message = "bnm,bmd->bnd"}> : () -> ()
    %cst_71 = arith.constant dense<0.000000e+00> : vector<8x16x16xf32>
    %259 = tpu.matmul %258, %245, %cst_71 {dimension_numbers = #tpu.dot_dimension_numbers<[2], [1], [1], [2], [0, 0, 0, 1, 1, 2], [0], [0]>} : vector<8x16x16xf32>, vector<8x16x16xf32>, vector<8x16x16xf32> -> vector<8x16x16xf32>
    "tpu.trace_stop"() : () -> ()
    %260 = vector.extract_strided_slice %259 {offsets = [0, 0, 0], sizes = [1, 16, 16], strides = [1, 1, 1]} : vector<8x16x16xf32> to vector<1x16x16xf32>
    %261 = vector.shape_cast %260 : vector<1x16x16xf32> to vector<16x16xf32>
    %262 = vector.extract_strided_slice %259 {offsets = [1, 0, 0], sizes = [1, 16, 16], strides = [1, 1, 1]} : vector<8x16x16xf32> to vector<1x16x16xf32>
    %263 = vector.shape_cast %262 : vector<1x16x16xf32> to vector<16x16xf32>
    %264 = vector.extract_strided_slice %259 {offsets = [2, 0, 0], sizes = [1, 16, 16], strides = [1, 1, 1]} : vector<8x16x16xf32> to vector<1x16x16xf32>
    %265 = vector.shape_cast %264 : vector<1x16x16xf32> to vector<16x16xf32>
    %266 = vector.extract_strided_slice %259 {offsets = [3, 0, 0], sizes = [1, 16, 16], strides = [1, 1, 1]} : vector<8x16x16xf32> to vector<1x16x16xf32>
    %267 = vector.shape_cast %266 : vector<1x16x16xf32> to vector<16x16xf32>
    %268 = tpu.concatenate %261, %263, %265, %267 in 1 : vector<16x16xf32>, vector<16x16xf32>, vector<16x16xf32>, vector<16x16xf32> -> vector<16x64xf32>
    %269 = vector.extract_strided_slice %259 {offsets = [4, 0, 0], sizes = [1, 16, 16], strides = [1, 1, 1]} : vector<8x16x16xf32> to vector<1x16x16xf32>
    %270 = vector.shape_cast %269 : vector<1x16x16xf32> to vector<16x16xf32>
    %271 = vector.extract_strided_slice %259 {offsets = [5, 0, 0], sizes = [1, 16, 16], strides = [1, 1, 1]} : vector<8x16x16xf32> to vector<1x16x16xf32>
    %272 = vector.shape_cast %271 : vector<1x16x16xf32> to vector<16x16xf32>
    %273 = vector.extract_strided_slice %259 {offsets = [6, 0, 0], sizes = [1, 16, 16], strides = [1, 1, 1]} : vector<8x16x16xf32> to vector<1x16x16xf32>
    %274 = vector.shape_cast %273 : vector<1x16x16xf32> to vector<16x16xf32>
    %275 = vector.extract_strided_slice %259 {offsets = [7, 0, 0], sizes = [1, 16, 16], strides = [1, 1, 1]} : vector<8x16x16xf32> to vector<1x16x16xf32>
    %276 = vector.shape_cast %275 : vector<1x16x16xf32> to vector<16x16xf32>
    %277 = tpu.concatenate %270, %272, %274, %276 in 1 : vector<16x16xf32>, vector<16x16xf32>, vector<16x16xf32>, vector<16x16xf32> -> vector<16x64xf32>
    %278 = tpu.concatenate %268, %277 in 0 : vector<16x64xf32>, vector<16x64xf32> -> vector<32x64xf32>
    %c1_72 = arith.constant 1 : index
    %c0_73 = arith.constant 0 : index
    %c0_74 = arith.constant 0 : index
    %279 = vector.load %arg5[%c1_72, %c0_73, %c0_74] : memref<2x64x64xf32, #tpu.memory_space<vmem>>, vector<1x64x64xf32>
    %280 = vector.shape_cast %279 : vector<1x64x64xf32> to vector<64x64xf32>
    %cst_75 = arith.constant dense<0.000000e+00> : vector<32x64xf32>
    %281 = tpu.matmul %278, %280, %cst_75 {dimension_numbers = #tpu.dot_dimension_numbers<[1], [0], [0], [1], [0, 0, 1, 1], [], []>} : vector<32x64xf32>, vector<64x64xf32>, vector<32x64xf32> -> vector<32x64xf32>
    %c1_76 = arith.constant 1 : index
    %c0_77 = arith.constant 0 : index
    %c0_78 = arith.constant 0 : index
    %282 = vector.load %arg6[%c1_76, %c0_77, %c0_78] : memref<2x1x64xf32, #tpu.memory_space<vmem>>, vector<1x1x64xf32>
    %283 = vector.shape_cast %282 : vector<1x1x64xf32> to vector<1x64xf32>
    %284 = vector.broadcast %283 : vector<1x64xf32> to vector<32x64xf32>
    %285 = arith.addf %281, %284 : vector<32x64xf32>
    %286 = arith.addf %187, %285 : vector<32x64xf32>
    %c1_79 = arith.constant 1 : index
    %c0_80 = arith.constant 0 : index
    %c0_81 = arith.constant 0 : index
    %287 = vector.load %arg7[%c1_79, %c0_80, %c0_81] : memref<2x1x64xf32, #tpu.memory_space<vmem>>, vector<1x1x64xf32>
    %288 = vector.shape_cast %287 : vector<1x1x64xf32> to vector<1x64xf32>
    %c1_82 = arith.constant 1 : index
    %c0_83 = arith.constant 0 : index
    %c0_84 = arith.constant 0 : index
    %289 = vector.load %arg8[%c1_82, %c0_83, %c0_84] : memref<2x1x64xf32, #tpu.memory_space<vmem>>, vector<1x1x64xf32>
    %290 = vector.shape_cast %289 : vector<1x1x64xf32> to vector<1x64xf32>
    %cst_85 = arith.constant dense<0.000000e+00> : vector<32xf32>
    %291 = vector.multi_reduction <add>, %286, %cst_85 [1] : vector<32x64xf32> to vector<32xf32>
    %292 = vector.shape_cast %291 : vector<32xf32> to vector<32x1xf32>
    %cst_86 = arith.constant 6.400000e+01 : f32
    %293 = vector.broadcast %cst_86 : f32 to vector<32x1xf32>
    %294 = arith.divf %292, %293 : vector<32x1xf32>
    %295 = vector.broadcast %294 : vector<32x1xf32> to vector<32x64xf32>
    %296 = arith.subf %286, %295 : vector<32x64xf32>
    %297 = arith.mulf %296, %296 : vector<32x64xf32>
    %cst_87 = arith.constant dense<0.000000e+00> : vector<32xf32>
    %298 = vector.multi_reduction <add>, %297, %cst_87 [1] : vector<32x64xf32> to vector<32xf32>
    %299 = vector.shape_cast %298 : vector<32xf32> to vector<32x1xf32>
    %cst_88 = arith.constant 6.400000e+01 : f32
    %300 = vector.broadcast %cst_88 : f32 to vector<32x1xf32>
    %301 = arith.divf %299, %300 : vector<32x1xf32>
    %cst_89 = arith.constant 9.99999974E-6 : f32
    %302 = vector.broadcast %cst_89 : f32 to vector<32x1xf32>
    %303 = arith.addf %301, %302 : vector<32x1xf32>
    %304 = math.rsqrt %303 : vector<32x1xf32>
    %305 = vector.broadcast %304 : vector<32x1xf32> to vector<32x64xf32>
    %306 = arith.mulf %296, %305 : vector<32x64xf32>
    %307 = vector.broadcast %288 : vector<1x64xf32> to vector<32x64xf32>
    %308 = arith.mulf %306, %307 : vector<32x64xf32>
    %309 = vector.broadcast %290 : vector<1x64xf32> to vector<32x64xf32>
    %310 = arith.addf %308, %309 : vector<32x64xf32>
    %c1_90 = arith.constant 1 : index
    %c0_91 = arith.constant 0 : index
    %c0_92 = arith.constant 0 : index
    %311 = vector.load %arg9[%c1_90, %c0_91, %c0_92] : memref<2x64x256xf32, #tpu.memory_space<vmem>>, vector<1x64x256xf32>
    %312 = vector.shape_cast %311 : vector<1x64x256xf32> to vector<64x256xf32>
    %cst_93 = arith.constant dense<0.000000e+00> : vector<32x256xf32>
    %313 = tpu.matmul %310, %312, %cst_93 {dimension_numbers = #tpu.dot_dimension_numbers<[1], [0], [0], [1], [0, 0, 1, 1], [], []>} : vector<32x64xf32>, vector<64x256xf32>, vector<32x256xf32> -> vector<32x256xf32>
    %c1_94 = arith.constant 1 : index
    %c0_95 = arith.constant 0 : index
    %c0_96 = arith.constant 0 : index
    %314 = vector.load %arg10[%c1_94, %c0_95, %c0_96] : memref<2x1x256xf32, #tpu.memory_space<vmem>>, vector<1x1x256xf32>
    %315 = vector.shape_cast %314 : vector<1x1x256xf32> to vector<1x256xf32>
    %316 = vector.broadcast %315 : vector<1x256xf32> to vector<32x256xf32>
    %317 = arith.addf %313, %316 : vector<32x256xf32>
    %cst_97 = arith.constant 0.000000e+00 : f32
    %318 = vector.broadcast %cst_97 : f32 to vector<32x256xf32>
    %319 = arith.maximumf %317, %318 : vector<32x256xf32>
    %c1_98 = arith.constant 1 : index
    %c0_99 = arith.constant 0 : index
    %c0_100 = arith.constant 0 : index
    %320 = vector.load %arg11[%c1_98, %c0_99, %c0_100] : memref<2x256x64xf32, #tpu.memory_space<vmem>>, vector<1x256x64xf32>
    %321 = vector.shape_cast %320 : vector<1x256x64xf32> to vector<256x64xf32>
    %cst_101 = arith.constant dense<0.000000e+00> : vector<32x64xf32>
    %322 = tpu.matmul %319, %321, %cst_101 {dimension_numbers = #tpu.dot_dimension_numbers<[1], [0], [0], [1], [0, 0, 1, 1], [], []>} : vector<32x256xf32>, vector<256x64xf32>, vector<32x64xf32> -> vector<32x64xf32>
    %c1_102 = arith.constant 1 : index
    %c0_103 = arith.constant 0 : index
    %c0_104 = arith.constant 0 : index
    %323 = vector.load %arg12[%c1_102, %c0_103, %c0_104] : memref<2x1x64xf32, #tpu.memory_space<vmem>>, vector<1x1x64xf32>
    %324 = vector.shape_cast %323 : vector<1x1x64xf32> to vector<1x64xf32>
    %325 = vector.broadcast %324 : vector<1x64xf32> to vector<32x64xf32>
    %326 = arith.addf %322, %325 : vector<32x64xf32>
    %327 = arith.addf %310, %326 : vector<32x64xf32>
    %c1_105 = arith.constant 1 : index
    %c0_106 = arith.constant 0 : index
    %c0_107 = arith.constant 0 : index
    %328 = vector.load %arg13[%c1_105, %c0_106, %c0_107] : memref<2x1x64xf32, #tpu.memory_space<vmem>>, vector<1x1x64xf32>
    %329 = vector.shape_cast %328 : vector<1x1x64xf32> to vector<1x64xf32>
    %c1_108 = arith.constant 1 : index
    %c0_109 = arith.constant 0 : index
    %c0_110 = arith.constant 0 : index
    %330 = vector.load %arg14[%c1_108, %c0_109, %c0_110] : memref<2x1x64xf32, #tpu.memory_space<vmem>>, vector<1x1x64xf32>
    %331 = vector.shape_cast %330 : vector<1x1x64xf32> to vector<1x64xf32>
    %cst_111 = arith.constant dense<0.000000e+00> : vector<32xf32>
    %332 = vector.multi_reduction <add>, %327, %cst_111 [1] : vector<32x64xf32> to vector<32xf32>
    %333 = vector.shape_cast %332 : vector<32xf32> to vector<32x1xf32>
    %cst_112 = arith.constant 6.400000e+01 : f32
    %334 = vector.broadcast %cst_112 : f32 to vector<32x1xf32>
    %335 = arith.divf %333, %334 : vector<32x1xf32>
    %336 = vector.broadcast %335 : vector<32x1xf32> to vector<32x64xf32>
    %337 = arith.subf %327, %336 : vector<32x64xf32>
    %338 = arith.mulf %337, %337 : vector<32x64xf32>
    %cst_113 = arith.constant dense<0.000000e+00> : vector<32xf32>
    %339 = vector.multi_reduction <add>, %338, %cst_113 [1] : vector<32x64xf32> to vector<32xf32>
    %340 = vector.shape_cast %339 : vector<32xf32> to vector<32x1xf32>
    %cst_114 = arith.constant 6.400000e+01 : f32
    %341 = vector.broadcast %cst_114 : f32 to vector<32x1xf32>
    %342 = arith.divf %340, %341 : vector<32x1xf32>
    %cst_115 = arith.constant 9.99999974E-6 : f32
    %343 = vector.broadcast %cst_115 : f32 to vector<32x1xf32>
    %344 = arith.addf %342, %343 : vector<32x1xf32>
    %345 = math.rsqrt %344 : vector<32x1xf32>
    %346 = vector.broadcast %345 : vector<32x1xf32> to vector<32x64xf32>
    %347 = arith.mulf %337, %346 : vector<32x64xf32>
    %348 = vector.broadcast %329 : vector<1x64xf32> to vector<32x64xf32>
    %349 = arith.mulf %347, %348 : vector<32x64xf32>
    %350 = vector.broadcast %331 : vector<1x64xf32> to vector<32x64xf32>
    %351 = arith.addf %349, %350 : vector<32x64xf32>
    %352 = vector.extract_strided_slice %351 {offsets = [0, 0], sizes = [16, 64], strides = [1, 1]} : vector<32x64xf32> to vector<16x64xf32>
    %cst_116 = arith.constant dense<0.000000e+00> : vector<64xf32>
    %353 = vector.multi_reduction <add>, %352, %cst_116 [0] : vector<16x64xf32> to vector<64xf32>
    %354 = vector.shape_cast %353 : vector<64xf32> to vector<1x64xf32>
    %355 = vector.extract_strided_slice %351 {offsets = [16, 0], sizes = [16, 64], strides = [1, 1]} : vector<32x64xf32> to vector<16x64xf32>
    %cst_117 = arith.constant dense<0.000000e+00> : vector<64xf32>
    %356 = vector.multi_reduction <add>, %355, %cst_117 [0] : vector<16x64xf32> to vector<64xf32>
    %357 = vector.shape_cast %356 : vector<64xf32> to vector<1x64xf32>
    %358 = tpu.concatenate %354, %357 in 0 : vector<1x64xf32>, vector<1x64xf32> -> vector<2x64xf32>
    %cst_118 = arith.constant 6.250000e-02 : f32
    %359 = vector.broadcast %cst_118 : f32 to vector<2x64xf32>
    %360 = arith.mulf %358, %359 : vector<2x64xf32>
    %c0_119 = arith.constant 0 : index
    %c0_120 = arith.constant 0 : index
    %361 = vector.load %arg15[%c0_119, %c0_120] : memref<64x10xf32, #tpu.memory_space<vmem>>, vector<64x10xf32>
    %cst_121 = arith.constant dense<0.000000e+00> : vector<2x10xf32>
    %362 = tpu.matmul %360, %361, %cst_121 {dimension_numbers = #tpu.dot_dimension_numbers<[1], [0], [0], [1], [0, 0, 1, 1], [], []>} : vector<2x64xf32>, vector<64x10xf32>, vector<2x10xf32> -> vector<2x10xf32>
    %c0_122 = arith.constant 0 : index
    %c0_123 = arith.constant 0 : index
    %363 = vector.load %arg16[%c0_122, %c0_123] : memref<1x10xf32, #tpu.memory_space<vmem>>, vector<1x10xf32>
    %364 = vector.broadcast %363 : vector<1x10xf32> to vector<2x10xf32>
    %365 = arith.addf %362, %364 : vector<2x10xf32>
    %c0_124 = arith.constant 0 : index
    %c0_125 = arith.constant 0 : index
    %366 = vector.load %arg17[%c0_124, %c0_125] : memref<2x10xf32, #tpu.memory_space<vmem>>, vector<2x10xf32>
    tpu.vector_store %arg17[%c0_124, %c0_125], %365 {strides = array<i32>} : memref<2x10xf32, #tpu.memory_space<vmem>>, vector<2x10xf32>,
    return
  }
}

</mosaic_0001>

<bundles_post_ra>
// kernel: transformer_classifier.1
= control target key start
LH: loop header
LB: loop body
LE: loop exit
PB: predicated region body
PF: predicated region fallthrough
CT: control target
= control target key end

     0   :  { %s7910_s0 = inlined_call_operand.vmem [shape: f32[32,3], index: 0, kind: input, shape index: {}]   ;;  %s7911_s1 = inlined_call_operand.vmem [shape: f32[3,64], index: 1, kind: input, shape index: {}]   ;;  %s7912_s2 = inlined_call_operand.vmem [shape: f32[1,64], index: 2, kind: input, shape index: {}]   ;;  %s7913_s3 = inlined_call_operand.vmem [shape: f32[2,64,192], index: 3, kind: input, shape index: {}]   ;;  %s7914_s4 = inlined_call_operand.vmem [shape: f32[2,1,192], index: 4, kind: input, shape index: {}]   ;;  %s7915_s5 = inlined_call_operand.vmem [shape: f32[2,64,64], index: 5, kind: input, shape index: {}]   ;;  %s7916_s6 = inlined_call_operand.vmem [shape: f32[2,1,64], index: 6, kind: input, shape index: {}]   ;;  %s7917_s7 = inlined_call_operand.vmem [shape: f32[2,1,64], index: 7, kind: input, shape index: {}]   ;;  %s7918_s8 = inlined_call_operand.vmem [shape: f32[2,1,64], index: 8, kind: input, shape index: {}]   ;;  %s7919_s9 = inlined_call_operand.vmem [shape: f32[2,64,256], index: 9, kind: input, shape index: {}]   ;;  %s7920_s10 = inlined_call_operand.vmem [shape: f32[2,1,256], index: 10, kind: input, shape index: {}]   ;;  %s7921_s11 = inlined_call_operand.vmem [shape: f32[2,256,64], index: 11, kind: input, shape index: {}]   ;;  %s7922_s12 = inlined_call_operand.vmem [shape: f32[2,1,64], index: 12, kind: input, shape index: {}]   ;;  %s7923_s13 = inlined_call_operand.vmem [shape: f32[2,1,64], index: 13, kind: input, shape index: {}]   ;;  %s7924_s14 = inlined_call_operand.vmem [shape: f32[2,1,64], index: 14, kind: input, shape index: {}]   ;;  %s7925_s15 = inlined_call_operand.vmem [shape: f32[64,10], index: 15, kind: input, shape index: {}]   ;;  %s7926_s16 = inlined_call_operand.vmem [shape: f32[1,10], index: 16, kind: input, shape index: {}]   ;;  %s7927_s17 = inlined_call_operand.hbm [shape: f32[2,10], index: 17, kind: output, shape index: {}]  }
   0x1   :  { %7933 = sst [smem:[#allocation5_spill]] %s7910_s0 }
   0x2   :  { %7934 = sst [smem:[#allocation6_spill]] %s7911_s1 }
   0x3   :  { %s7935_s26 = sld [smem:[#allocation5_spill]]  ;;  %v6377_v2 = vmov 0   ;;  %v159_v3 = vld [vmem:[%s7913_s3 + $0x8] sm:$0xff]  ;;  %v161_v4 = vld [vmem:[%s7913_s3 + $0x18] sm:$0xff]  ;;  %v158_v6 = vld [vmem:[%s7913_s3] sm:$0xff]  ;;  %v6378_v17 = vmov 2  }
   0x4   :  { %6043 = vset.pattern.permute.xlu1 %v6377_v2  ;;  %6041 = vset.pattern.permute.xlu0 %v6377_v2  ;;  %v5695_v5 = vpack.c.bf16 %v161_v4, %v159_v3  ;;  %v160_v7 = vld [vmem:[%s7913_s3 + $0x10] sm:$0xff]  ;;  %v163_v8 = vld [vmem:[%s7913_s3 + $0x28] sm:$0xff]  ;;  %v165_v10 = vld [vmem:[%s7913_s3 + $0x38] sm:$0xff]  ;;  %v6379_v18 = vmov 1  }
   0x5   :  { %v5697_v9 = vpack.c.bf16 %v160_v7, %v158_v6  ;;  %v5699_v11 = vpack.c.bf16 %v165_v10, %v163_v8  ;;  %v162_v12 = vld [vmem:[%s7913_s3 + $0x20] sm:$0xff]  ;;  %v164_v13 = vld [vmem:[%s7913_s3 + $0x30] sm:$0xff]  ;;  %v167_v14 = vld [vmem:[%s7913_s3 + $0x48] sm:$0xff] }
   0x6   :  { %5696 = vmatprep.subr.bf16.mxu0 %v5695_v5  ;;  %v5701_v15 = vpack.c.bf16 %v164_v13, %v162_v12  ;;  %v169_v16 = vld [vmem:[%s7913_s3 + $0x58] sm:$0xff]  ;;  %v166_v20 = vld [vmem:[%s7913_s3 + $0x40] sm:$0xff]  ;;  %v168_v21 = vld [vmem:[%s7913_s3 + $0x50] sm:$0xff] }
   0x7   :  { %5698 = vmatpush1.bf16.msra.mxu0 %v5697_v9  ;;  %v5703_v19 = vpack.c.bf16 %v169_v16, %v167_v14 }
   0x9   :  { %v58_v0 = vld [vmem:[%s7935_s26 + $0x8] sm:$0xff]  ;;  %v57_v1 = vld [vmem:[%s7935_s26] sm:$0xff] }
   0xa   :  { %77 = vperm.xlu1 %6043, %v58_v0   ;;  %72 = vperm.xlu0 %6041, %v57_v1  }
   0xe   :  { %6044 = vset.pattern.permute.xlu1 %v6378_v17  ;;  %6042 = vset.pattern.permute.xlu0 %v6379_v18 }
   0xf   :  { %22 = vsyncpa [#allocation3], 0  ;;  %131 = vperm.xlu1 %6044, %v57_v1   ;;  %103 = vperm.xlu0 %6042, %v57_v1   ;;  %v171_v22 = vld [vmem:[%s7913_s3 + $0x68] sm:$0xff]  ;;  %v173_v23 = vld [vmem:[%s7913_s3 + $0x78] sm:$0xff]  ;;  %v5705_v24 = vpack.c.bf16 %v168_v21, %v166_v20  ;;  %v6380_v28 = vmov 0.0   ;;  %v90_v32 = vlaneseq  ;;  %s7936_s23 = sld [smem:[#allocation6_spill]] }
  0x10   :  { %5700 = vmatprep.subr.bf16.mxu0 %v5699_v11  ;;  %v5707_v25 = vpack.c.bf16 %v173_v23, %v171_v22  ;;  %v170_v26 = vld [vmem:[%s7913_s3 + $0x60] sm:$0xff]  ;;  %v172_v27 = vld [vmem:[%s7913_s3 + $0x70] sm:$0xff]  ;;  %263 = vmatprep.mubr.f32.mxu0 %v6380_v28  ;;  %v60_v30 = vld [vmem:[%s7935_s26 + $0x18] sm:$0xff]  ;;  %vm186_vm0 = vcmask 523264   ;;  %vm360_vm1 = vcmask 130048   ;;  %s6381_s28 = smov 96  }
  0x11   :  { %5702 = vmatpush1.bf16.msra.mxu0 %v5701_v15  ;;  %v59_v29 = vld [vmem:[%s7935_s26 + $0x10] sm:$0xff]  ;;  %v5709_v31 = vpack.c.bf16 %v172_v27, %v170_v26  ;;  %v91_v33 = vshrl.u32 %v90_v32, 7  ;;  %v4944_v43 = vld [vmem:[%s7912_s2] ss:$0 sm:$0xff]  ;;  %s6382_s29 = smov 112   ;;  %s6383_s0 = smov 80   ;;  %vm6638_vm2 = vmpackc.low %vm360_vm1, %vm360_vm1 }
  0x12   :  { %5704 = vmatprep.subr.bf16.mxu0 %v5703_v19  ;;  %v174_v14 = vld [vmem:[%s7914_s4] sm:$0x3]  ;;  %s6384_s30 = smov 64   ;;  %s6385_s21 = smov 16   ;;  %vm1919_vm3 = vcmask 261120   ;;  %vm1922_vm4 = vcmask 392192  }
  0x13   :  { %6045 = vset.pattern.permute.xlu1 %v6379_v18  ;;  %6046 = vset.pattern.permute.xlu0 %v6378_v17  ;;  %v6542_v34 = vsub.s32 0, %v91_v33  ;;  %v6547_v36 = vsub.s32 1, %v91_v33  ;;  %v148_v40 = vsub.s32 2, %v91_v33  ;;  %s7931_s26 = smov 32   ;;  %s7929_s22 = smov 48   ;;  %vm6389_vm5 = vmmov 0  }
  0x14   :  { %107 = vperm.xlu1 %6045, %v58_v0   ;;  %135 = vperm.xlu0 %6046, %v58_v0   ;;  %vm4837_vm6 = vcmask 1040384   ;;  %vm4928_vm7 = vcmask 74752  }
  0x15   :  { %5706 = vmatpush1.bf16.msra.mxu0 %v5705_v24  ;;  %v61_v35 = vld [vmem:[%s7936_s23] sm:$0x7]  ;;  %v179_v15 = vrot.slane %v174_v14, %v6542_v34  ;;  %v183_v19 = vrot.slane %v174_v14, %v6547_v36 }
  0x16   :  { %5708 = vmatprep.subr.bf16.mxu0 %v5707_v25  ;;  %v93_v37 = vrot.slane %v61_v35, %v6542_v34  ;;  %v121_v42 = vrot.slane %v61_v35, %v6547_v36  ;;  %v149_v45 = vrot.slane %v61_v35, %v148_v40 }
  0x18   :  { %6047 = vset.pattern.permute.xlu1 %v6377_v2  ;;  %6049 = vset.pattern.permute.xlu0 %v6377_v2 }
  0x19   :  { %82 = vperm.xlu1 %6047, %v59_v29   ;;  %87 = vperm.xlu0 %6049, %v60_v30  }
  0x1a   :  { %5710 = vmatpush1.bf16.msra.mxu0 %v5709_v31 }
  0x1d   :  { %6048 = vset.pattern.permute.xlu1 %v6379_v18  ;;  %6052 = vset.pattern.permute.xlu0 %v6378_v17 }
  0x1e   :  { %111 = vperm.xlu1 %6048, %v59_v29   ;;  %143 = vperm.xlu0 %6052, %v60_v30  }
  0x22   :  { %6050 = vset.pattern.permute.xlu1 %v6378_v17 }
  0x23   :  { %139 = vperm.xlu1 %6050, %v59_v29  }
  0x27   :  { %6051 = vset.pattern.permute.xlu1 %v6379_v18 }
  0x28   :  { %115 = vperm.xlu1 %6051, %v60_v30  }
  0x89   :  { %v78_v38 = vpop.permute.xlu1 %77  ;;  %v73_v39 = vpop.permute.xlu0 %72 }
  0x8a   :  { %v94_v41 = vmul.f32 %v93_v37, %v73_v39  ;;  %v95_v49 = vmul.f32 %v93_v37, %v78_v38 }
  0x8c   :  { %v98_v44 = vadd.f32 %v4944_v43, %v94_v41  ;;  %v99_v55 = vadd.f32 %v4944_v43, %v95_v49 }
  0x8e   :  { %v132_v46 = vpop.permute.xlu1 %131  ;;  %v104_v47 = vpop.permute.xlu0 %103 }
  0x8f   :  { %v122_v48 = vmul.f32 %v121_v42, %v104_v47  ;;  %v150_v50 = vmul.f32 %v149_v45, %v132_v46 }
  0x91   :  { %v126_v51 = vadd.f32 %v122_v48, %v98_v44 }
  0x93   :  { %v6554_v52 = vadd.f32 %v150_v50, %v126_v51  ;;  %v108_v53 = vpop.permute.xlu1 %107  ;;  %v136_v54 = vpop.permute.xlu0 %135 }
  0x94   :  { %v123_v56 = vmul.f32 %v121_v42, %v108_v53  ;;  %v151_v57 = vmul.f32 %v149_v45, %v136_v54 }
  0x95   :  { %4945 = vmatmul.mubr.msk.f32.vlgmr.msra.gmra.mrb[0].mxu0 %vm186_vm0, %v6554_v52 }
  0x96   :  { %v127_v58 = vadd.f32 %v123_v56, %v99_v55  ;;  %269 = vmatprep.mubr.f32.mxu0 %v6380_v28 }
  0x98   :  { %v6559_v59 = vadd.f32 %v151_v57, %v127_v58  ;;  %v83_v60 = vpop.permute.xlu1 %82  ;;  %v88_v0 = vpop.permute.xlu0 %87 }
  0x99   :  { %v96_v61 = vmul.f32 %v93_v37, %v83_v60  ;;  %v97_v3 = vmul.f32 %v93_v37, %v88_v0 }
  0x9a   :  { %4946 = vmatmul.mubr.msk.f32.gmra.mrb[2].mxu0 %vm186_vm0, %v6559_v59 }
  0x9b   :  { %275 = vmatprep.mubr.f32.mxu0 %v6380_v28  ;;  %v100_v1 = vadd.f32 %v4944_v43, %v96_v61  ;;  %v101_v8 = vadd.f32 %v4944_v43, %v97_v3 }
  0x9d   :  { %v112_v62 = vpop.permute.xlu1 %111  ;;  %v144_v7 = vpop.permute.xlu0 %143 }
  0x9e   :  { %v124_v63 = vmul.f32 %v121_v42, %v112_v62  ;;  %v153_v11 = vmul.f32 %v149_v45, %v144_v7 }
  0xa0   :  { %v128_v4 = vadd.f32 %v124_v63, %v100_v1 }
  0xa2   :  { %v140_v2 = vpop.permute.xlu1 %139 }
  0xa3   :  { %v152_v5 = vmul.f32 %v149_v45, %v140_v2 }
  0xa5   :  { %v6564_v6 = vadd.f32 %v152_v5, %v128_v4 }
  0xa7   :  { %v116_v9 = vpop.permute.xlu1 %115  ;;  %4947 = vmatmul.mubr.msk.f32.gmra.mrb[4].mxu0 %vm186_vm0, %v6564_v6 }
  0xa8   :  { %v125_v10 = vmul.f32 %v121_v42, %v116_v9  ;;  %281 = vmatprep.mubr.f32.mxu0 %v6380_v28 }
  0xaa   :  { %v129_v12 = vadd.f32 %v125_v10, %v101_v8 }
  0xac   :  { %v6569_v13 = vadd.f32 %v153_v11, %v129_v12 }
  0xae   :  { %4948 = vmatmul.mubr.msk.f32.gmra.mrb[6].mxu0 %vm186_vm0, %v6569_v13 }
 0x168   :  { %v265_v16 = vpop.f32.mrb[0].mxu0 }
 0x169   :  { %v266_v17 = vadd.f32 %v265_v16, %v179_v15  ;;  %v267_v18 = vpop.f32.mrb[1].mxu0 }
 0x16a   :  { %v268_v23 = vadd.f32 %v267_v18, %v183_v19 }
 0x16b   :  { %294 = vrot.lane.b32.xlu0 %v266_v17, %s6381_s28  ;;  %290 = vrot.lane.b32.xlu1 %v266_v17, %s6382_s29 }
 0x16c   :  { %5412 = vmatprep.mubr.msk.f32.mxu1 %vm360_vm1, %v266_v17 }
 0x16d   :  { %v271_v20 = vpop.f32.mrb[2].mxu0 }
 0x16e   :  { %v6581_v21 = vadd.f32 %v271_v20, %v179_v15  ;;  %v273_v22 = vpop.f32.mrb[3].mxu0 }
 0x16f   :  { %v274_v24 = vadd.f32 %v273_v22, %v183_v19  ;;  %298 = vrot.lane.b32.xlu0 %v266_v17, %s6383_s0 }
 0x170   :  { %292 = vrot.lane.b32.xlu1 %v6581_v21, %s6382_s29  ;;  %v6053_v40 = vpack.i.bf16 %v6581_v21, %v266_v17 }
 0x171   :  { %v6586_v25 = vpack.i.bf16 %v274_v24, %v268_v23  ;;  %v6588_v26 = vpack.c.bf16 %v274_v24, %v268_v23 }
 0x174   :  { %296 = vrot.lane.b32.xlu1 %v6581_v21, %s6381_s28 }
 0x178   :  { %300 = vrot.lane.b32.xlu1 %v6581_v21, %s6383_s0 }
 0x17a   :  { %v277_v27 = vpop.f32.mrb[4].mxu0 }
 0x17b   :  { %v6594_v29 = vadd.f32 %v277_v27, %v179_v15  ;;  %v279_v30 = vpop.f32.mrb[5].mxu0 }
 0x17c   :  { %v280_v31 = vadd.f32 %v279_v30, %v183_v19 }
 0x17d   :  { %304 = vrot.lane.b32.xlu0 %v6594_v29, %s6382_s29 }
 0x181   :  { %308 = vrot.lane.b32.xlu0 %v6594_v29, %s6381_s28  ;;  %v283_v32 = vpop.f32.mrb[6].mxu0 }
 0x182   :  { %v6600_v33 = vadd.f32 %v283_v32, %v179_v15  ;;  %v285_v35 = vpop.f32.mrb[7].mxu0 }
 0x183   :  { %v286_v37 = vadd.f32 %v285_v35, %v183_v19 }
 0x184   :  { %306 = vrot.lane.b32.xlu1 %v6600_v33, %s6382_s29  ;;  %v6073_v50 = vpack.i.bf16 %v6600_v33, %v6594_v29 }
 0x185   :  { %312 = vrot.lane.b32.xlu0 %v6594_v29, %s6383_s0  ;;  %v6606_v38 = vpack.i.bf16 %v286_v37, %v280_v31  ;;  %v6608_v39 = vpack.c.bf16 %v286_v37, %v280_v31 }
 0x188   :  { %310 = vrot.lane.b32.xlu1 %v6600_v33, %s6381_s28 }
 0x189   :  { %6054 = vrot.lane.b32.xlu0 %v6053_v40, %s6384_s30 }
 0x18c   :  { %314 = vrot.lane.b32.xlu1 %v6600_v33, %s6383_s0 }
 0x1dd   :  { %v291_v41 = vpop.permute.xlu1 %290  ;;  %v295_v42 = vpop.permute.xlu0 %294 }
 0x1e1   :  { %v299_v43 = vpop.permute.xlu0 %298 }
 0x1e2   :  { %v293_v44 = vpop.permute.xlu1 %292  ;;  %5433 = vmatprep.mubr.msk.f32.mxu0 %vm360_vm1, %v299_v43 }
 0x1e3   :  { %v6058_v45 = vpack.i.bf16 %v293_v44, %v291_v41 }
 0x1e5   :  { %6059 = vrot.lane.b32.xlu1 %v6058_v45, %s6384_s30 }
 0x1e6   :  { %v297_v46 = vpop.permute.xlu1 %296 }
 0x1e7   :  { %v6063_v47 = vpack.i.bf16 %v297_v46, %v295_v42 }
 0x1e9   :  { %6064 = vrot.lane.b32.xlu0 %v6063_v47, %s6384_s30 }
 0x1ea   :  { %v301_v48 = vpop.permute.xlu1 %300 }
 0x1eb   :  { %v6068_v49 = vpack.i.bf16 %v301_v48, %v299_v43 }
 0x1ed   :  { %6074 = vrot.lane.b32.xlu0 %v6073_v50, %s6384_s30  ;;  %6069 = vrot.lane.b32.xlu1 %v6068_v49, %s6384_s30 }
 0x1ef   :  { %v305_v51 = vpop.permute.xlu0 %304 }
 0x1f3   :  { %v6623_v53 = vpop.permute.xlu0 %308 }
 0x1f6   :  { %v6625_v54 = vpop.permute.xlu1 %306 }
 0x1f7   :  { %v6078_v55 = vpack.i.bf16 %v6625_v54, %v305_v51  ;;  %v6628_v56 = vpop.permute.xlu0 %312 }
 0x1f9   :  { %6079 = vrot.lane.b32.xlu1 %v6078_v55, %s6384_s30 }
 0x1fa   :  { %v6631_v57 = vpop.permute.xlu1 %310 }
 0x1fb   :  { %v6083_v58 = vpack.i.bf16 %v6631_v57, %v6623_v53  ;;  %v6055_v60 = vpop.permute.xlu0 %6054 }
 0x1fc   :  { %v6057_v61 = vunpack.i.h.bf16 %v6055_v60  ;;  %v6056_v62 = vunpack.i.l.bf16 %v6055_v60 }
 0x1fd   :  { %6084 = vrot.lane.b32.xlu0 %v6083_v58, %s6384_s30 }
 0x1fe   :  { %v6642_v0 = vpop.permute.xlu1 %314  ;;  %v5711_v1 = vpack.c.bf16 %v6057_v61, %v6056_v62 }
 0x1ff   :  { %v6088_v2 = vpack.i.bf16 %v6642_v0, %v6628_v56 }
 0x200   :  { %5713 = vmatprep.subr.msk.bf16.mxu1 %vm6638_vm2, %v5711_v1 }
 0x201   :  { %6089 = vrot.lane.b32.xlu1 %v6088_v2, %s6384_s30  ;;  %5716 = vmatpush3.bf16.xpose.msk.msra.mxu1 %vm6638_vm2, %v5711_v1 }
 0x205   :  { %6094 = vrot.lane.b32.xlu1 %v6586_v25, %s6382_s29 }
 0x208   :  { %5413 = vmatmul.mubr.msk.f32.vlgmr.msra.gmra.mrb[0].mxu1 %vm360_vm1, %v6581_v21 }
 0x209   :  { %5419 = vmatprep.mubr.msk.f32.mxu1 %vm360_vm1, %v291_v41 }
 0x257   :  { %v6060_v3 = vpop.permute.xlu1 %6059 }
 0x258   :  { %v6062_v4 = vunpack.i.h.bf16 %v6060_v3  ;;  %v6061_v5 = vunpack.i.l.bf16 %v6060_v3 }
 0x25a   :  { %v5717_v7 = vpack.c.bf16 %v6062_v4, %v6061_v5 }
 0x25b   :  { %v6065_v8 = vpop.permute.xlu0 %6064 }
 0x25c   :  { %v6067_v9 = vunpack.i.h.bf16 %v6065_v8  ;;  %v6066_v10 = vunpack.i.l.bf16 %v6065_v8  ;;  %5719 = vmatprep.subr.msk.bf16.mxu1 %vm6638_vm2, %v5717_v7 }
 0x25d   :  { %5722 = vmatpush3.bf16.xpose.msk.msra.mxu1 %vm6638_vm2, %v5717_v7 }
 0x25e   :  { %v5723_v11 = vpack.c.bf16 %v6067_v9, %v6066_v10 }
 0x25f   :  { %v6070_v12 = vpop.permute.xlu1 %6069  ;;  %v6075_v14 = vpop.permute.xlu0 %6074 }
 0x260   :  { %v6072_v15 = vunpack.i.h.bf16 %v6070_v12  ;;  %v6071_v16 = vunpack.i.l.bf16 %v6070_v12  ;;  %v6077_v17 = vunpack.i.h.bf16 %v6075_v14  ;;  %v6076_v18 = vunpack.i.l.bf16 %v6075_v14  ;;  %5725 = vmatprep.subr.msk.bf16.mxu1 %vm6638_vm2, %v5723_v11 }
 0x262   :  { %v5729_v19 = vpack.c.bf16 %v6072_v15, %v6071_v16  ;;  %v5735_v20 = vpack.c.bf16 %v6077_v17, %v6076_v18 }
 0x264   :  { %5420 = vmatmul.mubr.msk.f32.vlgmr.msra.gmra.mrb[2].mxu1 %vm360_vm1, %v293_v44  ;;  %5731 = vmatprep.subr.msk.bf16.mxu0 %vm6638_vm2, %v5729_v19 }
 0x265   :  { %5728 = vmatpush3.bf16.xpose.msk.msra.mxu1 %vm6638_vm2, %v5723_v11  ;;  %5426 = vmatprep.mubr.msk.f32.mxu1 %vm360_vm1, %v295_v42 }
 0x266   :  { %5734 = vmatpush3.bf16.xpose.msk.msra.mxu0 %vm6638_vm2, %v5729_v19  ;;  %5737 = vmatprep.subr.msk.bf16.mxu1 %vm6638_vm2, %v5735_v20 }
 0x26b   :  { %v6080_v21 = vpop.permute.xlu1 %6079 }
 0x26c   :  { %v6082_v22 = vunpack.i.h.bf16 %v6080_v21  ;;  %v6081_v23 = vunpack.i.l.bf16 %v6080_v21  ;;  %5427 = vmatmul.mubr.msk.f32.vlgmr.msra.gmra.mrb[4].mxu1 %vm360_vm1, %v297_v46 }
 0x26d   :  { %5434 = vmatmul.mubr.msk.f32.vlgmr.msra.gmra.mrb[8].mxu0 %vm360_vm1, %v301_v48  ;;  %5740 = vmatpush3.bf16.xpose.msk.msra.mxu1 %vm6638_vm2, %v5735_v20 }
 0x26e   :  { %v5741_v24 = vpack.c.bf16 %v6082_v22, %v6081_v23  ;;  %5440 = vmatprep.mubr.msk.f32.mxu1 %vm360_vm1, %v6594_v29  ;;  %5447 = vmatprep.mubr.msk.f32.mxu0 %vm360_vm1, %v305_v51 }
 0x26f   :  { %v6085_v27 = vpop.permute.xlu0 %6084 }
 0x270   :  { %v6087_v30 = vunpack.i.h.bf16 %v6085_v27  ;;  %v6086_v31 = vunpack.i.l.bf16 %v6085_v27  ;;  %5743 = vmatprep.subr.msk.bf16.mxu0 %vm6638_vm2, %v5741_v24 }
 0x271   :  { %5746 = vmatpush3.bf16.xpose.msk.msra.mxu0 %vm6638_vm2, %v5741_v24 }
 0x272   :  { %v5747_v32 = vpack.c.bf16 %v6087_v30, %v6086_v31 }
 0x273   :  { %v6090_v35 = vpop.permute.xlu1 %6089 }
 0x274   :  { %v6092_v37 = vunpack.i.h.bf16 %v6090_v35  ;;  %v6091_v40 = vunpack.i.l.bf16 %v6090_v35  ;;  %5441 = vmatmul.mubr.msk.f32.vlgmr.msra.gmra.mrb[6].mxu1 %vm360_vm1, %v6600_v33  ;;  %5749 = vmatprep.subr.msk.bf16.mxu1 %vm6638_vm2, %v5747_v32 }
 0x275   :  { %5752 = vmatpush3.bf16.xpose.msk.msra.mxu1 %vm6638_vm2, %v5747_v32  ;;  %5454 = vmatprep.mubr.msk.f32.mxu1 %vm360_vm1, %v6623_v53 }
 0x276   :  { %v5753_v29 = vpack.c.bf16 %v6092_v37, %v6091_v40  ;;  %5760 = vmatprep.subr.bf16.mxu1 %v6588_v26 }
 0x277   :  { %v6095_v41 = vpop.permute.xlu1 %6094 }
 0x278   :  { %v6097_v42 = vunpack.i.h.bf16 %v6095_v41  ;;  %v6096_v43 = vunpack.i.l.bf16 %v6095_v41  ;;  %5448 = vmatmul.mubr.msk.f32.vlgmr.msra.gmra.mrb[10].mxu0 %vm360_vm1, %v6625_v54  ;;  %5755 = vmatprep.subr.msk.bf16.mxu0 %vm6638_vm2, %v5753_v29 }
 0x279   :  { %5758 = vmatpush3.bf16.xpose.msk.msra.mxu0 %vm6638_vm2, %v5753_v29  ;;  %5461 = vmatprep.mubr.msk.f32.mxu0 %vm360_vm1, %v6628_v56 }
 0x27a   :  { %v6702_v33 = vpack.c.bf16 %v6097_v42, %v6096_v43 }
 0x27c   :  { %5455 = vmatmul.mubr.msk.f32.vlgmr.msra.gmra.mrb[8].mxu1 %vm360_vm1, %v6631_v57 }
 0x27d   :  { %5762 = vmatpush3.bf16.msra.mxu1 %v6588_v26 }
 0x27e   :  { %5764 = vmatprep.subr.bf16.mxu1 %v6702_v33 }
 0x280   :  { %5462 = vmatmul.mubr.msk.f32.vlgmr.msra.gmra.mrb[12].mxu0 %vm360_vm1, %v6642_v0 }
 0x2db   :  { %v5414_v44 = vpop.f32.mrb[0].mxu1 }
 0x2dc   :  { %v6708_v45 = vmul.f32 0.25, %v5414_v44  ;;  %v435_v46 = vpop.f32.mrb[1].mxu1 }
 0x2dd   :  { %v6710_v47 = vmul.f32 0.25, %v435_v46 }
 0x2de   :  { %v1072_v48 = vsel %vm360_vm1, %v6708_v45, -inf }
 0x2df   :  { %1073 = vmax.xlane.f32.xlu1 %v1072_v48  ;;  %v1069_v49 = vsel %vm360_vm1, %v6710_v47, -inf }
 0x2e0   :  { %1070 = vmax.xlane.f32.xlu0 %v1069_v49 }
 0x337   :  { %v5421_v26 = vpop.f32.mrb[2].mxu1 }
 0x338   :  { %v6716_v50 = vmul.f32 0.25, %v5421_v26  ;;  %v522_v51 = vpop.f32.mrb[3].mxu1 }
 0x339   :  { %v6724_v61 = vmul.f32 0.25, %v522_v51 }
 0x33a   :  { %v1078_v53 = vsel %vm360_vm1, %v6716_v50, -inf }
 0x33b   :  { %1079 = vmax.xlane.f32.xlu0 %v1078_v53  ;;  %v1075_v3 = vsel %vm360_vm1, %v6724_v61, -inf }
 0x33f   :  { %v5428_v54 = vpop.f32.mrb[4].mxu1 }
 0x340   :  { %v5435_v55 = vpop.f32.mrb[8].mxu0  ;;  %v609_v56 = vpop.f32.mrb[5].mxu1  ;;  %v6732_v2 = vmul.f32 0.25, %v5428_v54 }
 0x341   :  { %v6720_v57 = vmul.f32 0.25, %v5435_v55  ;;  %v696_v58 = vpop.f32.mrb[9].mxu0  ;;  %v6728_v0 = vmul.f32 0.25, %v609_v56 }
 0x342   :  { %v6722_v60 = vmul.f32 0.25, %v696_v58  ;;  %v1084_v9 = vsel %vm360_vm1, %v6732_v2, -inf }
 0x343   :  { %v1090_v62 = vsel %vm360_vm1, %v6720_v57, -inf  ;;  %v1081_v5 = vsel %vm360_vm1, %v6728_v0, -inf }
 0x344   :  { %1091 = vmax.xlane.f32.xlu0 %v1090_v62  ;;  %v1087_v1 = vsel %vm360_vm1, %v6722_v60, -inf }
 0x345   :  { %1088 = vmax.xlane.f32.xlu1 %v1087_v1 }
 0x347   :  { %v5442_v4 = vpop.f32.mrb[6].mxu1 }
 0x348   :  { %1076 = vmax.xlane.f32.xlu0 %v1075_v3  ;;  %v783_v7 = vpop.f32.mrb[7].mxu1  ;;  %v6746_v15 = vmul.f32 0.25, %v5442_v4 }
 0x349   :  { %1082 = vmax.xlane.f32.xlu1 %v1081_v5  ;;  %v6748_v16 = vmul.f32 0.25, %v783_v7 }
 0x34a   :  { %v1096_v21 = vsel %vm360_vm1, %v6746_v15, -inf }
 0x34b   :  { %v5449_v8 = vpop.f32.mrb[10].mxu0  ;;  %v1093_v22 = vsel %vm360_vm1, %v6748_v16, -inf }
 0x34c   :  { %v6740_v10 = vmul.f32 0.25, %v5449_v8  ;;  %1085 = vmax.xlane.f32.xlu0 %v1084_v9  ;;  %v870_v11 = vpop.f32.mrb[11].mxu0 }
 0x34d   :  { %v6742_v12 = vmul.f32 0.25, %v870_v11 }
 0x34e   :  { %v1102_v14 = vsel %vm360_vm1, %v6740_v10, -inf }
 0x34f   :  { %v5456_v17 = vpop.f32.mrb[8].mxu1  ;;  %v1099_v18 = vsel %vm360_vm1, %v6742_v12, -inf }
 0x350   :  { %1103 = vmax.xlane.f32.xlu0 %v1102_v14  ;;  %1100 = vmax.xlane.f32.xlu1 %v1099_v18  ;;  %v957_v19 = vpop.f32.mrb[9].mxu1  ;;  %v6762_v31 = vmul.f32 0.25, %v5456_v17 }
 0x351   :  { %v6773_v41 = vmul.f32 0.25, %v957_v19 }
 0x352   :  { %v1108_v35 = vsel %vm360_vm1, %v6762_v31, -inf }
 0x353   :  { %v5463_v20 = vpop.f32.mrb[12].mxu0  ;;  %v1105_v42 = vsel %vm360_vm1, %v6773_v41, -inf }
 0x354   :  { %v6756_v23 = vmul.f32 0.25, %v5463_v20  ;;  %1097 = vmax.xlane.f32.xlu0 %v1096_v21  ;;  %v1044_v24 = vpop.f32.mrb[13].mxu0  ;;  %1094 = vmax.xlane.f32.xlu1 %v1093_v22 }
 0x355   :  { %v6758_v27 = vmul.f32 0.25, %v1044_v24 }
 0x356   :  { %v1114_v30 = vsel %vm360_vm1, %v6756_v23, -inf }
 0x357   :  { %v1111_v32 = vsel %vm360_vm1, %v6758_v27, -inf }
 0x358   :  { %1115 = vmax.xlane.f32.xlu0 %v1114_v30  ;;  %1112 = vmax.xlane.f32.xlu1 %v1111_v32 }
 0x35c   :  { %1109 = vmax.xlane.f32.xlu0 %v1108_v35 }
 0x369   :  { %6104 = vrot.lane.b32.xlu1 %v6586_v25, %s6383_s0 }
 0x36c   :  { %v1074_v37 = vpop.xlane.xlu1 %1073 }
 0x36d   :  { %v1118_v40 = vsub.f32 %v6708_v45, %v1074_v37 }
 0x36f   :  { %v1135_v29 = vmul.f32 1.442695, %v1118_v40 }
 0x371   :  { %6193 = vpow2.f32 %v1135_v29 }
 0x372   :  { %6099 = vrot.lane.b32.xlu0 %v6586_v25, %s6381_s28  ;;  %v1071_v25 = vpop.xlane.xlu0 %1070 }
 0x373   :  { %v1117_v45 = vsub.f32 %v6710_v47, %v1071_v25 }
 0x375   :  { %v1133_v46 = vmul.f32 1.442695, %v1117_v45 }
 0x377   :  { %6195 = vpow2.f32 %v1133_v46 }
 0x37b   :  { %v6777_v43 = vpop.eup %6193 }
 0x37c   :  { %v1168_v44 = vsel %vm360_vm1, %v6777_v43, 0.0 }
 0x381   :  { %v6784_v48 = vpop.eup %6195 }
 0x382   :  { %v1165_v49 = vsel %vm360_vm1, %v6784_v48, 0.0 }
 0x38d   :  { %1106 = vmax.xlane.f32.xlu1 %v1105_v42 }
 0x391   :  { %1169 = vadd.xlane.f32.xlu0 %v1168_v44 }
 0x39e   :  { %6109 = vrot.lane.b32.xlu1 %v6606_v38, %s6382_s29 }
 0x3c2   :  { %1166 = vadd.xlane.f32.xlu1 %v1165_v49 }
 0x3c8   :  { %v1080_v26 = vpop.xlane.xlu0 %1079 }
 0x3c9   :  { %v1120_v51 = vsub.f32 %v6716_v50, %v1080_v26 }
 0x3cb   :  { %v1139_v53 = vmul.f32 1.442695, %v1120_v51 }
 0x3cd   :  { %6197 = vpow2.f32 %v1139_v53 }
 0x3d1   :  { %v1092_v54 = vpop.xlane.xlu0 %1091 }
 0x3d2   :  { %v1124_v55 = vsub.f32 %v6720_v57, %v1092_v54  ;;  %v1089_v56 = vpop.xlane.xlu1 %1088 }
 0x3d3   :  { %v1123_v47 = vsub.f32 %v6722_v60, %v1089_v56 }
 0x3d4   :  { %v1147_v58 = vmul.f32 1.442695, %v1124_v55 }
 0x3d5   :  { %v1077_v62 = vpop.xlane.xlu0 %1076  ;;  %v1145_v5 = vmul.f32 1.442695, %v1123_v47 }
 0x3d6   :  { %6199 = vpow2.f32 %v1147_v58  ;;  %v1119_v1 = vsub.f32 %v6724_v61, %v1077_v62  ;;  %v1083_v3 = vpop.xlane.xlu1 %1082 }
 0x3d7   :  { %v6792_v4 = vpop.eup %6197  ;;  %v1121_v50 = vsub.f32 %v6728_v0, %v1083_v3 }
 0x3d8   :  { %v1137_v7 = vmul.f32 1.442695, %v1119_v1  ;;  %v1174_v8 = vsel %vm360_vm1, %v6792_v4, 0.0 }
 0x3d9   :  { %v1086_v9 = vpop.xlane.xlu0 %1085  ;;  %1175 = vadd.xlane.f32.xlu0 %v1174_v8  ;;  %v1141_v60 = vmul.f32 1.442695, %v1121_v50 }
 0x3da   :  { %6201 = vpow2.f32 %v1137_v7  ;;  %v1122_v57 = vsub.f32 %v6732_v2, %v1086_v9 }
 0x3db   :  { %6203 = vpow2.f32 %v1145_v5 }
 0x3dc   :  { %v1143_v11 = vmul.f32 1.442695, %v1122_v57 }
 0x3dd   :  { %v1104_v14 = vpop.xlane.xlu0 %1103  ;;  %v1101_v61 = vpop.xlane.xlu1 %1100 }
 0x3de   :  { %6205 = vpow2.f32 %v1143_v11  ;;  %v1128_v17 = vsub.f32 %v6740_v10, %v1104_v14  ;;  %v1127_v18 = vsub.f32 %v6742_v12, %v1101_v61 }
 0x3df   :  { %6207 = vpow2.f32 %v1141_v60 }
 0x3e0   :  { %v6800_v19 = vpop.eup %6199  ;;  %v1155_v0 = vmul.f32 1.442695, %v1128_v17  ;;  %v1153_v20 = vmul.f32 1.442695, %v1127_v18 }
 0x3e1   :  { %v1098_v21 = vpop.xlane.xlu0 %1097  ;;  %v1095_v22 = vpop.xlane.xlu1 %1094  ;;  %v1186_v2 = vsel %vm360_vm1, %v6800_v19, 0.0 }
 0x3e2   :  { %6209 = vpow2.f32 %v1155_v0  ;;  %v1126_v24 = vsub.f32 %v6746_v15, %v1098_v21  ;;  %v1125_v30 = vsub.f32 %v6748_v16, %v1095_v22  ;;  %1187 = vadd.xlane.f32.xlu0 %v1186_v2 }
 0x3e3   :  { %6211 = vpow2.f32 %v1153_v20 }
 0x3e4   :  { %v6806_v32 = vpop.eup %6201  ;;  %v1151_v10 = vmul.f32 1.442695, %v1126_v24  ;;  %v1149_v12 = vmul.f32 1.442695, %v1125_v30 }
 0x3e5   :  { %v1116_v35 = vpop.xlane.xlu0 %1115  ;;  %v1113_v37 = vpop.xlane.xlu1 %1112  ;;  %v1171_v40 = vsel %vm360_vm1, %v6806_v32, 0.0 }
 0x3e6   :  { %v6810_v29 = vpop.eup %6203  ;;  %6213 = vpow2.f32 %v1151_v10  ;;  %v1132_v42 = vsub.f32 %v6756_v23, %v1116_v35  ;;  %v1131_v15 = vsub.f32 %v6758_v27, %v1113_v37  ;;  %1172 = vadd.xlane.f32.xlu1 %v1171_v40 }
 0x3e7   :  { %6215 = vpow2.f32 %v1149_v12  ;;  %v1183_v49 = vsel %vm360_vm1, %v6810_v29, 0.0 }
 0x3e8   :  { %v6814_v16 = vpop.eup %6205  ;;  %v1163_v44 = vmul.f32 1.442695, %v1132_v42  ;;  %v1161_v25 = vmul.f32 1.442695, %v1131_v15 }
 0x3e9   :  { %v1110_v45 = vpop.xlane.xlu0 %1109  ;;  %v1180_v46 = vsel %vm360_vm1, %v6814_v16, 0.0  ;;  %v6820_v26 = vpop.eup %6207 }
 0x3ea   :  { %6217 = vpow2.f32 %v1163_v44  ;;  %v1130_v23 = vsub.f32 %v6762_v31, %v1110_v45  ;;  %1181 = vadd.xlane.f32.xlu0 %v1180_v46  ;;  %1184 = vadd.xlane.f32.xlu1 %v1183_v49  ;;  %v1177_v55 = vsel %vm360_vm1, %v6820_v26, 0.0  ;;  %v6105_v14 = vpop.permute.xlu1 %6104 }
 0x3eb   :  { %6219 = vpow2.f32 %v1161_v25  ;;  %v6107_v10 = vunpack.i.h.bf16 %v6105_v14 }
 0x3ec   :  { %v6823_v27 = vpop.eup %6209  ;;  %v1159_v51 = vmul.f32 1.442695, %v1130_v23 }
 0x3ed   :  { %v6100_v53 = vpop.permute.xlu0 %6099  ;;  %v1198_v54 = vsel %vm360_vm1, %v6823_v27, 0.0  ;;  %v6829_v47 = vpop.eup %6211 }
 0x3ee   :  { %6221 = vpow2.f32 %v1159_v51  ;;  %v6102_v56 = vunpack.i.h.bf16 %v6100_v53  ;;  %v6101_v58 = vunpack.i.l.bf16 %v6100_v53  ;;  %1199 = vadd.xlane.f32.xlu0 %v1198_v54  ;;  %1178 = vadd.xlane.f32.xlu1 %v1177_v55  ;;  %v1195_v3 = vsel %vm360_vm1, %v6829_v47, 0.0 }
 0x3f0   :  { %v6831_v31 = vpop.eup %6213  ;;  %v5767_v62 = vpack.c.bf16 %v6102_v56, %v6101_v58 }
 0x3f1   :  { %v1192_v1 = vsel %vm360_vm1, %v6831_v31, 0.0  ;;  %v6837_v5 = vpop.eup %6215 }
 0x3f2   :  { %1193 = vadd.xlane.f32.xlu0 %v1192_v1  ;;  %5768 = vmatprep.subr.bf16.mxu0 %v5767_v62  ;;  %v1189_v8 = vsel %vm360_vm1, %v6837_v5, 0.0 }
 0x3f3   :  { %1196 = vadd.xlane.f32.xlu1 %v1195_v3  ;;  %5770 = vmatpush3.bf16.msra.mxu0 %v5767_v62 }
 0x3f4   :  { %v6839_v7 = vpop.eup %6217  ;;  %5776 = vmatprep.subr.bf16.mxu0 %v6608_v39 }
 0x3f5   :  { %v1210_v50 = vsel %vm360_vm1, %v6839_v7, 0.0  ;;  %v6846_v9 = vpop.eup %6219 }
 0x3f6   :  { %1211 = vadd.xlane.f32.xlu0 %v1210_v50  ;;  %v1207_v11 = vsel %vm360_vm1, %v6846_v9, 0.0 }
 0x3f7   :  { %1190 = vadd.xlane.f32.xlu1 %v1189_v8 }
 0x3f8   :  { %v6848_v57 = vpop.eup %6221 }
 0x3f9   :  { %v1204_v60 = vsel %vm360_vm1, %v6848_v57, 0.0 }
 0x3fa   :  { %1205 = vadd.xlane.f32.xlu0 %v1204_v60 }
 0x3fb   :  { %1208 = vadd.xlane.f32.xlu1 %v1207_v11 }
 0x410   :  { %6114 = vrot.lane.b32.xlu0 %v6606_v38, %s6381_s28 }
 0x41a   :  { %v1107_v61 = vpop.xlane.xlu1 %1106 }
 0x41b   :  { %v1129_v17 = vsub.f32 %v6773_v41, %v1107_v61  ;;  %v6106_v41 = vunpack.i.l.bf16 %v6105_v14 }
 0x41d   :  { %v1157_v18 = vmul.f32 1.442695, %v1129_v17  ;;  %v5771_v37 = vpack.c.bf16 %v6107_v10, %v6106_v41 }
 0x41e   :  { %v6110_v21 = vpop.permute.xlu1 %6109  ;;  %v1170_v22 = vpop.xlane.xlu0 %1169 }
 0x41f   :  { %6223 = vpow2.f32 %v1157_v18  ;;  %v6112_v46 = vunpack.i.h.bf16 %v6110_v21  ;;  %v6111_v49 = vunpack.i.l.bf16 %v6110_v21 }
 0x420   :  { %6225 = vrcp.f32 %v1170_v22 }
 0x421   :  { %v5779_v55 = vpack.c.bf16 %v6112_v46, %v6111_v49  ;;  %v1962_v46 = vld [vmem:[%s7915_s5 + $0x38] sm:$0xff] }
 0x429   :  { %v6857_v0 = vpop.eup %6223 }
 0x42a   :  { %v1201_v20 = vsel %vm360_vm1, %v6857_v0, 0.0  ;;  %v6226_v24 = vpop.eup %6225 }
 0x42b   :  { %1202 = vadd.xlane.f32.xlu1 %v1201_v20  ;;  %v1230_v35 = vmul.f32 %v6226_v24, %v6777_v43 }
 0x43c   :  { %6119 = vrot.lane.b32.xlu1 %v6606_v38, %s6383_s0 }
 0x44f   :  { %v1167_v2 = vpop.xlane.xlu1 %1166 }
 0x450   :  { %6227 = vrcp.f32 %v1167_v2 }
 0x45a   :  { %v6228_v30 = vpop.eup %6227 }
 0x45b   :  { %v1229_v12 = vmul.f32 %v6228_v30, %v6784_v48 }
 0x45d   :  { %5468 = vmatprep.mubr.msk.f32.mxu1 %vm360_vm1, %v1229_v12 }
 0x45e   :  { %5469 = vmatmul.mubr.msk.f32.vlgmr.msra.gmra.mrb[10].mxu1 %vm360_vm1, %v1230_v35 }
 0x45f   :  { %5766 = vmatpush3.bf16.msra.mxu1 %v6702_v33 }
 0x460   :  { %5772 = vmatprep.subr.bf16.mxu1 %v5771_v37 }
 0x466   :  { %v1176_v38 = vpop.xlane.xlu0 %1175 }
 0x467   :  { %6229 = vrcp.f32 %v1176_v38 }
 0x46f   :  { %v1188_v40 = vpop.xlane.xlu0 %1187 }
 0x471   :  { %v6230_v43 = vpop.eup %6229 }
 0x472   :  { %v1232_v53 = vmul.f32 %v6230_v43, %v6792_v4 }
 0x473   :  { %v1173_v42 = vpop.xlane.xlu1 %1172 }
 0x474   :  { %6231 = vrcp.f32 %v1173_v42  ;;  %v1955_v42 = vld [vmem:[%s7915_s5] sm:$0xff] }
 0x475   :  { %6233 = vrcp.f32 %v1188_v40 }
 0x477   :  { %v1182_v15 = vpop.xlane.xlu0 %1181  ;;  %v1185_v44 = vpop.xlane.xlu1 %1184 }
 0x478   :  { %6235 = vrcp.f32 %v1185_v44 }
 0x479   :  { %6237 = vrcp.f32 %v1182_v15 }
 0x47b   :  { %v1200_v48 = vpop.xlane.xlu0 %1199  ;;  %v1179_v25 = vpop.xlane.xlu1 %1178 }
 0x47c   :  { %6239 = vrcp.f32 %v1179_v25  ;;  %v1960_v25 = vld [vmem:[%s7915_s5 + $0x28] sm:$0xff] }
 0x47d   :  { %6241 = vrcp.f32 %v1200_v48  ;;  %v1959_v48 = vld [vmem:[%s7915_s5 + $0x20] sm:$0xff] }
 0x47e   :  { %v6232_v45 = vpop.eup %6231  ;;  %v5799_v43 = vpack.c.bf16 %v1960_v25, %v1959_v48 }
 0x47f   :  { %v1194_v23 = vpop.xlane.xlu0 %1193  ;;  %v1231_v33 = vmul.f32 %v6232_v45, %v6806_v32  ;;  %v6234_v54 = vpop.eup %6233  ;;  %v1961_v45 = vld [vmem:[%s7915_s5 + $0x30] sm:$0xff] }
 0x480   :  { %v1197_v51 = vpop.xlane.xlu1 %1196  ;;  %v1236_v32 = vmul.f32 %v6234_v54, %v6800_v19  ;;  %v5803_v49 = vpack.c.bf16 %v1962_v46, %v1961_v45 }
 0x481   :  { %6243 = vrcp.f32 %v1197_v51  ;;  %5475 = vmatprep.mubr.msk.f32.mxu1 %vm360_vm1, %v1231_v33 }
 0x482   :  { %5476 = vmatmul.mubr.msk.f32.vlgmr.msra.gmra.mrb[12].mxu1 %vm360_vm1, %v1232_v53  ;;  %v6236_v56 = vpop.eup %6235  ;;  %6245 = vrcp.f32 %v1194_v23 }
 0x483   :  { %5774 = vmatpush3.bf16.msra.mxu1 %v5771_v37  ;;  %v1212_v58 = vpop.xlane.xlu0 %1211  ;;  %v1235_v1 = vmul.f32 %v6236_v56, %v6810_v29  ;;  %v6238_v3 = vpop.eup %6237 }
 0x484   :  { %v1191_v62 = vpop.xlane.xlu1 %1190  ;;  %5780 = vmatprep.subr.bf16.mxu1 %v5779_v55  ;;  %v1234_v11 = vmul.f32 %v6238_v3, %v6814_v16 }
 0x485   :  { %6247 = vrcp.f32 %v1191_v62  ;;  %5489 = vmatprep.mubr.msk.f32.mxu1 %vm360_vm1, %v1235_v1 }
 0x486   :  { %v6240_v4 = vpop.eup %6239  ;;  %5490 = vmatmul.mubr.msk.f32.vlgmr.msra.gmra.mrb[14].mxu1 %vm360_vm1, %v1236_v32 }
 0x487   :  { %v1206_v50 = vpop.xlane.xlu0 %1205  ;;  %5782 = vmatpush3.bf16.msra.mxu1 %v5779_v55  ;;  %v1233_v60 = vmul.f32 %v6240_v4, %v6820_v26  ;;  %v6242_v14 = vpop.eup %6241 }
 0x488   :  { %v1209_v8 = vpop.xlane.xlu1 %1208  ;;  %v1240_v20 = vmul.f32 %v6242_v14, %v6823_v27 }
 0x489   :  { %6249 = vrcp.f32 %v1209_v8  ;;  %5482 = vmatprep.mubr.msk.f32.mxu0 %vm360_vm1, %v1233_v60 }
 0x48a   :  { %5483 = vmatmul.mubr.msk.f32.vlgmr.msra.gmra.mrb[14].mxu0 %vm360_vm1, %v1234_v11  ;;  %6251 = vrcp.f32 %v1212_v58 }
 0x48b   :  { %v6244_v29 = vpop.eup %6243  ;;  %v6115_v19 = vpop.permute.xlu0 %6114  ;;  %5778 = vmatpush3.bf16.msra.mxu0 %v6608_v39  ;;  %6253 = vrcp.f32 %v1206_v50 }
 0x48c   :  { %v6117_v61 = vunpack.i.h.bf16 %v6115_v19  ;;  %v6116_v17 = vunpack.i.l.bf16 %v6115_v19  ;;  %v1239_v18 = vmul.f32 %v6244_v29, %v6829_v47  ;;  %v6246_v21 = vpop.eup %6245 }
 0x48d   :  { %v1238_v2 = vmul.f32 %v6246_v21, %v6831_v31 }
 0x48e   :  { %5503 = vmatprep.mubr.msk.f32.mxu1 %vm360_vm1, %v1239_v18  ;;  %v5783_v26 = vpack.c.bf16 %v6117_v61, %v6116_v17 }
 0x48f   :  { %v6248_v16 = vpop.eup %6247  ;;  %5504 = vmatmul.mubr.msk.f32.vlgmr.msra.gmra.mrb[16].mxu1 %vm360_vm1, %v1240_v20 }
 0x490   :  { %5784 = vmatprep.subr.bf16.mxu0 %v5783_v26  ;;  %v1237_v22 = vmul.f32 %v6248_v16, %v6837_v5 }
 0x492   :  { %5496 = vmatprep.mubr.msk.f32.mxu0 %vm360_vm1, %v1237_v22 }
 0x493   :  { %v6250_v39 = vpop.eup %6249  ;;  %5497 = vmatmul.mubr.msk.f32.vlgmr.msra.gmra.mrb[16].mxu0 %vm360_vm1, %v1238_v2 }
 0x494   :  { %5786 = vmatpush3.bf16.msra.mxu0 %v5783_v26  ;;  %v1243_v27 = vmul.f32 %v6250_v39, %v6846_v9  ;;  %v6252_v41 = vpop.eup %6251 }
 0x495   :  { %v6254_v31 = vpop.eup %6253  ;;  %v1244_v35 = vmul.f32 %v6252_v41, %v6839_v7  ;;  %v1956_v7 = vld [vmem:[%s7915_s5 + $0x8] sm:$0xff] }
 0x496   :  { %5517 = vmatprep.mubr.msk.f32.mxu1 %vm360_vm1, %v1243_v27  ;;  %v1242_v9 = vmul.f32 %v6254_v31, %v6848_v57  ;;  %v5791_v15 = vpack.c.bf16 %v1956_v7, %v1955_v42  ;;  %v1957_v57 = vld [vmem:[%s7915_s5 + $0x10] sm:$0xff] }
 0x4b8   :  { %v1203_v47 = vpop.xlane.xlu1 %1202 }
 0x4b9   :  { %6255 = vrcp.f32 %v1203_v47 }
 0x4bc   :  { %v6120_v24 = vpop.permute.xlu1 %6119 }
 0x4bd   :  { %v6122_v30 = vunpack.i.h.bf16 %v6120_v24  ;;  %v6121_v10 = vunpack.i.l.bf16 %v6120_v24 }
 0x4bf   :  { %v5787_v5 = vpack.c.bf16 %v6122_v30, %v6121_v10 }
 0x4c1   :  { %5788 = vmatprep.subr.bf16.mxu1 %v5787_v5 }
 0x4c2   :  { %5790 = vmatpush3.bf16.msra.mxu1 %v5787_v5 }
 0x4c3   :  { %v6256_v12 = vpop.eup %6255  ;;  %5792 = vmatprep.subr.bf16.mxu1 %v5791_v15 }
 0x4c4   :  { %v1241_v37 = vmul.f32 %v6256_v12, %v6857_v0  ;;  %v1958_v0 = vld [vmem:[%s7915_s5 + $0x18] sm:$0xff]  ;;  %v4997_v12 = vld [vmem:[%s7916_s6] ss:$0 sm:$0xff] }
 0x4c5   :  { %5518 = vmatmul.mubr.msk.f32.vlgmr.msra.gmra.mrb[18].mxu1 %vm360_vm1, %v1244_v35  ;;  %v5795_v44 = vpack.c.bf16 %v1958_v0, %v1957_v57 }
 0x4c6   :  { %5510 = vmatprep.mubr.msk.f32.mxu0 %vm360_vm1, %v1241_v37  ;;  %5794 = vmatpush3.bf16.msra.mxu1 %v5791_v15 }
 0x4c7   :  { %5511 = vmatmul.mubr.msk.f32.vlgmr.msra.gmra.mrb[18].mxu0 %vm360_vm1, %v1242_v9  ;;  %5796 = vmatprep.subr.bf16.mxu1 %v5795_v44 }
 0x4ca   :  { %5798 = vmatpush3.bf16.msra.mxu1 %v5795_v44 }
 0x4cb   :  { %5800 = vmatprep.subr.bf16.mxu1 %v5799_v43 }
 0x4ce   :  { %5802 = vmatpush3.bf16.msra.mxu1 %v5799_v43 }
 0x4cf   :  { %5804 = vmatprep.subr.bf16.mxu1 %v5803_v49 }
 0x4d2   :  { %5806 = vmatpush3.bf16.msra.mxu1 %v5803_v49 }
 0x531   :  { %v5470_v38 = vpop.f32.mrb[10].mxu1 }
 0x532   :  { %v1317_v40 = vpop.f32.mrb[11].mxu1 }
 0x555   :  { %v5477_v23 = vpop.f32.mrb[12].mxu1 }
 0x556   :  { %1897 = vrot.lane.b32.xlu1 %v5477_v23, %s6385_s21  ;;  %v1398_v33 = vpop.f32.mrb[13].mxu1 }
 0x557   :  { %1895 = vrot.lane.b32.xlu0 %v1398_v33, %s6385_s21 }
 0x559   :  { %v5491_v51 = vpop.f32.mrb[14].mxu1 }
 0x55a   :  { %v1560_v53 = vpop.f32.mrb[15].mxu1 }
 0x55d   :  { %v5484_v54 = vpop.f32.mrb[14].mxu0 }
 0x55e   :  { %1905 = vrot.lane.b32.xlu1 %v5484_v54, %s7931_s26  ;;  %v1479_v55 = vpop.f32.mrb[15].mxu0 }
 0x55f   :  { %1903 = vrot.lane.b32.xlu0 %v1479_v55, %s7931_s26  ;;  %v2147_v55 = vld [vmem:[%s7919_s9 + $0x8] sm:$0xff] }
 0x562   :  { %v5505_v56 = vpop.f32.mrb[16].mxu1  ;;  %1913 = vrot.lane.b32.xlu1 %v5491_v51, %s7929_s22 }
 0x563   :  { %v1722_v58 = vpop.f32.mrb[17].mxu1  ;;  %1911 = vrot.lane.b32.xlu0 %v1560_v53, %s7929_s22 }
 0x566   :  { %v5498_v62 = vpop.f32.mrb[16].mxu0  ;;  %1929 = vrot.lane.b32.xlu1 %v5505_v56, %s6385_s21  ;;  %v2149_v56 = vld [vmem:[%s7919_s9 + $0x18] sm:$0xff] }
 0x567   :  { %v1641_v1 = vpop.f32.mrb[17].mxu0  ;;  %1927 = vrot.lane.b32.xlu0 %v1722_v58, %s6385_s21  ;;  %v2146_v58 = vld [vmem:[%s7919_s9] sm:$0xff] }
 0x598   :  { %v5519_v32 = vpop.f32.mrb[18].mxu1 }
 0x599   :  { %v1884_v3 = vpop.f32.mrb[19].mxu1 }
 0x59a   :  { %v5512_v4 = vpop.f32.mrb[18].mxu0 }
 0x59b   :  { %v1803_v50 = vpop.f32.mrb[19].mxu0  ;;  %1937 = vrot.lane.b32.xlu1 %v5512_v4, %s7931_s26  ;;  %v2153_v4 = vld [vmem:[%s7919_s9 + $0x38] sm:$0xff] }
 0x59c   :  { %1935 = vrot.lane.b32.xlu0 %v1803_v50, %s7931_s26  ;;  %s7939_s26 = smov 32  }
 0x59f   :  { %1945 = vrot.lane.b32.xlu1 %v5519_v32, %s7929_s22 }
 0x5a0   :  { %1943 = vrot.lane.b32.xlu0 %v1884_v3, %s7929_s22  ;;  %v2151_v3 = vld [vmem:[%s7919_s9 + $0x28] sm:$0xff] }
 0x5a1   :  { %v5811_v50 = vpack.c.bf16 %v2153_v4, %v2151_v3  ;;  %v2310_v3 = vld [vmem:[%s7921_s11 + $0xd8] sm:$0xff] }
 0x5c8   :  { %v1898_v8 = vpop.permute.xlu1 %1897 }
 0x5c9   :  { %v1896_v60 = vpop.permute.xlu0 %1895  ;;  %v1918_v61 = vsel %vm360_vm1, %v5470_v38, %v1898_v8  ;;  %v2150_v8 = vld [vmem:[%s7919_s9 + $0x20] sm:$0xff] }
 0x5ca   :  { %v1917_v29 = vsel %vm360_vm1, %v1317_v40, %v1896_v60  ;;  %v2152_v60 = vld [vmem:[%s7919_s9 + $0x30] sm:$0xff] }
 0x5d0   :  { %v1906_v11 = vpop.permute.xlu1 %1905 }
 0x5d1   :  { %v1904_v14 = vpop.permute.xlu0 %1903  ;;  %v1921_v20 = vsel %vm1919_vm3, %v1918_v61, %v1906_v11  ;;  %v5813_v11 = vpack.c.bf16 %v2152_v60, %v2150_v8  ;;  %v2154_v61 = vld [vmem:[%s7919_s9 + $0x40] sm:$0xff]  ;;  %v2293_v8 = vld [vmem:[%s7921_s11 + $0x50] sm:$0xff]  ;;  %v2294_v60 = vld [vmem:[%s7921_s11 + $0x58] sm:$0xff] }
 0x5d2   :  { %v1920_v17 = vsel %vm1919_vm3, %v1917_v29, %v1904_v14  ;;  %v2155_v14 = vld [vmem:[%s7919_s9 + $0x48] sm:$0xff]  ;;  %v2157_v29 = vld [vmem:[%s7919_s9 + $0x58] sm:$0xff] }
 0x5d4   :  { %v1914_v19 = vpop.permute.xlu1 %1913 }
 0x5d5   :  { %v1912_v18 = vpop.permute.xlu0 %1911  ;;  %v1924_v26 = vsel %vm1922_vm4, %v1921_v20, %v1914_v19  ;;  %v5815_v19 = vpack.c.bf16 %v2157_v29, %v2155_v14  ;;  %v2159_v20 = vld [vmem:[%s7919_s9 + $0x68] sm:$0xff]  ;;  %v5845_v29 = vpack.c.bf16 %v2294_v60, %v2293_v8 }
 0x5d6   :  { %v1923_v21 = vsel %vm1922_vm4, %v1920_v17, %v1912_v18  ;;  %v2156_v17 = vld [vmem:[%s7919_s9 + $0x50] sm:$0xff]  ;;  %v2312_v14 = vld [vmem:[%s7921_s11 + $0xe8] sm:$0xff] }
 0x5d7   :  { %5536 = vmatprep.mubr.msk.f32.mxu1 %vm186_vm0, %v1923_v21  ;;  %v5817_v18 = vpack.c.bf16 %v2156_v17, %v2154_v61  ;;  %v2161_v21 = vld [vmem:[%s7919_s9 + $0x78] sm:$0xff] }
 0x5d8   :  { %5537 = vmatmul.mubr.msk.f32.vlgmr.msra.gmra.mrb[20].mxu1 %vm186_vm0, %v1924_v26  ;;  %v1930_v16 = vpop.permute.xlu1 %1929  ;;  %v5819_v26 = vpack.c.bf16 %v2161_v21, %v2159_v20 }
 0x5d9   :  { %v1928_v22 = vpop.permute.xlu0 %1927  ;;  %v1950_v24 = vsel %vm360_vm1, %v5498_v62, %v1930_v16  ;;  %v2148_v62 = vld [vmem:[%s7919_s9 + $0x10] sm:$0xff]  ;;  %v2158_v16 = vld [vmem:[%s7919_s9 + $0x60] sm:$0xff] }
 0x5da   :  { %v1949_v27 = vsel %vm360_vm1, %v1641_v1, %v1928_v22  ;;  %v5807_v1 = vpack.c.bf16 %v2149_v56, %v2147_v55  ;;  %v5809_v32 = vpack.c.bf16 %v2148_v62, %v2146_v58  ;;  %v2160_v22 = vld [vmem:[%s7919_s9 + $0x70] sm:$0xff]  ;;  %v2308_v55 = vld [vmem:[%s7921_s11 + $0xc8] sm:$0xff]  ;;  %v2291_v62 = vld [vmem:[%s7921_s11 + $0x40] sm:$0xff] }
 0x5dc   :  { %5808 = vmatprep.subr.bf16.mxu1 %v5807_v1  ;;  %v2292_v1 = vld [vmem:[%s7921_s11 + $0x48] sm:$0xff] }
 0x5dd   :  { %5810 = vmatpush1.bf16.msra.mxu1 %v5809_v32  ;;  %v2309_v32 = vld [vmem:[%s7921_s11 + $0xd0] sm:$0xff]  ;;  %v5841_v4 = vpack.c.bf16 %v2292_v1, %v2291_v62 }
 0x5de   :  { %5812 = vmatprep.subr.bf16.mxu1 %v5811_v50  ;;  %v5843_v50 = vpack.c.bf16 %v2310_v3, %v2309_v32 }
 0x5e1   :  { %5814 = vmatpush1.bf16.msra.mxu1 %v5813_v11  ;;  %v2311_v11 = vld [vmem:[%s7921_s11 + $0xe0] sm:$0xff] }
 0x5e2   :  { %5816 = vmatprep.subr.bf16.mxu1 %v5815_v19  ;;  %v5847_v19 = vpack.c.bf16 %v2312_v14, %v2311_v11 }
 0x5e5   :  { %5818 = vmatpush1.bf16.msra.mxu1 %v5817_v18 }
 0x5e6   :  { %5820 = vmatprep.subr.bf16.mxu1 %v5819_v26 }
 0x60d   :  { %v1938_v2 = vpop.permute.xlu1 %1937 }
 0x60e   :  { %v1936_v39 = vpop.permute.xlu0 %1935  ;;  %v1952_v5 = vsel %vm1919_vm3, %v1950_v24, %v1938_v2  ;;  %v5821_v2 = vpack.c.bf16 %v2160_v22, %v2158_v16 }
 0x60f   :  { %v1951_v30 = vsel %vm1919_vm3, %v1949_v27, %v1936_v39 }
 0x610   :  { %5822 = vmatpush1.bf16.msra.mxu1 %v5821_v2  ;;  %v5002_v2 = vld [vmem:[%s7917_s7] ss:$0 sm:$0xff] }
 0x611   :  { %v1946_v47 = vpop.permute.xlu1 %1945 }
 0x612   :  { %v1944_v10 = vpop.permute.xlu0 %1943  ;;  %v1954_v31 = vsel %vm1922_vm4, %v1952_v5, %v1946_v47 }
 0x613   :  { %v1953_v41 = vsel %vm1922_vm4, %v1951_v30, %v1944_v10 }
 0x614   :  { %5539 = vmatprep.mubr.msk.f32.mxu1 %vm186_vm0, %v1953_v41 }
 0x615   :  { %5540 = vmatmul.mubr.msk.f32.gmra.mrb[22].mxu1 %vm186_vm0, %v1954_v31 }
 0x616   :  { %2250 = vmatprep.mubr.f32.mxu1 %v6380_v28 }
 0x6ab   :  { %v5538_v35 = vpop.f32.mrb[20].mxu1 }
 0x6ac   :  { %v2054_v37 = vadd.f32 %v5538_v35, %v4997_v12  ;;  %v2048_v9 = vpop.f32.mrb[21].mxu1  ;;  %v2299_v35 = vld [vmem:[%s7921_s11 + $0x80] sm:$0xff] }
 0x6ad   :  { %v2049_v38 = vadd.f32 %v4997_v12, %v2048_v9  ;;  %v2283_v9 = vld [vmem:[%s7921_s11] sm:$0xff] }
 0x6ae   :  { %v2068_v40 = vadd.f32 %v2054_v37, %v6559_v59  ;;  %v2300_v37 = vld [vmem:[%s7921_s11 + $0x88] sm:$0xff] }
 0x6af   :  { %v2067_v42 = vadd.f32 %v2049_v38, %v6554_v52  ;;  %v5823_v38 = vpack.c.bf16 %v2300_v37, %v2299_v35 }
 0x6b0   :  { %v2076_v7 = vsel %vm186_vm0, %v2068_v40, 0.0 }
 0x6b1   :  { %2077 = vadd.xlane.f32.xlu1 %v2076_v7  ;;  %v2073_v15 = vsel %vm186_vm0, %v2067_v42, 0.0  ;;  %v2302_v7 = vld [vmem:[%s7921_s11 + $0x98] sm:$0xff]  ;;  %5824 = vmatprep.subr.bf16.mxu0 %v5823_v38 }
 0x6b2   :  { %2074 = vadd.xlane.f32.xlu0 %v2073_v15 }
 0x6e8   :  { %v5541_v57 = vpop.f32.mrb[22].mxu1 }
 0x6e9   :  { %v2064_v0 = vadd.f32 %v5541_v57, %v4997_v12  ;;  %v2058_v44 = vpop.f32.mrb[23].mxu1 }
 0x6ea   :  { %v2059_v48 = vadd.f32 %v4997_v12, %v2058_v44  ;;  %v2286_v44 = vld [vmem:[%s7921_s11 + $0x18] sm:$0xff] }
 0x6eb   :  { %v2070_v45 = vadd.f32 %v2064_v0, %v6569_v13  ;;  %v2285_v0 = vld [vmem:[%s7921_s11 + $0x10] sm:$0xff] }
 0x6ec   :  { %v2069_v25 = vadd.f32 %v2059_v48, %v6564_v6  ;;  %v2303_v48 = vld [vmem:[%s7921_s11 + $0xa0] sm:$0xff] }
 0x6ed   :  { %v2082_v59 = vsel %vm186_vm0, %v2070_v45, 0.0 }
 0x6ee   :  { %v2079_v43 = vsel %vm186_vm0, %v2069_v25, 0.0 }
 0x6ef   :  { %2080 = vadd.xlane.f32.xlu0 %v2079_v43  ;;  %v5829_v43 = vpack.c.bf16 %v2286_v44, %v2285_v0 }
 0x6f3   :  { %2083 = vadd.xlane.f32.xlu0 %v2082_v59  ;;  %v2287_v59 = vld [vmem:[%s7921_s11 + $0x20] sm:$0xff] }
 0x73e   :  { %v2078_v52 = vpop.xlane.xlu1 %2077 }
 0x73f   :  { %v2087_v46 = vmul.f32 0.015625, %v2078_v52  ;;  %v2075_v49 = vpop.xlane.xlu0 %2074  ;;  %v2288_v52 = vld [vmem:[%s7921_s11 + $0x28] sm:$0xff] }
 0x740   :  { %v2086_v23 = vmul.f32 0.015625, %v2075_v49  ;;  %v2306_v49 = vld [vmem:[%s7921_s11 + $0xb8] sm:$0xff] }
 0x741   :  { %v6961_v33 = vsub.f32 %v2068_v40, %v2087_v46  ;;  %v2284_v40 = vld [vmem:[%s7921_s11 + $0x8] sm:$0xff]  ;;  %v2305_v46 = vld [vmem:[%s7921_s11 + $0xb0] sm:$0xff] }
 0x742   :  { %v6963_v51 = vsub.f32 %v2067_v42, %v2086_v23  ;;  %v2301_v42 = vld [vmem:[%s7921_s11 + $0x90] sm:$0xff]  ;;  %v5825_v15 = vpack.c.bf16 %v2284_v40, %v2283_v9  ;;  %v5833_v23 = vpack.c.bf16 %v2288_v52, %v2287_v59  ;;  %v2298_v52 = vld [vmem:[%s7921_s11 + $0x78] sm:$0xff] }
 0x743   :  { %v2095_v53 = vmul.f32 %v6961_v33, %v6961_v33  ;;  %v5827_v57 = vpack.c.bf16 %v2302_v7, %v2301_v42  ;;  %v2297_v59 = vld [vmem:[%s7921_s11 + $0x70] sm:$0xff] }
 0x744   :  { %v2094_v6 = vmul.f32 %v6963_v51, %v6963_v51  ;;  %5826 = vmatpush3.bf16.msra.mxu0 %v5825_v15 }
 0x745   :  { %v2101_v13 = vsel %vm186_vm0, %v2095_v53, 0.0  ;;  %5828 = vmatprep.subr.bf16.mxu0 %v5827_v57  ;;  %v5835_v53 = vpack.c.bf16 %v2306_v49, %v2305_v46  ;;  %v5853_v46 = vpack.c.bf16 %v2298_v52, %v2297_v59  ;;  %v2162_v49 = vld [vmem:[%s7920_s10] sm:$0x3] }
 0x746   :  { %2102 = vadd.xlane.f32.xlu0 %v2101_v13  ;;  %v2098_v54 = vsel %vm186_vm0, %v2094_v6, 0.0  ;;  %v2289_v6 = vld [vmem:[%s7921_s11 + $0x30] sm:$0xff]  ;;  %v2290_v13 = vld [vmem:[%s7921_s11 + $0x38] sm:$0xff] }
 0x747   :  { %2099 = vadd.xlane.f32.xlu1 %v2098_v54  ;;  %v2307_v54 = vld [vmem:[%s7921_s11 + $0xc0] sm:$0xff]  ;;  %v5837_v56 = vpack.c.bf16 %v2290_v13, %v2289_v6 }
 0x748   :  { %5830 = vmatpush3.bf16.msra.mxu0 %v5829_v43  ;;  %v5839_v58 = vpack.c.bf16 %v2308_v55, %v2307_v54  ;;  %v2314_v43 = vld [vmem:[%s7921_s11 + $0xf8] sm:$0xff] }
 0x77c   :  { %v2081_v39 = vpop.xlane.xlu0 %2080 }
 0x77d   :  { %v2088_v27 = vmul.f32 0.015625, %v2081_v39 }
 0x77f   :  { %v7019_v47 = vsub.f32 %v2069_v25, %v2088_v27  ;;  %v2304_v25 = vld [vmem:[%s7921_s11 + $0xa8] sm:$0xff] }
 0x780   :  { %v2084_v24 = vpop.xlane.xlu0 %2083 }
 0x781   :  { %v2089_v30 = vmul.f32 0.015625, %v2084_v24  ;;  %v2096_v10 = vmul.f32 %v7019_v47, %v7019_v47  ;;  %v5003_v24 = vld [vmem:[%s7918_s8] ss:$0 sm:$0xff] }
 0x783   :  { %v7023_v5 = vsub.f32 %v2070_v45, %v2089_v30  ;;  %v2104_v41 = vsel %vm186_vm0, %v2096_v10, 0.0  ;;  %v5831_v45 = vpack.c.bf16 %v2304_v25, %v2303_v48  ;;  %v2313_v25 = vld [vmem:[%s7921_s11 + $0xf0] sm:$0xff] }
 0x784   :  { %2105 = vadd.xlane.f32.xlu1 %v2104_v41 }
 0x785   :  { %v2097_v31 = vmul.f32 %v7023_v5, %v7023_v5  ;;  %5832 = vmatprep.subr.bf16.mxu0 %v5831_v45  ;;  %v5851_v45 = vpack.c.bf16 %v2314_v43, %v2313_v25 }
 0x786   :  { %5834 = vmatpush3.bf16.msra.mxu0 %v5833_v23  ;;  %v2167_v23 = vrot.slane %v2162_v49, %v6542_v34 }
 0x787   :  { %v2107_v12 = vsel %vm186_vm0, %v2097_v31, 0.0  ;;  %5836 = vmatprep.subr.bf16.mxu0 %v5835_v53  ;;  %v2171_v53 = vrot.slane %v2162_v49, %v6547_v36 }
 0x788   :  { %2108 = vadd.xlane.f32.xlu0 %v2107_v12 }
 0x78a   :  { %5838 = vmatpush3.bf16.msra.mxu0 %v5837_v56 }
 0x78b   :  { %5840 = vmatprep.subr.bf16.mxu0 %v5839_v58 }
 0x78e   :  { %5842 = vmatpush3.bf16.msra.mxu0 %v5841_v4 }
 0x78f   :  { %5844 = vmatprep.subr.bf16.mxu0 %v5843_v50 }
 0x792   :  { %5846 = vmatpush3.bf16.msra.mxu0 %v5845_v29 }
 0x793   :  { %5848 = vmatprep.subr.bf16.mxu0 %v5847_v19 }
 0x7d3   :  { %v2103_v61 = vpop.xlane.xlu0 %2102 }
 0x7d4   :  { %v2111_v17 = vmul.f32 0.015625, %v2103_v61  ;;  %v2100_v18 = vpop.xlane.xlu1 %2099 }
 0x7d5   :  { %v2110_v20 = vmul.f32 0.015625, %v2100_v18 }
 0x7d6   :  { %v2115_v21 = vadd.f32 1e-05, %v2111_v17 }
 0x7d7   :  { %v2114_v26 = vadd.f32 1e-05, %v2110_v20 }
 0x7d8   :  { %6257 = vrsqrt.f32 %v2115_v21 }
 0x7d9   :  { %6259 = vrsqrt.f32 %v2114_v26 }
 0x7e2   :  { %v6258_v16 = vpop.eup %6257 }
 0x7e3   :  { %v6260_v22 = vpop.eup %6259  ;;  %v2123_v27 = vmul.f32 %v6258_v16, %v6961_v33 }
 0x7e4   :  { %v2122_v39 = vmul.f32 %v6260_v22, %v6963_v51  ;;  %v5008_v22 = vld [vmem:[%s7922_s12] ss:$0 sm:$0xff] }
 0x7e5   :  { %v2133_v41 = vmul.f32 %v5002_v2, %v2123_v27 }
 0x7e6   :  { %v2132_v30 = vmul.f32 %v5002_v2, %v2122_v39 }
 0x7e7   :  { %v7120_v31 = vadd.f32 %v5003_v24, %v2133_v41 }
 0x7e8   :  { %v7115_v10 = vadd.f32 %v5003_v24, %v2132_v30 }
 0x7ea   :  { %5004 = vmatmul.mubr.msk.f32.vlgmr.msra.gmra.mrb[24].mxu1 %vm186_vm0, %v7115_v10 }
 0x7eb   :  { %2256 = vmatprep.mubr.f32.mxu1 %v6380_v28 }
 0x7ee   :  { %5005 = vmatmul.mubr.msk.f32.gmra.mrb[26].mxu1 %vm186_vm0, %v7120_v31 }
 0x7ef   :  { %2262 = vmatprep.mubr.f32.mxu1 %v6380_v28 }
 0x811   :  { %v2106_v33 = vpop.xlane.xlu1 %2105 }
 0x812   :  { %v2112_v51 = vmul.f32 0.015625, %v2106_v33 }
 0x814   :  { %v2116_v12 = vadd.f32 1e-05, %v2112_v51 }
 0x815   :  { %v2109_v35 = vpop.xlane.xlu0 %2108 }
 0x816   :  { %6261 = vrsqrt.f32 %v2116_v12  ;;  %v2113_v37 = vmul.f32 0.015625, %v2109_v35 }
 0x818   :  { %v2117_v9 = vadd.f32 1e-05, %v2113_v37 }
 0x81a   :  { %6263 = vrsqrt.f32 %v2117_v9 }
 0x820   :  { %v6262_v38 = vpop.eup %6261 }
 0x821   :  { %v2124_v40 = vmul.f32 %v6262_v38, %v7019_v47  ;;  %v2295_v47 = vld [vmem:[%s7921_s11 + $0x60] sm:$0xff] }
 0x823   :  { %v2134_v42 = vmul.f32 %v5002_v2, %v2124_v40 }
 0x824   :  { %v6264_v7 = vpop.eup %6263 }
 0x825   :  { %v7126_v15 = vadd.f32 %v5003_v24, %v2134_v42  ;;  %v2125_v57 = vmul.f32 %v6264_v7, %v7023_v5  ;;  %v2296_v5 = vld [vmem:[%s7921_s11 + $0x68] sm:$0xff] }
 0x826   :  { %v5849_v48 = vpack.c.bf16 %v2296_v5, %v2295_v47 }
 0x827   :  { %5006 = vmatmul.mubr.msk.f32.gmra.mrb[28].mxu1 %vm186_vm0, %v7126_v15  ;;  %v2135_v0 = vmul.f32 %v5002_v2, %v2125_v57 }
 0x828   :  { %2268 = vmatprep.mubr.f32.mxu1 %v6380_v28  ;;  %5850 = vmatpush3.bf16.msra.mxu0 %v5849_v48 }
 0x829   :  { %v7132_v44 = vadd.f32 %v5003_v24, %v2135_v0  ;;  %5852 = vmatprep.subr.bf16.mxu0 %v5851_v45 }
 0x82b   :  { %5007 = vmatmul.mubr.msk.f32.gmra.mrb[30].mxu1 %vm186_vm0, %v7132_v44 }
 0x82c   :  { %2591 = vmatprep.mubr.f32.mxu1 %v6380_v28  ;;  %5854 = vmatpush3.bf16.msra.mxu0 %v5853_v46 }
 0x8bd   :  { %v2252_v6 = vpop.f32.mrb[24].mxu1 }
 0x8be   :  { %v2253_v13 = vadd.f32 %v2252_v6, %v2167_v23  ;;  %v2254_v54 = vpop.f32.mrb[25].mxu1  ;;  %v5014_v6 = vld [vmem:[%s7913_s3 + $0x98] sm:$0xff] }
 0x8bf   :  { %v2255_v55 = vadd.f32 %v2254_v54, %v2171_v53  ;;  %v5011_v54 = vld [vmem:[%s7913_s3 + $0x80] sm:$0xff] }
 0x8c0   :  { %v2275_v62 = vmax.f32 %v2253_v13, 0.0 }
 0x8c1   :  { %v2276_v56 = vmax.f32 %v2255_v55, 0.0  ;;  %v2258_v58 = vpop.f32.mrb[26].mxu1  ;;  %v5013_v55 = vld [vmem:[%s7913_s3 + $0x90] sm:$0xff] }
 0x8c2   :  { %v2259_v1 = vadd.f32 %v2258_v58, %v2167_v23  ;;  %v2260_v32 = vpop.f32.mrb[27].mxu1  ;;  %v5016_v58 = vld [vmem:[%s7913_s3 + $0xa8] sm:$0xff] }
 0x8c3   :  { %v2261_v3 = vadd.f32 %v2260_v32, %v2171_v53  ;;  %2386 = vmatprep.mubr.f32.mxu0 %v2276_v56  ;;  %v5857_v56 = vpack.c.bf16 %v5013_v55, %v5011_v54  ;;  %v5015_v32 = vld [vmem:[%s7913_s3 + $0xa0] sm:$0xff] }
 0x8c4   :  { %2387 = vmatmul.mubr.f32.vlgmr.msra.gmra.mrb[20].mxu0 %v2275_v62  ;;  %v2277_v50 = vmax.f32 %v2259_v1, 0.0  ;;  %v5018_v62 = vld [vmem:[%s7913_s3 + $0xb8] sm:$0xff]  ;;  %v5027_v55 = vld [vmem:[%s7914_s4 + $0x2] sm:$0x3]  ;;  %s7940_s4 = smov 48  }
 0x8c5   :  { %v2278_v4 = vmax.f32 %v2261_v3, 0.0  ;;  %v5859_v1 = vpack.c.bf16 %v5018_v62, %v5016_v58  ;;  %v5017_v3 = vld [vmem:[%s7913_s3 + $0xb0] sm:$0xff] }
 0x8c7   :  { %2391 = vmatprep.mubr.f32.mxu0 %v2278_v4  ;;  %v5861_v4 = vpack.c.bf16 %v5017_v3, %v5015_v32  ;;  %v2512_v32 = vrot.slane %v5027_v55, %v6547_v36 }
 0x8c8   :  { %2392 = vmatmul.mubr.f32.gmra.mrb[22].mxu0 %v2277_v50  ;;  %v5020_v50 = vld [vmem:[%s7913_s3 + $0xc8] sm:$0xff] }
 0x8fa   :  { %v2264_v8 = vpop.f32.mrb[28].mxu1 }
 0x8fb   :  { %v2265_v60 = vadd.f32 %v2264_v8, %v2167_v23  ;;  %v2266_v11 = vpop.f32.mrb[29].mxu1  ;;  %v5022_v8 = vld [vmem:[%s7913_s3 + $0xd8] sm:$0xff] }
 0x8fc   :  { %v2267_v14 = vadd.f32 %v2266_v11, %v2171_v53  ;;  %v5019_v11 = vld [vmem:[%s7913_s3 + $0xc0] sm:$0xff] }
 0x8fd   :  { %v2279_v61 = vmax.f32 %v2265_v60, 0.0  ;;  %v5863_v60 = vpack.c.bf16 %v5022_v8, %v5020_v50 }
 0x8fe   :  { %v2280_v29 = vmax.f32 %v2267_v14, 0.0  ;;  %v2270_v19 = vpop.f32.mrb[30].mxu1  ;;  %v5021_v14 = vld [vmem:[%s7913_s3 + $0xd0] sm:$0xff] }
 0x8ff   :  { %v2271_v17 = vadd.f32 %v2270_v19, %v2167_v23  ;;  %v2272_v18 = vpop.f32.mrb[31].mxu1  ;;  %v5024_v19 = vld [vmem:[%s7913_s3 + $0xe8] sm:$0xff] }
 0x900   :  { %v2273_v20 = vadd.f32 %v2272_v18, %v2171_v53  ;;  %2396 = vmatprep.mubr.f32.mxu0 %v2280_v29  ;;  %v5012_v53 = vld [vmem:[%s7913_s3 + $0x88] sm:$0xff]  ;;  %v5865_v29 = vpack.c.bf16 %v5021_v14, %v5019_v11  ;;  %v5023_v18 = vld [vmem:[%s7913_s3 + $0xe0] sm:$0xff] }
 0x901   :  { %2397 = vmatmul.mubr.f32.gmra.mrb[24].mxu0 %v2279_v61  ;;  %v2281_v26 = vmax.f32 %v2271_v17, 0.0  ;;  %v5855_v13 = vpack.c.bf16 %v5014_v6, %v5012_v53  ;;  %v5026_v61 = vld [vmem:[%s7913_s3 + $0xf8] sm:$0xff] }
 0x902   :  { %v2282_v21 = vmax.f32 %v2273_v20, 0.0  ;;  %v5867_v17 = vpack.c.bf16 %v5026_v61, %v5024_v19  ;;  %v5025_v20 = vld [vmem:[%s7913_s3 + $0xf0] sm:$0xff] }
 0x903   :  { %5856 = vmatprep.subr.bf16.mxu1 %v5855_v13 }
 0x904   :  { %2401 = vmatprep.mubr.f32.mxu0 %v2282_v21  ;;  %5858 = vmatpush1.bf16.msra.mxu1 %v5857_v56  ;;  %v5869_v21 = vpack.c.bf16 %v5025_v20, %v5023_v18  ;;  %v2508_v56 = vrot.slane %v5027_v55, %v6542_v34 }
 0x905   :  { %2402 = vmatmul.mubr.f32.gmra.mrb[26].mxu0 %v2281_v26  ;;  %5860 = vmatprep.subr.bf16.mxu1 %v5859_v1 }
 0x908   :  { %5862 = vmatpush1.bf16.msra.mxu1 %v5861_v4 }
 0x909   :  { %5864 = vmatprep.subr.bf16.mxu1 %v5863_v60 }
 0x90c   :  { %5866 = vmatpush1.bf16.msra.mxu1 %v5865_v29 }
 0x90d   :  { %5868 = vmatprep.subr.bf16.mxu1 %v5867_v17 }
 0x910   :  { %5870 = vmatpush1.bf16.msra.mxu1 %v5869_v21 }
 0x997   :  { %v5267_v16 = vpop.f32.mrb[20].mxu0 }
 0x998   :  { %v5268_v2 = vpop.f32.mrb[21].mxu0 }
 0x999   :  { %v5269_v39 = vadd.f32 %v5268_v2, %v5267_v16 }
 0x99b   :  { %v2389_v27 = vadd.f32 %v5269_v39, %v5008_v22  ;;  %v5270_v24 = vpop.f32.mrb[22].mxu0 }
 0x99c   :  { %v5271_v30 = vpop.f32.mrb[23].mxu0 }
 0x99d   :  { %v5272_v41 = vadd.f32 %v5271_v30, %v5270_v24  ;;  %v2407_v33 = vadd.f32 %v2389_v27, %v7115_v10 }
 0x99f   :  { %v2394_v51 = vadd.f32 %v5272_v41, %v5008_v22  ;;  %v2413_v12 = vsel %vm186_vm0, %v2407_v33, 0.0 }
 0x9a0   :  { %2414 = vadd.xlane.f32.xlu1 %v2413_v12 }
 0x9a1   :  { %v2408_v35 = vadd.f32 %v2394_v51, %v7120_v31 }
 0x9a3   :  { %v2416_v37 = vsel %vm186_vm0, %v2408_v35, 0.0 }
 0x9a4   :  { %2417 = vadd.xlane.f32.xlu0 %v2416_v37 }
 0x9d4   :  { %v5273_v9 = vpop.f32.mrb[24].mxu0 }
 0x9d5   :  { %v5274_v38 = vpop.f32.mrb[25].mxu0 }
 0x9d6   :  { %v5275_v40 = vadd.f32 %v5274_v38, %v5273_v9 }
 0x9d8   :  { %v2399_v42 = vadd.f32 %v5275_v40, %v5008_v22  ;;  %v5276_v7 = vpop.f32.mrb[26].mxu0 }
 0x9d9   :  { %v5277_v57 = vpop.f32.mrb[27].mxu0 }
 0x9da   :  { %v5278_v0 = vadd.f32 %v5277_v57, %v5276_v7  ;;  %v2409_v47 = vadd.f32 %v2399_v42, %v7126_v15  ;;  %v5009_v42 = vld [vmem:[%s7923_s13] ss:$0 sm:$0xff] }
 0x9db   :  { %v5010_v57 = vld [vmem:[%s7924_s14] ss:$0 sm:$0xff] }
 0x9dc   :  { %v2404_v5 = vadd.f32 %v5278_v0, %v5008_v22  ;;  %v2419_v10 = vsel %vm186_vm0, %v2409_v47, 0.0 }
 0x9dd   :  { %2420 = vadd.xlane.f32.xlu1 %v2419_v10 }
 0x9de   :  { %v2410_v48 = vadd.f32 %v2404_v5, %v7132_v44 }
 0x9e0   :  { %v2422_v31 = vsel %vm186_vm0, %v2410_v48, 0.0 }
 0x9e1   :  { %2423 = vadd.xlane.f32.xlu0 %v2422_v31 }
 0xa2d   :  { %v2415_v25 = vpop.xlane.xlu1 %2414 }
 0xa2e   :  { %v2425_v43 = vmul.f32 0.015625, %v2415_v25 }
 0xa30   :  { %v7171_v45 = vsub.f32 %v2407_v33, %v2425_v43 }
 0xa31   :  { %v2418_v59 = vpop.xlane.xlu0 %2417 }
 0xa32   :  { %v2426_v52 = vmul.f32 0.015625, %v2418_v59  ;;  %v2433_v46 = vmul.f32 %v7171_v45, %v7171_v45 }
 0xa34   :  { %v7175_v49 = vsub.f32 %v2408_v35, %v2426_v52  ;;  %v2437_v15 = vsel %vm186_vm0, %v2433_v46, 0.0 }
 0xa35   :  { %2438 = vadd.xlane.f32.xlu1 %v2437_v15 }
 0xa36   :  { %v2434_v44 = vmul.f32 %v7175_v49, %v7175_v49 }
 0xa38   :  { %v2440_v23 = vsel %vm186_vm0, %v2434_v44, 0.0 }
 0xa39   :  { %2441 = vadd.xlane.f32.xlu0 %v2440_v23 }
 0xa6a   :  { %v2421_v26 = vpop.xlane.xlu1 %2420 }
 0xa6b   :  { %v2427_v16 = vmul.f32 0.015625, %v2421_v26 }
 0xa6d   :  { %v2431_v22 = vsub.f32 %v2409_v47, %v2427_v16 }
 0xa6e   :  { %v2424_v2 = vpop.xlane.xlu0 %2423 }
 0xa6f   :  { %v2428_v39 = vmul.f32 0.015625, %v2424_v2  ;;  %v2435_v27 = vmul.f32 %v2431_v22, %v2431_v22 }
 0xa71   :  { %v2432_v24 = vsub.f32 %v2410_v48, %v2428_v39  ;;  %v2443_v30 = vsel %vm186_vm0, %v2435_v27, 0.0 }
 0xa72   :  { %2444 = vadd.xlane.f32.xlu1 %v2443_v30 }
 0xa73   :  { %v2436_v41 = vmul.f32 %v2432_v24, %v2432_v24 }
 0xa75   :  { %v2446_v33 = vsel %vm186_vm0, %v2436_v41, 0.0 }
 0xa76   :  { %2447 = vadd.xlane.f32.xlu0 %v2446_v33 }
 0xac2   :  { %v2439_v51 = vpop.xlane.xlu1 %2438 }
 0xac3   :  { %v2449_v12 = vmul.f32 0.015625, %v2439_v51 }
 0xac5   :  { %v2453_v35 = vadd.f32 1e-05, %v2449_v12 }
 0xac6   :  { %v2442_v37 = vpop.xlane.xlu0 %2441 }
 0xac7   :  { %6265 = vrsqrt.f32 %v2453_v35  ;;  %v2450_v9 = vmul.f32 0.015625, %v2442_v37 }
 0xac9   :  { %v2454_v38 = vadd.f32 1e-05, %v2450_v9 }
 0xacb   :  { %6267 = vrsqrt.f32 %v2454_v38 }
 0xad1   :  { %v6266_v40 = vpop.eup %6265 }
 0xad2   :  { %v2461_v7 = vmul.f32 %v6266_v40, %v7171_v45 }
 0xad4   :  { %v2471_v0 = vmul.f32 %v5009_v42, %v2461_v7 }
 0xad5   :  { %v6268_v47 = vpop.eup %6267 }
 0xad6   :  { %v7238_v5 = vadd.f32 %v5010_v57, %v2471_v0  ;;  %v2462_v10 = vmul.f32 %v6268_v47, %v7175_v49 }
 0xad8   :  { %5028 = vmatmul.mubr.msk.f32.vlgmr.msra.gmra.mrb[32].mxu1 %vm186_vm0, %v7238_v5  ;;  %v2472_v48 = vmul.f32 %v5009_v42, %v2462_v10 }
 0xad9   :  { %2597 = vmatprep.mubr.f32.mxu1 %v6380_v28 }
 0xada   :  { %v7244_v31 = vadd.f32 %v5010_v57, %v2472_v48 }
 0xadc   :  { %5029 = vmatmul.mubr.msk.f32.gmra.mrb[34].mxu1 %vm186_vm0, %v7244_v31 }
 0xadd   :  { %2603 = vmatprep.mubr.f32.mxu1 %v6380_v28 }
 0xaff   :  { %v2445_v25 = vpop.xlane.xlu1 %2444 }
 0xb00   :  { %v2451_v43 = vmul.f32 0.015625, %v2445_v25 }
 0xb02   :  { %v2455_v45 = vadd.f32 1e-05, %v2451_v43 }
 0xb03   :  { %v2448_v59 = vpop.xlane.xlu0 %2447 }
 0xb04   :  { %6269 = vrsqrt.f32 %v2455_v45  ;;  %v2452_v52 = vmul.f32 0.015625, %v2448_v59 }
 0xb06   :  { %v2456_v46 = vadd.f32 1e-05, %v2452_v52 }
 0xb08   :  { %6271 = vrsqrt.f32 %v2456_v46 }
 0xb0e   :  { %v6270_v49 = vpop.eup %6269 }
 0xb0f   :  { %v2463_v15 = vmul.f32 %v6270_v49, %v2431_v22 }
 0xb11   :  { %v2473_v44 = vmul.f32 %v5009_v42, %v2463_v15 }
 0xb12   :  { %v6272_v23 = vpop.eup %6271 }
 0xb13   :  { %v7249_v53 = vadd.f32 %v5010_v57, %v2473_v44  ;;  %v2464_v6 = vmul.f32 %v6272_v23, %v2432_v24 }
 0xb15   :  { %5030 = vmatmul.mubr.msk.f32.gmra.mrb[36].mxu1 %vm186_vm0, %v7249_v53  ;;  %v2474_v13 = vmul.f32 %v5009_v42, %v2464_v6 }
 0xb16   :  { %2609 = vmatprep.mubr.f32.mxu1 %v6380_v28 }
 0xb17   :  { %v7254_v54 = vadd.f32 %v5010_v57, %v2474_v13 }
 0xb19   :  { %5031 = vmatmul.mubr.msk.f32.gmra.mrb[38].mxu1 %vm186_vm0, %v7254_v54 }
 0xbab   :  { %v2593_v58 = vpop.f32.mrb[32].mxu1 }
 0xbac   :  { %v2594_v62 = vadd.f32 %v2593_v58, %v2508_v56  ;;  %v2595_v1 = vpop.f32.mrb[33].mxu1 }
 0xbad   :  { %v2596_v8 = vadd.f32 %v2595_v1, %v2512_v32 }
 0xbae   :  { %2618 = vrot.lane.b32.xlu1 %v2594_v62, %s6382_s29  ;;  %5546 = vmatprep.mubr.msk.f32.mxu1 %vm360_vm1, %v2594_v62 }
 0xbaf   :  { %v2599_v3 = vpop.f32.mrb[34].mxu1 }
 0xbb0   :  { %v7265_v4 = vadd.f32 %v2599_v3, %v2508_v56  ;;  %v2601_v50 = vpop.f32.mrb[35].mxu1 }
 0xbb1   :  { %v2602_v60 = vadd.f32 %v2601_v50, %v2512_v32 }
 0xbb2   :  { %2622 = vrot.lane.b32.xlu1 %v2594_v62, %s6381_s28  ;;  %2620 = vrot.lane.b32.xlu0 %v7265_v4, %s6382_s29  ;;  %v6123_v2 = vpack.i.bf16 %v7265_v4, %v2594_v62 }
 0xbb3   :  { %v7270_v11 = vpack.i.bf16 %v2602_v60, %v2596_v8  ;;  %v7272_v14 = vpack.c.bf16 %v2602_v60, %v2596_v8 }
 0xbb6   :  { %2624 = vrot.lane.b32.xlu1 %v7265_v4, %s6381_s28  ;;  %2626 = vrot.lane.b32.xlu0 %v2594_v62, %s6383_s0 }
 0xbba   :  { %2628 = vrot.lane.b32.xlu1 %v7265_v4, %s6383_s0 }
 0xbe8   :  { %v2605_v29 = vpop.f32.mrb[36].mxu1 }
 0xbe9   :  { %v7279_v19 = vadd.f32 %v2605_v29, %v2508_v56  ;;  %v2607_v61 = vpop.f32.mrb[37].mxu1 }
 0xbea   :  { %v2608_v17 = vadd.f32 %v2607_v61, %v2512_v32 }
 0xbeb   :  { %2632 = vrot.lane.b32.xlu0 %v7279_v19, %s6382_s29 }
 0xbec   :  { %v2611_v18 = vpop.f32.mrb[38].mxu1 }
 0xbed   :  { %v7283_v20 = vadd.f32 %v2611_v18, %v2508_v56  ;;  %v2613_v21 = vpop.f32.mrb[39].mxu1 }
 0xbee   :  { %v2614_v26 = vadd.f32 %v2613_v21, %v2512_v32 }
 0xbef   :  { %2636 = vrot.lane.b32.xlu0 %v7279_v19, %s6381_s28  ;;  %2634 = vrot.lane.b32.xlu1 %v7283_v20, %s6382_s29  ;;  %v6143_v37 = vpack.i.bf16 %v7283_v20, %v7279_v19 }
 0xbf0   :  { %v7289_v16 = vpack.i.bf16 %v2614_v26, %v2608_v17  ;;  %v7291_v22 = vpack.c.bf16 %v2614_v26, %v2608_v17 }
 0xbf3   :  { %2640 = vrot.lane.b32.xlu0 %v7279_v19, %s6383_s0  ;;  %2638 = vrot.lane.b32.xlu1 %v7283_v20, %s6381_s28 }
 0xbf7   :  { %6124 = vrot.lane.b32.xlu0 %v6123_v2, %s6384_s30  ;;  %2642 = vrot.lane.b32.xlu1 %v7283_v20, %s6383_s0 }
 0xc20   :  { %v2619_v39 = vpop.permute.xlu1 %2618 }
 0xc24   :  { %v2623_v27 = vpop.permute.xlu1 %2622  ;;  %v2621_v24 = vpop.permute.xlu0 %2620 }
 0xc25   :  { %v6128_v30 = vpack.i.bf16 %v2621_v24, %v2619_v39  ;;  %5560 = vmatprep.mubr.msk.f32.mxu0 %vm360_vm1, %v2623_v27 }
 0xc27   :  { %6129 = vrot.lane.b32.xlu1 %v6128_v30, %s6384_s30 }
 0xc28   :  { %v2625_v41 = vpop.permute.xlu1 %2624  ;;  %v2627_v51 = vpop.permute.xlu0 %2626 }
 0xc29   :  { %v6133_v33 = vpack.i.bf16 %v2625_v41, %v2623_v27 }
 0xc2b   :  { %6134 = vrot.lane.b32.xlu0 %v6133_v33, %s6384_s30 }
 0xc2c   :  { %v2629_v12 = vpop.permute.xlu1 %2628 }
 0xc2d   :  { %v6138_v35 = vpack.i.bf16 %v2629_v12, %v2627_v51 }
 0xc2f   :  { %6144 = vrot.lane.b32.xlu0 %v6143_v37, %s6384_s30  ;;  %6139 = vrot.lane.b32.xlu1 %v6138_v35, %s6384_s30 }
 0xc5d   :  { %v2633_v9 = vpop.permute.xlu0 %2632 }
 0xc61   :  { %v7308_v38 = vpop.permute.xlu1 %2634  ;;  %v2637_v40 = vpop.permute.xlu0 %2636 }
 0xc62   :  { %v6148_v42 = vpack.i.bf16 %v7308_v38, %v2633_v9 }
 0xc64   :  { %6149 = vrot.lane.b32.xlu1 %v6148_v42, %s6384_s30 }
 0xc65   :  { %v7312_v7 = vpop.permute.xlu1 %2638  ;;  %v7314_v57 = vpop.permute.xlu0 %2640 }
 0xc66   :  { %v6153_v0 = vpack.i.bf16 %v7312_v7, %v2637_v40 }
 0xc68   :  { %6154 = vrot.lane.b32.xlu0 %v6153_v0, %s6384_s30 }
 0xc69   :  { %v7318_v47 = vpop.permute.xlu1 %2642  ;;  %v6125_v10 = vpop.permute.xlu0 %6124 }
 0xc6a   :  { %v6158_v48 = vpack.i.bf16 %v7318_v47, %v7314_v57  ;;  %v6127_v25 = vunpack.i.h.bf16 %v6125_v10  ;;  %v6126_v43 = vunpack.i.l.bf16 %v6125_v10 }
 0xc6c   :  { %v5871_v45 = vpack.c.bf16 %v6127_v25, %v6126_v43  ;;  %6159 = vrot.lane.b32.xlu1 %v6158_v48, %s6384_s30 }
 0xc6e   :  { %5873 = vmatprep.subr.msk.bf16.mxu1 %vm6638_vm2, %v5871_v45 }
 0xc6f   :  { %5876 = vmatpush3.bf16.xpose.msk.msra.mxu1 %vm6638_vm2, %v5871_v45 }
 0xc70   :  { %6164 = vrot.lane.b32.xlu1 %v7270_v11, %s6382_s29 }
 0xc76   :  { %5547 = vmatmul.mubr.msk.f32.vlgmr.msra.gmra.mrb[40].mxu1 %vm360_vm1, %v7265_v4 }
 0xc77   :  { %5553 = vmatprep.mubr.msk.f32.mxu1 %vm360_vm1, %v2619_v39 }
 0xc99   :  { %v6130_v59 = vpop.permute.xlu1 %6129 }
 0xc9a   :  { %v6132_v52 = vunpack.i.h.bf16 %v6130_v59  ;;  %v6131_v46 = vunpack.i.l.bf16 %v6130_v59 }
 0xc9c   :  { %v5877_v49 = vpack.c.bf16 %v6132_v52, %v6131_v46 }
 0xc9d   :  { %v6135_v15 = vpop.permute.xlu0 %6134 }
 0xc9e   :  { %v6137_v44 = vunpack.i.h.bf16 %v6135_v15  ;;  %v6136_v23 = vunpack.i.l.bf16 %v6135_v15  ;;  %5879 = vmatprep.subr.msk.bf16.mxu1 %vm6638_vm2, %v5877_v49 }
 0xc9f   :  { %5882 = vmatpush3.bf16.xpose.msk.msra.mxu1 %vm6638_vm2, %v5877_v49 }
 0xca0   :  { %v5883_v6 = vpack.c.bf16 %v6137_v44, %v6136_v23 }
 0xca1   :  { %v6140_v13 = vpop.permute.xlu1 %6139  ;;  %v6145_v55 = vpop.permute.xlu0 %6144 }
 0xca2   :  { %v6142_v56 = vunpack.i.h.bf16 %v6140_v13  ;;  %v6141_v58 = vunpack.i.l.bf16 %v6140_v13  ;;  %v6147_v62 = vunpack.i.h.bf16 %v6145_v55  ;;  %v6146_v1 = vunpack.i.l.bf16 %v6145_v55  ;;  %5885 = vmatprep.subr.msk.bf16.mxu0 %vm6638_vm2, %v5883_v6 }
 0xca3   :  { %5888 = vmatpush3.bf16.xpose.msk.msra.mxu0 %vm6638_vm2, %v5883_v6 }
 0xca4   :  { %v5889_v32 = vpack.c.bf16 %v6142_v56, %v6141_v58  ;;  %v5895_v3 = vpack.c.bf16 %v6147_v62, %v6146_v1 }
 0xca6   :  { %5554 = vmatmul.mubr.msk.f32.vlgmr.msra.gmra.mrb[42].mxu1 %vm360_vm1, %v2621_v24  ;;  %5891 = vmatprep.subr.msk.bf16.mxu1 %vm6638_vm2, %v5889_v32 }
 0xca7   :  { %5897 = vmatprep.subr.msk.bf16.mxu0 %vm6638_vm2, %v5895_v3  ;;  %5894 = vmatpush3.bf16.xpose.msk.msra.mxu1 %vm6638_vm2, %v5889_v32 }
 0xca8   :  { %5567 = vmatprep.mubr.msk.f32.mxu1 %vm360_vm1, %v2627_v51 }
 0xcaa   :  { %5561 = vmatmul.mubr.msk.f32.vlgmr.msra.gmra.mrb[28].mxu0 %vm360_vm1, %v2625_v41 }
 0xcab   :  { %5900 = vmatpush3.bf16.xpose.msk.msra.mxu0 %vm6638_vm2, %v5895_v3  ;;  %5574 = vmatprep.mubr.msk.f32.mxu0 %vm360_vm1, %v7279_v19 }
 0xcae   :  { %5568 = vmatmul.mubr.msk.f32.vlgmr.msra.gmra.mrb[44].mxu1 %vm360_vm1, %v2629_v12 }
 0xcaf   :  { %5581 = vmatprep.mubr.msk.f32.mxu1 %vm360_vm1, %v2633_v9 }
 0xcb2   :  { %5575 = vmatmul.mubr.msk.f32.vlgmr.msra.gmra.mrb[30].mxu0 %vm360_vm1, %v7283_v20 }
 0xcb3   :  { %5588 = vmatprep.mubr.msk.f32.mxu0 %vm360_vm1, %v2637_v40 }
 0xcd6   :  { %v6150_v4 = vpop.permute.xlu1 %6149 }
 0xcd7   :  { %v6152_v50 = vunpack.i.h.bf16 %v6150_v4  ;;  %v6151_v8 = vunpack.i.l.bf16 %v6150_v4 }
 0xcd9   :  { %v5901_v60 = vpack.c.bf16 %v6152_v50, %v6151_v8 }
 0xcda   :  { %v6155_v29 = vpop.permute.xlu0 %6154 }
 0xcdb   :  { %v6157_v61 = vunpack.i.h.bf16 %v6155_v29  ;;  %v6156_v17 = vunpack.i.l.bf16 %v6155_v29  ;;  %5903 = vmatprep.subr.msk.bf16.mxu1 %vm6638_vm2, %v5901_v60 }
 0xcdc   :  { %5906 = vmatpush3.bf16.xpose.msk.msra.mxu1 %vm6638_vm2, %v5901_v60 }
 0xcdd   :  { %v5907_v19 = vpack.c.bf16 %v6157_v61, %v6156_v17 }
 0xcde   :  { %v6160_v18 = vpop.permute.xlu1 %6159 }
 0xcdf   :  { %v6162_v21 = vunpack.i.h.bf16 %v6160_v18  ;;  %v6161_v26 = vunpack.i.l.bf16 %v6160_v18  ;;  %5909 = vmatprep.subr.msk.bf16.mxu0 %vm6638_vm2, %v5907_v19 }
 0xce0   :  { %5912 = vmatpush3.bf16.xpose.msk.msra.mxu0 %vm6638_vm2, %v5907_v19 }
 0xce1   :  { %v5913_v20 = vpack.c.bf16 %v6162_v21, %v6161_v26  ;;  %5920 = vmatprep.subr.bf16.mxu0 %v7272_v14 }
 0xce2   :  { %v6165_v2 = vpop.permute.xlu1 %6164 }
 0xce3   :  { %v6167_v39 = vunpack.i.h.bf16 %v6165_v2  ;;  %v6166_v27 = vunpack.i.l.bf16 %v6165_v2  ;;  %5582 = vmatmul.mubr.msk.f32.vlgmr.msra.gmra.mrb[46].mxu1 %vm360_vm1, %v7308_v38  ;;  %5915 = vmatprep.subr.msk.bf16.mxu1 %vm6638_vm2, %v5913_v20 }
 0xce4   :  { %5918 = vmatpush3.bf16.xpose.msk.msra.mxu1 %vm6638_vm2, %v5913_v20  ;;  %5595 = vmatprep.mubr.msk.f32.mxu1 %vm360_vm1, %v7314_v57 }
 0xce5   :  { %v5923_v24 = vpack.c.bf16 %v6167_v39, %v6166_v27 }
 0xce7   :  { %5589 = vmatmul.mubr.msk.f32.vlgmr.msra.gmra.mrb[32].mxu0 %vm360_vm1, %v7312_v7  ;;  %5924 = vmatprep.subr.bf16.mxu1 %v5923_v24 }
 0xce8   :  { %5922 = vmatpush3.bf16.msra.mxu0 %v7272_v14 }
 0xceb   :  { %5596 = vmatmul.mubr.msk.f32.vlgmr.msra.gmra.mrb[48].mxu1 %vm360_vm1, %v7318_v47 }
 0xcec   :  { %5926 = vmatpush3.bf16.msra.mxu1 %v5923_v24 }
 0xd49   :  { %v5548_v30 = vpop.f32.mrb[40].mxu1 }
 0xd4a   :  { %v7380_v41 = vmul.f32 0.25, %v5548_v30  ;;  %v2762_v33 = vpop.f32.mrb[41].mxu1 }
 0xd4b   :  { %v7382_v63 = vmul.f32 0.25, %v2762_v33 }
 0xd4c   :  { %v3399_v51 = vsel %vm360_vm1, %v7380_v41, -inf }
 0xd4d   :  { %3400 = vmax.xlane.f32.xlu1 %v3399_v51  ;;  %v3396_v12 = vsel %vm360_vm1, %v7382_v63, -inf }
 0xd4e   :  { %3397 = vmax.xlane.f32.xlu0 %v3396_v12 }
 0xd79   :  { %v5555_v35 = vpop.f32.mrb[42].mxu1 }
 0xd7a   :  { %v7388_v14 = vmul.f32 0.25, %v5555_v35  ;;  %v2849_v37 = vpop.f32.mrb[43].mxu1 }
 0xd7b   :  { %v7396_v57 = vmul.f32 0.25, %v2849_v37 }
 0xd7c   :  { %v3405_v9 = vsel %vm360_vm1, %v7388_v14, -inf }
 0xd7d   :  { %v5562_v38 = vpop.f32.mrb[28].mxu0  ;;  %3406 = vmax.xlane.f32.xlu0 %v3405_v9  ;;  %v3402_v45 = vsel %vm360_vm1, %v7396_v57, -inf }
 0xd7e   :  { %v7392_v40 = vmul.f32 0.25, %v5562_v38  ;;  %v2936_v42 = vpop.f32.mrb[29].mxu0 }
 0xd7f   :  { %v7394_v7 = vmul.f32 0.25, %v2936_v42 }
 0xd80   :  { %v3411_v0 = vsel %vm360_vm1, %v7392_v40, -inf }
 0xd81   :  { %3412 = vmax.xlane.f32.xlu0 %v3411_v0  ;;  %v5569_v47 = vpop.f32.mrb[44].mxu1  ;;  %v3408_v10 = vsel %vm360_vm1, %v7394_v7, -inf }
 0xd82   :  { %3409 = vmax.xlane.f32.xlu1 %v3408_v10  ;;  %v3023_v48 = vpop.f32.mrb[45].mxu1  ;;  %v7404_v43 = vmul.f32 0.25, %v5569_v47 }
 0xd83   :  { %v7402_v25 = vmul.f32 0.25, %v3023_v48 }
 0xd84   :  { %v3417_v44 = vsel %vm360_vm1, %v7404_v43, -inf }
 0xd85   :  { %v5576_v59 = vpop.f32.mrb[30].mxu0  ;;  %3403 = vmax.xlane.f32.xlu0 %v3402_v45  ;;  %v3414_v52 = vsel %vm360_vm1, %v7402_v25, -inf }
 0xd86   :  { %v3110_v46 = vpop.f32.mrb[31].mxu0  ;;  %3415 = vmax.xlane.f32.xlu1 %v3414_v52  ;;  %v7412_v15 = vmul.f32 0.25, %v5576_v59 }
 0xd87   :  { %v7410_v49 = vmul.f32 0.25, %v3110_v46 }
 0xd88   :  { %v3423_v6 = vsel %vm360_vm1, %v7412_v15, -inf }
 0xd89   :  { %3418 = vmax.xlane.f32.xlu0 %v3417_v44  ;;  %v3420_v23 = vsel %vm360_vm1, %v7410_v49, -inf }
 0xd8a   :  { %3421 = vmax.xlane.f32.xlu1 %v3420_v23 }
 0xd8d   :  { %3424 = vmax.xlane.f32.xlu0 %v3423_v6 }
 0xdb6   :  { %v5583_v13 = vpop.f32.mrb[46].mxu1 }
 0xdb7   :  { %v7420_v55 = vmul.f32 0.25, %v5583_v13  ;;  %v3197_v56 = vpop.f32.mrb[47].mxu1 }
 0xdb8   :  { %v7422_v58 = vmul.f32 0.25, %v3197_v56 }
 0xdb9   :  { %v3429_v62 = vsel %vm360_vm1, %v7420_v55, -inf }
 0xdba   :  { %v5590_v1 = vpop.f32.mrb[32].mxu0  ;;  %3430 = vmax.xlane.f32.xlu0 %v3429_v62  ;;  %v3426_v32 = vsel %vm360_vm1, %v7422_v58, -inf }
 0xdbb   :  { %v7428_v3 = vmul.f32 0.25, %v5590_v1  ;;  %v3284_v4 = vpop.f32.mrb[33].mxu0  ;;  %3427 = vmax.xlane.f32.xlu1 %v3426_v32 }
 0xdbc   :  { %v7430_v50 = vmul.f32 0.25, %v3284_v4 }
 0xdbd   :  { %v3435_v8 = vsel %vm360_vm1, %v7428_v3, -inf }
 0xdbe   :  { %3436 = vmax.xlane.f32.xlu0 %v3435_v8  ;;  %v5597_v60 = vpop.f32.mrb[48].mxu1  ;;  %v3432_v29 = vsel %vm360_vm1, %v7430_v50, -inf }
 0xdbf   :  { %v7436_v61 = vmul.f32 0.25, %v5597_v60  ;;  %3433 = vmax.xlane.f32.xlu1 %v3432_v29  ;;  %v3371_v17 = vpop.f32.mrb[49].mxu1 }
 0xdc0   :  { %v7445_v20 = vmul.f32 0.25, %v3371_v17 }
 0xdc1   :  { %v3441_v19 = vsel %vm360_vm1, %v7436_v61, -inf }
 0xdc2   :  { %3442 = vmax.xlane.f32.xlu0 %v3441_v19  ;;  %v3438_v39 = vsel %vm360_vm1, %v7445_v20, -inf }
 0xdd0   :  { %6174 = vrot.lane.b32.xlu1 %v7270_v11, %s6383_s0 }
 0xdd8   :  { %6169 = vrot.lane.b32.xlu0 %v7270_v11, %s6381_s28 }
 0xdda   :  { %v3401_v18 = vpop.xlane.xlu1 %3400 }
 0xddb   :  { %v3445_v21 = vsub.f32 %v7380_v41, %v3401_v18  ;;  %v3398_v11 = vpop.xlane.xlu0 %3397 }
 0xddc   :  { %v3444_v35 = vsub.f32 %v7382_v63, %v3398_v11 }
 0xddd   :  { %v3462_v26 = vmul.f32 1.442695, %v3445_v21 }
 0xdde   :  { %v3460_v38 = vmul.f32 1.442695, %v3444_v35 }
 0xddf   :  { %6273 = vpow2.f32 %v3462_v26 }
 0xde9   :  { %v7447_v2 = vpop.eup %6273 }
 0xdea   :  { %v3495_v27 = vsel %vm360_vm1, %v7447_v2, 0.0 }
 0xdf4   :  { %3439 = vmax.xlane.f32.xlu1 %v3438_v39 }
 0xdf7   :  { %3496 = vadd.xlane.f32.xlu0 %v3495_v27 }
 0xe05   :  { %6179 = vrot.lane.b32.xlu1 %v7289_v16, %s6382_s29 }
 0xe0a   :  { %v3407_v24 = vpop.xlane.xlu0 %3406 }
 0xe0b   :  { %v3447_v30 = vsub.f32 %v7388_v14, %v3407_v24 }
 0xe0d   :  { %v3466_v41 = vmul.f32 1.442695, %v3447_v30 }
 0xe0e   :  { %v3413_v33 = vpop.xlane.xlu0 %3412 }
 0xe0f   :  { %6275 = vpow2.f32 %v3466_v41  ;;  %v3449_v51 = vsub.f32 %v7392_v40, %v3413_v33  ;;  %v3410_v9 = vpop.xlane.xlu1 %3409 }
 0xe10   :  { %v3448_v45 = vsub.f32 %v7394_v7, %v3410_v9 }
 0xe11   :  { %v3470_v12 = vmul.f32 1.442695, %v3449_v51 }
 0xe12   :  { %v3404_v37 = vpop.xlane.xlu0 %3403 }
 0xe13   :  { %6277 = vpow2.f32 %v3470_v12  ;;  %v3446_v42 = vsub.f32 %v7396_v57, %v3404_v37  ;;  %v3416_v14 = vpop.xlane.xlu1 %3415 }
 0xe14   :  { %6279 = vpow2.f32 %v3460_v38  ;;  %v3450_v44 = vsub.f32 %v7402_v25, %v3416_v14 }
 0xe15   :  { %v3464_v40 = vmul.f32 1.442695, %v3446_v42 }
 0xe16   :  { %v3419_v0 = vpop.xlane.xlu0 %3418  ;;  %v3472_v6 = vmul.f32 1.442695, %v3450_v44 }
 0xe17   :  { %v3451_v47 = vsub.f32 %v7404_v43, %v3419_v0  ;;  %v3468_v43 = vmul.f32 1.442695, %v3448_v45  ;;  %v3422_v7 = vpop.xlane.xlu1 %3421 }
 0xe18   :  { %v3452_v13 = vsub.f32 %v7410_v49, %v3422_v7 }
 0xe19   :  { %v7460_v10 = vpop.eup %6275  ;;  %v3474_v48 = vmul.f32 1.442695, %v3451_v47 }
 0xe1a   :  { %v3425_v59 = vpop.xlane.xlu0 %3424  ;;  %v3501_v63 = vsel %vm360_vm1, %v7460_v10, 0.0  ;;  %v3476_v62 = vmul.f32 1.442695, %v3452_v13 }
 0xe1b   :  { %6281 = vpow2.f32 %v3474_v48  ;;  %v3453_v52 = vsub.f32 %v7412_v15, %v3425_v59  ;;  %3502 = vadd.xlane.f32.xlu0 %v3501_v63 }
 0xe1c   :  { %6283 = vpow2.f32 %v3464_v40 }
 0xe1d   :  { %v7466_v57 = vpop.eup %6277  ;;  %v3478_v46 = vmul.f32 1.442695, %v3453_v52 }
 0xe1e   :  { %v3507_v23 = vsel %vm360_vm1, %v7466_v57, 0.0  ;;  %v7472_v56 = vpop.eup %6279 }
 0xe1f   :  { %6285 = vpow2.f32 %v3478_v46  ;;  %3508 = vadd.xlane.f32.xlu0 %v3507_v23  ;;  %v3492_v25 = vsel %vm360_vm1, %v7472_v56, 0.0 }
 0xe20   :  { %6287 = vpow2.f32 %v3468_v43 }
 0xe21   :  { %6289 = vpow2.f32 %v3472_v6 }
 0xe22   :  { %6291 = vpow2.f32 %v3476_v62 }
 0xe25   :  { %v7474_v15 = vpop.eup %6281 }
 0xe26   :  { %v3513_v1 = vsel %vm360_vm1, %v7474_v15, 0.0  ;;  %v7480_v32 = vpop.eup %6283 }
 0xe27   :  { %3514 = vadd.xlane.f32.xlu0 %v3513_v1  ;;  %v3498_v8 = vsel %vm360_vm1, %v7480_v32, 0.0 }
 0xe29   :  { %3493 = vadd.xlane.f32.xlu1 %v3492_v25  ;;  %v7482_v4 = vpop.eup %6285 }
 0xe2a   :  { %v3519_v49 = vsel %vm360_vm1, %v7482_v4, 0.0  ;;  %v7488_v60 = vpop.eup %6287 }
 0xe2b   :  { %3520 = vadd.xlane.f32.xlu0 %v3519_v49  ;;  %v3504_v29 = vsel %vm360_vm1, %v7488_v60, 0.0  ;;  %v7492_v17 = vpop.eup %6289 }
 0xe2c   :  { %v3510_v19 = vsel %vm360_vm1, %v7492_v17, 0.0  ;;  %v7496_v18 = vpop.eup %6291 }
 0xe2d   :  { %3499 = vadd.xlane.f32.xlu1 %v3498_v8  ;;  %v3516_v21 = vsel %vm360_vm1, %v7496_v18, 0.0 }
 0xe31   :  { %3505 = vadd.xlane.f32.xlu1 %v3504_v29 }
 0xe35   :  { %3511 = vadd.xlane.f32.xlu1 %v3510_v19 }
 0xe39   :  { %3517 = vadd.xlane.f32.xlu1 %v3516_v21 }
 0xe47   :  { %v3431_v26 = vpop.xlane.xlu0 %3430 }
 0xe48   :  { %v3455_v39 = vsub.f32 %v7420_v55, %v3431_v26  ;;  %v3428_v27 = vpop.xlane.xlu1 %3427 }
 0xe49   :  { %v3454_v11 = vsub.f32 %v7422_v58, %v3428_v27 }
 0xe4a   :  { %v3482_v24 = vmul.f32 1.442695, %v3455_v39 }
 0xe4b   :  { %v3480_v30 = vmul.f32 1.442695, %v3454_v11  ;;  %v3437_v41 = vpop.xlane.xlu0 %3436 }
 0xe4c   :  { %6293 = vpow2.f32 %v3482_v24  ;;  %v3457_v33 = vsub.f32 %v7428_v3, %v3437_v41  ;;  %v3434_v51 = vpop.xlane.xlu1 %3433 }
 0xe4d   :  { %6295 = vpow2.f32 %v3480_v30  ;;  %v3456_v12 = vsub.f32 %v7430_v50, %v3434_v51 }
 0xe4e   :  { %v3486_v35 = vmul.f32 1.442695, %v3457_v33 }
 0xe4f   :  { %v3484_v37 = vmul.f32 1.442695, %v3456_v12  ;;  %v3443_v9 = vpop.xlane.xlu0 %3442 }
 0xe50   :  { %6297 = vpow2.f32 %v3486_v35  ;;  %v3459_v38 = vsub.f32 %v7436_v61, %v3443_v9  ;;  %v6175_v55 = vpop.permute.xlu1 %6174 }
 0xe51   :  { %6299 = vpow2.f32 %v3484_v37  ;;  %v6177_v42 = vunpack.i.h.bf16 %v6175_v55  ;;  %v6176_v58 = vunpack.i.l.bf16 %v6175_v55 }
 0xe52   :  { %v3490_v0 = vmul.f32 1.442695, %v3459_v38 }
 0xe53   :  { %v7505_v47 = vpack.c.bf16 %v6177_v42, %v6176_v58  ;;  %v6170_v14 = vpop.permute.xlu0 %6169 }
 0xe54   :  { %6301 = vpow2.f32 %v3490_v0  ;;  %v6172_v3 = vunpack.i.h.bf16 %v6170_v14  ;;  %v6171_v48 = vunpack.i.l.bf16 %v6170_v14 }
 0xe55   :  { %5932 = vmatprep.subr.bf16.mxu1 %v7505_v47 }
 0xe56   :  { %v7508_v50 = vpop.eup %6293  ;;  %v5927_v45 = vpack.c.bf16 %v6172_v3, %v6171_v48 }
 0xe57   :  { %v7510_v40 = vpop.eup %6295  ;;  %v3525_v61 = vsel %vm360_vm1, %v7508_v50, 0.0 }
 0xe58   :  { %3526 = vadd.xlane.f32.xlu0 %v3525_v61  ;;  %5928 = vmatprep.subr.bf16.mxu0 %v5927_v45  ;;  %v3522_v59 = vsel %vm360_vm1, %v7510_v40, 0.0 }
 0xe59   :  { %3523 = vadd.xlane.f32.xlu1 %v3522_v59 }
 0xe5a   :  { %v7516_v63 = vpop.eup %6297 }
 0xe5b   :  { %v7518_v52 = vpop.eup %6299  ;;  %v3531_v46 = vsel %vm360_vm1, %v7516_v63, 0.0 }
 0xe5c   :  { %3532 = vadd.xlane.f32.xlu0 %v3531_v46  ;;  %v3528_v43 = vsel %vm360_vm1, %v7518_v52, 0.0 }
 0xe5d   :  { %3529 = vadd.xlane.f32.xlu1 %v3528_v43 }
 0xe5e   :  { %v7524_v44 = vpop.eup %6301 }
 0xe5f   :  { %v3537_v23 = vsel %vm360_vm1, %v7524_v44, 0.0 }
 0xe60   :  { %3538 = vadd.xlane.f32.xlu0 %v3537_v23 }
 0xe76   :  { %6184 = vrot.lane.b32.xlu0 %v7289_v16, %s6381_s28 }
 0xe81   :  { %v3440_v7 = vpop.xlane.xlu1 %3439 }
 0xe82   :  { %v3458_v6 = vsub.f32 %v7445_v20, %v3440_v7 }
 0xe84   :  { %v3488_v13 = vmul.f32 1.442695, %v3458_v6  ;;  %v3497_v25 = vpop.xlane.xlu0 %3496 }
 0xe85   :  { %v6180_v49 = vpop.permute.xlu1 %6179 }
 0xe86   :  { %6303 = vpow2.f32 %v3488_v13  ;;  %v6182_v51 = vunpack.i.h.bf16 %v6180_v49  ;;  %v6181_v12 = vunpack.i.l.bf16 %v6180_v49 }
 0xe87   :  { %6305 = vrcp.f32 %v3497_v25 }
 0xe88   :  { %v5939_v38 = vpack.c.bf16 %v6182_v51, %v6181_v12 }
 0xe90   :  { %v7531_v62 = vpop.eup %6303 }
 0xe91   :  { %v3534_v1 = vsel %vm360_vm1, %v7531_v62, 0.0  ;;  %v6306_v39 = vpop.eup %6305 }
 0xe92   :  { %3535 = vadd.xlane.f32.xlu1 %v3534_v1  ;;  %v3557_v24 = vmul.f32 %v6306_v39, %v7447_v2 }
 0xea3   :  { %6189 = vrot.lane.b32.xlu1 %v7289_v16, %s6383_s0 }
 0xea8   :  { %v3503_v8 = vpop.xlane.xlu0 %3502 }
 0xeac   :  { %v3509_v19 = vpop.xlane.xlu0 %3508 }
 0xeb4   :  { %v3515_v21 = vpop.xlane.xlu0 %3514 }
 0xeb6   :  { %v3494_v29 = vpop.xlane.xlu1 %3493 }
 0xeb7   :  { %6307 = vrcp.f32 %v3494_v29 }
 0xeb8   :  { %6309 = vrcp.f32 %v3503_v8  ;;  %v3521_v30 = vpop.xlane.xlu0 %3520 }
 0xeba   :  { %v3500_v20 = vpop.xlane.xlu1 %3499 }
 0xebb   :  { %6311 = vrcp.f32 %v3500_v20 }
 0xebc   :  { %6313 = vrcp.f32 %v3509_v19 }
 0xebe   :  { %v3506_v26 = vpop.xlane.xlu1 %3505 }
 0xebf   :  { %6315 = vrcp.f32 %v3506_v26 }
 0xec0   :  { %6317 = vrcp.f32 %v3515_v21  ;;  %v5081_v21 = vld [vmem:[%s7915_s5 + $0x48] sm:$0xff] }
 0xec1   :  { %v6308_v27 = vpop.eup %6307 }
 0xec2   :  { %v3512_v11 = vpop.xlane.xlu1 %3511  ;;  %v3556_v16 = vmul.f32 %v6308_v27, %v7472_v56  ;;  %v6310_v41 = vpop.eup %6309  ;;  %v5084_v27 = vld [vmem:[%s7915_s5 + $0x60] sm:$0xff] }
 0xec3   :  { %6319 = vrcp.f32 %v3512_v11  ;;  %v3559_v9 = vmul.f32 %v6310_v41, %v7460_v10  ;;  %v5085_v11 = vld [vmem:[%s7915_s5 + $0x68] sm:$0xff] }
 0xec4   :  { %5602 = vmatprep.mubr.msk.f32.mxu0 %vm360_vm1, %v3556_v16  ;;  %6321 = vrcp.f32 %v3521_v30  ;;  %v5959_v16 = vpack.c.bf16 %v5085_v11, %v5084_v27  ;;  %v5087_v30 = vld [vmem:[%s7915_s5 + $0x78] sm:$0xff] }
 0xec5   :  { %v6312_v33 = vpop.eup %6311  ;;  %5603 = vmatmul.mubr.msk.f32.vlgmr.msra.gmra.mrb[34].mxu0 %vm360_vm1, %v3557_v24  ;;  %v5086_v24 = vld [vmem:[%s7915_s5 + $0x70] sm:$0xff] }
 0xec6   :  { %5930 = vmatpush3.bf16.msra.mxu0 %v5927_v45  ;;  %v3518_v35 = vpop.xlane.xlu1 %3517  ;;  %v3558_v37 = vmul.f32 %v6312_v33, %v7480_v32  ;;  %v6314_v2 = vpop.eup %6313  ;;  %v5963_v41 = vpack.c.bf16 %v5087_v30, %v5086_v24 }
 0xec7   :  { %5936 = vmatprep.subr.bf16.mxu0 %v7291_v22  ;;  %6323 = vrcp.f32 %v3518_v35  ;;  %v3561_v42 = vmul.f32 %v6314_v2, %v7466_v57 }
 0xec8   :  { %5609 = vmatprep.mubr.msk.f32.mxu1 %vm360_vm1, %v3558_v37 }
 0xec9   :  { %v6316_v56 = vpop.eup %6315  ;;  %5610 = vmatmul.mubr.msk.f32.vlgmr.msra.gmra.mrb[50].mxu1 %vm360_vm1, %v3559_v9 }
 0xeca   :  { %5934 = vmatpush3.bf16.msra.mxu1 %v7505_v47  ;;  %v3560_v55 = vmul.f32 %v6316_v56, %v7488_v60  ;;  %v6318_v32 = vpop.eup %6317 }
 0xecb   :  { %5940 = vmatprep.subr.bf16.mxu1 %v5939_v38  ;;  %v3563_v0 = vmul.f32 %v6318_v32, %v7474_v15 }
 0xecc   :  { %5616 = vmatprep.mubr.msk.f32.mxu0 %vm360_vm1, %v3560_v55 }
 0xecd   :  { %v6320_v10 = vpop.eup %6319  ;;  %5617 = vmatmul.mubr.msk.f32.vlgmr.msra.gmra.mrb[36].mxu0 %vm360_vm1, %v3561_v42 }
 0xece   :  { %5938 = vmatpush3.bf16.msra.mxu0 %v7291_v22  ;;  %v3562_v58 = vmul.f32 %v6320_v10, %v7492_v17  ;;  %v6322_v14 = vpop.eup %6321 }
 0xecf   :  { %v3565_v60 = vmul.f32 %v6322_v14, %v7482_v4 }
 0xed0   :  { %5623 = vmatprep.mubr.msk.f32.mxu1 %vm360_vm1, %v3562_v58 }
 0xed1   :  { %v6324_v47 = vpop.eup %6323  ;;  %5624 = vmatmul.mubr.msk.f32.vlgmr.msra.gmra.mrb[52].mxu1 %vm360_vm1, %v3563_v0 }
 0xed2   :  { %5942 = vmatpush3.bf16.msra.mxu1 %v5939_v38  ;;  %v3564_v57 = vmul.f32 %v6324_v47, %v7496_v18 }
 0xed4   :  { %5630 = vmatprep.mubr.msk.f32.mxu0 %vm360_vm1, %v3564_v57 }
 0xed5   :  { %5631 = vmatmul.mubr.msk.f32.vlgmr.msra.gmra.mrb[38].mxu0 %vm360_vm1, %v3565_v60 }
 0xee5   :  { %v3527_v22 = vpop.xlane.xlu0 %3526 }
 0xee6   :  { %6325 = vrcp.f32 %v3527_v22  ;;  %v3524_v17 = vpop.xlane.xlu1 %3523 }
 0xee7   :  { %6327 = vrcp.f32 %v3524_v17 }
 0xee9   :  { %v3533_v15 = vpop.xlane.xlu0 %3532 }
 0xeea   :  { %6329 = vrcp.f32 %v3533_v15  ;;  %v3530_v3 = vpop.xlane.xlu1 %3529 }
 0xeeb   :  { %6331 = vrcp.f32 %v3530_v3 }
 0xeed   :  { %v3539_v48 = vpop.xlane.xlu0 %3538 }
 0xeee   :  { %6333 = vrcp.f32 %v3539_v48 }
 0xef0   :  { %v6326_v45 = vpop.eup %6325 }
 0xef1   :  { %v6328_v61 = vpop.eup %6327  ;;  %v6185_v59 = vpop.permute.xlu0 %6184  ;;  %v3567_v43 = vmul.f32 %v6326_v45, %v7508_v50 }
 0xef2   :  { %v6187_v46 = vunpack.i.h.bf16 %v6185_v59  ;;  %v6186_v18 = vunpack.i.l.bf16 %v6185_v59  ;;  %v3566_v4 = vmul.f32 %v6328_v61, %v7510_v40 }
 0xef4   :  { %v6330_v23 = vpop.eup %6329  ;;  %v5943_v7 = vpack.c.bf16 %v6187_v46, %v6186_v18  ;;  %5637 = vmatprep.mubr.msk.f32.mxu1 %vm360_vm1, %v3566_v4 }
 0xef5   :  { %v6332_v6 = vpop.eup %6331  ;;  %5638 = vmatmul.mubr.msk.f32.vlgmr.msra.gmra.mrb[54].mxu1 %vm360_vm1, %v3567_v43  ;;  %v3569_v1 = vmul.f32 %v6330_v23, %v7516_v63  ;;  %v5080_v63 = vld [vmem:[%s7915_s5 + $0x40] sm:$0xff] }
 0xef6   :  { %5944 = vmatprep.subr.bf16.mxu0 %v5943_v7  ;;  %v3568_v13 = vmul.f32 %v6332_v6, %v7518_v52  ;;  %v5951_v26 = vpack.c.bf16 %v5081_v21, %v5080_v63 }
 0xef7   :  { %5946 = vmatpush3.bf16.msra.mxu0 %v5943_v7 }
 0xef8   :  { %5644 = vmatprep.mubr.msk.f32.mxu0 %vm360_vm1, %v3568_v13  ;;  %v6334_v29 = vpop.eup %6333  ;;  %5952 = vmatprep.subr.bf16.mxu0 %v5951_v26 }
 0xef9   :  { %v3571_v20 = vmul.f32 %v6334_v29, %v7524_v44  ;;  %v5083_v44 = vld [vmem:[%s7915_s5 + $0x58] sm:$0xff] }
 0xefa   :  { %5645 = vmatmul.mubr.msk.f32.vlgmr.msra.gmra.mrb[40].mxu0 %vm360_vm1, %v3569_v1 }
 0xefb   :  { %5954 = vmatpush3.bf16.msra.mxu0 %v5951_v26 }
 0xf1f   :  { %v3536_v40 = vpop.xlane.xlu1 %3535 }
 0xf20   :  { %6335 = vrcp.f32 %v3536_v40 }
 0xf23   :  { %v6190_v50 = vpop.permute.xlu1 %6189 }
 0xf24   :  { %v6192_v25 = vunpack.i.h.bf16 %v6190_v50  ;;  %v6191_v49 = vunpack.i.l.bf16 %v6190_v50 }
 0xf26   :  { %v5947_v8 = vpack.c.bf16 %v6192_v25, %v6191_v49 }
 0xf28   :  { %5948 = vmatprep.subr.bf16.mxu1 %v5947_v8 }
 0xf29   :  { %5950 = vmatpush3.bf16.msra.mxu1 %v5947_v8  ;;  %v5089_v8 = vld [vmem:[%s7916_s6 + $0x1] ss:$0 sm:$0xff] }
 0xf2a   :  { %v6336_v19 = vpop.eup %6335 }
 0xf2b   :  { %v3570_v52 = vmul.f32 %v6336_v19, %v7531_v62  ;;  %v5082_v62 = vld [vmem:[%s7915_s5 + $0x50] sm:$0xff] }
 0xf2c   :  { %v5955_v39 = vpack.c.bf16 %v5083_v44, %v5082_v62 }
 0xf2d   :  { %5651 = vmatprep.mubr.msk.f32.mxu1 %vm360_vm1, %v3570_v52 }
 0xf2e   :  { %5652 = vmatmul.mubr.msk.f32.vlgmr.msra.gmra.mrb[56].mxu1 %vm360_vm1, %v3571_v20  ;;  %5956 = vmatprep.subr.bf16.mxu0 %v5955_v39 }
 0xf2f   :  { %4580 = vmatprep.mubr.f32.mxu1 %v6380_v28  ;;  %5958 = vmatpush3.bf16.msra.mxu0 %v5955_v39 }
 0xf30   :  { %5960 = vmatprep.subr.bf16.mxu0 %v5959_v16 }
 0xf33   :  { %5962 = vmatpush3.bf16.msra.mxu0 %v5959_v16 }
 0xf34   :  { %5964 = vmatprep.subr.bf16.mxu0 %v5963_v41 }
 0xf37   :  { %5966 = vmatpush3.bf16.msra.mxu0 %v5963_v41 }
 0xf98   :  { %v5604_v33 = vpop.f32.mrb[34].mxu0 }
 0xf99   :  { %v3644_v51 = vpop.f32.mrb[35].mxu0 }
 0xf9c   :  { %v5611_v12 = vpop.f32.mrb[50].mxu1 }
 0xf9d   :  { %4224 = vrot.lane.b32.xlu1 %v5611_v12, %s6385_s21  ;;  %v3725_v35 = vpop.f32.mrb[51].mxu1 }
 0xf9e   :  { %4222 = vrot.lane.b32.xlu0 %v3725_v35, %s6385_s21 }
 0xfa0   :  { %v5618_v37 = vpop.f32.mrb[36].mxu0 }
 0xfa1   :  { %4232 = vrot.lane.b32.xlu1 %v5618_v37, %s7939_s26  ;;  %v3806_v9 = vpop.f32.mrb[37].mxu0 }
 0xfa2   :  { %4230 = vrot.lane.b32.xlu0 %v3806_v9, %s7939_s26 }
 0xfa4   :  { %v5625_v2 = vpop.f32.mrb[52].mxu1 }
 0xfa5   :  { %4240 = vrot.lane.b32.xlu1 %v5625_v2, %s7940_s4  ;;  %v3887_v56 = vpop.f32.mrb[53].mxu1  ;;  %v5099_v2 = vld [vmem:[%s7919_s9 + $0x88] sm:$0xff] }
 0xfa6   :  { %4238 = vrot.lane.b32.xlu0 %v3887_v56, %s7940_s4  ;;  %v5101_v56 = vld [vmem:[%s7919_s9 + $0x98] sm:$0xff] }
 0xfa8   :  { %v5632_v38 = vpop.f32.mrb[38].mxu0 }
 0xfa9   :  { %v3968_v55 = vpop.f32.mrb[39].mxu0 }
 0xfc8   :  { %v5639_v42 = vpop.f32.mrb[54].mxu1 }
 0xfc9   :  { %4254 = vrot.lane.b32.xlu1 %v5639_v42, %s6385_s21  ;;  %v4049_v32 = vpop.f32.mrb[55].mxu1  ;;  %v5100_v42 = vld [vmem:[%s7919_s9 + $0x90] sm:$0xff] }
 0xfca   :  { %4252 = vrot.lane.b32.xlu0 %v4049_v32, %s6385_s21 }
 0xfcd   :  { %v5646_v10 = vpop.f32.mrb[40].mxu0 }
 0xfce   :  { %v4130_v58 = vpop.f32.mrb[41].mxu0  ;;  %4262 = vrot.lane.b32.xlu1 %v5646_v10, %s7939_s26  ;;  %v5103_v10 = vld [vmem:[%s7919_s9 + $0xa8] sm:$0xff] }
 0xfcf   :  { %4260 = vrot.lane.b32.xlu0 %v4130_v58, %s7939_s26  ;;  %v5105_v58 = vld [vmem:[%s7919_s9 + $0xb8] sm:$0xff] }
0x1001   :  { %v5653_v0 = vpop.f32.mrb[56].mxu1 }
0x1002   :  { %4270 = vrot.lane.b32.xlu1 %v5653_v0, %s7940_s4  ;;  %v4211_v14 = vpop.f32.mrb[57].mxu1  ;;  %v5971_v0 = vpack.c.bf16 %v5105_v58, %v5103_v10 }
0x1003   :  { %4268 = vrot.lane.b32.xlu0 %v4211_v14, %s7940_s4  ;;  %v5102_v14 = vld [vmem:[%s7919_s9 + $0xa0] sm:$0xff] }
0x100f   :  { %v4225_v47 = vpop.permute.xlu1 %4224 }
0x1010   :  { %v4223_v57 = vpop.permute.xlu0 %4222  ;;  %v4245_v3 = vsel %vm360_vm1, %v5604_v33, %v4225_v47  ;;  %v5104_v47 = vld [vmem:[%s7919_s9 + $0xb0] sm:$0xff] }
0x1011   :  { %v4244_v17 = vsel %vm360_vm1, %v3644_v51, %v4223_v57  ;;  %v5973_v57 = vpack.c.bf16 %v5104_v47, %v5102_v14  ;;  %v5128_v14 = vld [vmem:[%s7921_s11 + $0x148] sm:$0xff]  ;;  %v5145_v47 = vld [vmem:[%s7921_s11 + $0x1d0] sm:$0xff] }
0x1013   :  { %v4233_v60 = vpop.permute.xlu1 %4232 }
0x1014   :  { %v4231_v22 = vpop.permute.xlu0 %4230  ;;  %v4247_v61 = vsel %vm1919_vm3, %v4245_v3, %v4233_v60  ;;  %v5107_v60 = vld [vmem:[%s7919_s9 + $0xc8] sm:$0xff]  ;;  %v5108_v3 = vld [vmem:[%s7919_s9 + $0xd0] sm:$0xff] }
0x1015   :  { %v4246_v48 = vsel %vm1919_vm3, %v4244_v17, %v4231_v22  ;;  %v5109_v22 = vld [vmem:[%s7919_s9 + $0xd8] sm:$0xff] }
0x1016   :  { %v5975_v17 = vpack.c.bf16 %v5109_v22, %v5107_v60 }
0x1017   :  { %v4241_v15 = vpop.permute.xlu1 %4240 }
0x1018   :  { %v4239_v45 = vpop.permute.xlu0 %4238  ;;  %v4249_v46 = vsel %vm1922_vm4, %v4247_v61, %v4241_v15  ;;  %v5106_v15 = vld [vmem:[%s7919_s9 + $0xc0] sm:$0xff]  ;;  %v5113_v61 = vld [vmem:[%s7919_s9 + $0xf8] sm:$0xff] }
0x1019   :  { %v4248_v59 = vsel %vm1922_vm4, %v4246_v48, %v4239_v45  ;;  %v5977_v48 = vpack.c.bf16 %v5108_v3, %v5106_v15  ;;  %v5111_v45 = vld [vmem:[%s7919_s9 + $0xe8] sm:$0xff]  ;;  %v5130_v15 = vld [vmem:[%s7921_s11 + $0x158] sm:$0xff]  ;;  %v5147_v3 = vld [vmem:[%s7921_s11 + $0x1e0] sm:$0xff] }
0x101a   :  { %5670 = vmatprep.mubr.msk.f32.mxu0 %vm186_vm0, %v4248_v59  ;;  %v5110_v59 = vld [vmem:[%s7919_s9 + $0xe0] sm:$0xff] }
0x101b   :  { %5671 = vmatmul.mubr.msk.f32.vlgmr.msra.gmra.mrb[42].mxu0 %vm186_vm0, %v4249_v46  ;;  %v5979_v46 = vpack.c.bf16 %v5113_v61, %v5111_v45 }
0x103b   :  { %v4255_v18 = vpop.permute.xlu1 %4254 }
0x103c   :  { %v4253_v4 = vpop.permute.xlu0 %4252  ;;  %v4275_v13 = vsel %vm360_vm1, %v5632_v38, %v4255_v18  ;;  %v5967_v38 = vpack.c.bf16 %v5101_v56, %v5099_v2  ;;  %v5112_v18 = vld [vmem:[%s7919_s9 + $0xf0] sm:$0xff]  ;;  %v5126_v2 = vld [vmem:[%s7921_s11 + $0x138] sm:$0xff] }
0x103d   :  { %v4274_v7 = vsel %vm360_vm1, %v3968_v55, %v4253_v4  ;;  %v5098_v55 = vld [vmem:[%s7919_s9 + $0x80] sm:$0xff]  ;;  %v5981_v4 = vpack.c.bf16 %v5112_v18, %v5110_v59  ;;  %s6390_s9 = smov [#allocation2]  }
0x103e   :  { %v5969_v32 = vpack.c.bf16 %v5100_v42, %v5098_v55  ;;  %5968 = vmatprep.subr.bf16.mxu1 %v5967_v38  ;;  %v5143_v38 = vld [vmem:[%s7921_s11 + $0x1c0] sm:$0xff]  ;;  %v5144_v55 = vld [vmem:[%s7921_s11 + $0x1c8] sm:$0xff]  ;;  %s4936_s23 = sshll.u32 %s6390_s9, 4  ;;  %s4937_s23 = int_to_ptr.vmem [resolvable:$true] %s4936_s23 }
0x103f   :  { %v5999_v58 = vpack.c.bf16 %v5144_v55, %v5143_v38  ;;  %v5096_v18 = vld [vmem:[%s7917_s7 + $0x1] ss:$0 sm:$0xff]  ;;  %s6353_s22 = scalar_lea.vmem %s4937_s23, 32  ;;  %p6358_p1 = scmp.lt.s32.totalorder %s4937_s23, %s4937_s23 }
0x1040   :  { %v4263_v43 = vpop.permute.xlu1 %4262  ;;  %5970 = vmatpush1.bf16.msra.mxu1 %v5969_v32  ;;  %p6354_p0 = scmp.ne.s32.totalorder %s4937_s23, %s6353_s22  ;;  %p6359_p2 = scmp.lt.s32.totalorder %s6353_s22, %s6353_s22 }
0x1041   :  { %v4261_v23 = vpop.permute.xlu0 %4260  ;;  %v4277_v50 = vsel %vm1919_vm3, %v4275_v13, %v4263_v43  ;;  %5972 = vmatprep.subr.bf16.mxu1 %v5971_v0  ;;  %v5127_v0 = vld [vmem:[%s7921_s11 + $0x140] sm:$0xff] }
0x1042   :  { %v4276_v1 = vsel %vm1919_vm3, %v4274_v7, %v4261_v23  ;;  %v6001_v60 = vpack.c.bf16 %v5128_v14, %v5127_v0  ;;  %p6360_p3 = por %p6359_p2, %p6358_p1 }
0x1044   :  { %5974 = vmatpush1.bf16.msra.mxu1 %v5973_v57  ;;  %v5146_v57 = vld [vmem:[%s7921_s11 + $0x1d8] sm:$0xff]  ;;  %p6361_p4 = pnand %p6360_p3, %p6354_p0 }
0x1045   :  { %5976 = vmatprep.subr.bf16.mxu1 %v5975_v17  ;;  %v6003_v22 = vpack.c.bf16 %v5146_v57, %v5145_v47  ;;  %v5129_v17 = vld [vmem:[%s7921_s11 + $0x150] sm:$0xff] }
0x1046   :  { %v6005_v45 = vpack.c.bf16 %v5130_v15, %v5129_v17 }
0x1048   :  { %5978 = vmatpush1.bf16.msra.mxu1 %v5977_v48  ;;  %v5148_v48 = vld [vmem:[%s7921_s11 + $0x1e8] sm:$0xff] }
0x1049   :  { %5980 = vmatprep.subr.bf16.mxu1 %v5979_v46  ;;  %v6007_v61 = vpack.c.bf16 %v5148_v48, %v5147_v3 }
0x104c   :  { %5982 = vmatpush1.bf16.msra.mxu1 %v5981_v4 }
0x1074   :  { %v4271_v6 = vpop.permute.xlu1 %4270 }
0x1075   :  { %v4269_v40 = vpop.permute.xlu0 %4268  ;;  %v4279_v49 = vsel %vm1922_vm4, %v4277_v50, %v4271_v6 }
0x1076   :  { %v4278_v25 = vsel %vm1922_vm4, %v4276_v1, %v4269_v40 }
0x1077   :  { %5673 = vmatprep.mubr.msk.f32.mxu0 %vm186_vm0, %v4278_v25 }
0x1078   :  { %5674 = vmatmul.mubr.msk.f32.gmra.mrb[44].mxu0 %vm186_vm0, %v4279_v49 }
0x10ee   :  { %v5672_v29 = vpop.f32.mrb[42].mxu0 }
0x10ef   :  { %v4381_v19 = vadd.f32 %v5672_v29, %v5089_v8  ;;  %v4375_v52 = vpop.f32.mrb[43].mxu0  ;;  %v5136_v29 = vld [vmem:[%s7921_s11 + $0x188] sm:$0xff] }
0x10f0   :  { %v4376_v20 = vadd.f32 %v5089_v8, %v4375_v52 }
0x10f1   :  { %v4395_v63 = vadd.f32 %v4381_v19, %v7244_v31  ;;  %v5119_v19 = vld [vmem:[%s7921_s11 + $0x100] sm:$0xff] }
0x10f2   :  { %v4394_v21 = vadd.f32 %v4376_v20, %v7238_v5  ;;  %v5120_v20 = vld [vmem:[%s7921_s11 + $0x108] sm:$0xff] }
0x10f3   :  { %v4405_v62 = vsel %vm186_vm0, %v4395_v63, 0.0 }
0x10f4   :  { %4406 = vadd.xlane.f32.xlu1 %v4405_v62  ;;  %v4402_v26 = vsel %vm186_vm0, %v4394_v21, 0.0  ;;  %v5985_v62 = vpack.c.bf16 %v5120_v20, %v5119_v19  ;;  %v5131_v19 = vld [vmem:[%s7921_s11 + $0x160] sm:$0xff] }
0x10f5   :  { %4403 = vadd.xlane.f32.xlu0 %v4402_v26 }
0x114b   :  { %v5675_v44 = vpop.f32.mrb[44].mxu0 }
0x114c   :  { %v4385_v39 = vpop.f32.mrb[45].mxu0  ;;  %v4391_v27 = vadd.f32 %v5675_v44, %v5089_v8  ;;  %v5121_v44 = vld [vmem:[%s7921_s11 + $0x110] sm:$0xff] }
0x114d   :  { %v4386_v11 = vadd.f32 %v5089_v8, %v4385_v39  ;;  %v5135_v8 = vld [vmem:[%s7921_s11 + $0x180] sm:$0xff]  ;;  %v5122_v39 = vld [vmem:[%s7921_s11 + $0x118] sm:$0xff] }
0x114e   :  { %v4397_v24 = vadd.f32 %v4391_v27, %v7254_v54  ;;  %v5983_v52 = vpack.c.bf16 %v5136_v29, %v5135_v8  ;;  %v5139_v27 = vld [vmem:[%s7921_s11 + $0x1a0] sm:$0xff] }
0x114f   :  { %v4396_v16 = vadd.f32 %v4386_v11, %v7249_v53  ;;  %v5140_v11 = vld [vmem:[%s7921_s11 + $0x1a8] sm:$0xff] }
0x1150   :  { %v4411_v31 = vsel %vm186_vm0, %v4397_v24, 0.0  ;;  %5984 = vmatprep.subr.bf16.mxu0 %v5983_v52  ;;  %v5132_v52 = vld [vmem:[%s7921_s11 + $0x168] sm:$0xff] }
0x1151   :  { %v4408_v30 = vsel %vm186_vm0, %v4396_v16, 0.0  ;;  %5986 = vmatpush3.bf16.msra.mxu0 %v5985_v62  ;;  %v6009_v20 = vpack.c.bf16 %v5132_v52, %v5131_v19  ;;  %v5150_v62 = vld [vmem:[%s7921_s11 + $0x1f8] sm:$0xff] }
0x1152   :  { %4409 = vadd.xlane.f32.xlu0 %v4408_v30  ;;  %v5123_v30 = vld [vmem:[%s7921_s11 + $0x120] sm:$0xff] }
0x1156   :  { %4412 = vadd.xlane.f32.xlu0 %v4411_v31  ;;  %v5124_v31 = vld [vmem:[%s7921_s11 + $0x128] sm:$0xff] }
0x1181   :  { %v4407_v5 = vpop.xlane.xlu1 %4406 }
0x1182   :  { %v4415_v41 = vmul.f32 0.015625, %v4407_v5  ;;  %v4404_v33 = vpop.xlane.xlu0 %4403  ;;  %v5141_v5 = vld [vmem:[%s7921_s11 + $0x1b0] sm:$0xff] }
0x1183   :  { %v4414_v51 = vmul.f32 0.015625, %v4404_v33 }
0x1184   :  { %v7636_v12 = vsub.f32 %v4395_v63, %v4415_v41  ;;  %v5137_v63 = vld [vmem:[%s7921_s11 + $0x190] sm:$0xff]  ;;  %v5142_v41 = vld [vmem:[%s7921_s11 + $0x1b8] sm:$0xff] }
0x1185   :  { %v7638_v35 = vsub.f32 %v4394_v21, %v4414_v51  ;;  %v5138_v21 = vld [vmem:[%s7921_s11 + $0x198] sm:$0xff]  ;;  %v5993_v51 = vpack.c.bf16 %v5124_v31, %v5123_v30 }
0x1186   :  { %v4423_v37 = vmul.f32 %v7636_v12, %v7636_v12  ;;  %v5987_v26 = vpack.c.bf16 %v5138_v21, %v5137_v63  ;;  %v5149_v21 = vld [vmem:[%s7921_s11 + $0x1f0] sm:$0xff] }
0x1187   :  { %v4422_v53 = vmul.f32 %v7638_v35, %v7638_v35 }
0x1188   :  { %v4429_v54 = vsel %vm186_vm0, %v4423_v37, 0.0  ;;  %5988 = vmatprep.subr.bf16.mxu0 %v5987_v26 }
0x1189   :  { %4430 = vadd.xlane.f32.xlu0 %v4429_v54  ;;  %v4426_v9 = vsel %vm186_vm0, %v4422_v53, 0.0  ;;  %v5995_v54 = vpack.c.bf16 %v5142_v41, %v5141_v5  ;;  %v5114_v41 = vld [vmem:[%s7920_s10 + $0x2] sm:$0x3] }
0x118a   :  { %4427 = vadd.xlane.f32.xlu1 %v4426_v9  ;;  %v5125_v9 = vld [vmem:[%s7921_s11 + $0x130] sm:$0xff] }
0x118b   :  { %v5997_v10 = vpack.c.bf16 %v5126_v2, %v5125_v9 }
0x11df   :  { %v4410_v43 = vpop.xlane.xlu0 %4409 }
0x11e0   :  { %v4416_v23 = vmul.f32 0.015625, %v4410_v43 }
0x11e2   :  { %v7694_v7 = vsub.f32 %v4396_v16, %v4416_v23  ;;  %v5989_v16 = vpack.c.bf16 %v5122_v39, %v5121_v44  ;;  %v5097_v23 = vld [vmem:[%s7918_s8 + $0x1] ss:$0 sm:$0xff]  ;;  %v6011_v44 = vpack.c.bf16 %v5150_v62, %v5149_v21  ;;  %v5133_v39 = vld [vmem:[%s7921_s11 + $0x170] sm:$0xff] }
0x11e3   :  { %v4413_v6 = vpop.xlane.xlu0 %4412 }
0x11e4   :  { %v4417_v13 = vmul.f32 0.015625, %v4413_v6  ;;  %v4424_v1 = vmul.f32 %v7694_v7, %v7694_v7  ;;  %5990 = vmatpush3.bf16.msra.mxu0 %v5989_v16 }
0x11e6   :  { %v7698_v40 = vsub.f32 %v4397_v24, %v4417_v13  ;;  %v4432_v50 = vsel %vm186_vm0, %v4424_v1, 0.0  ;;  %v5991_v24 = vpack.c.bf16 %v5140_v11, %v5139_v27  ;;  %v5134_v27 = vld [vmem:[%s7921_s11 + $0x178] sm:$0xff] }
0x11e7   :  { %4433 = vadd.xlane.f32.xlu1 %v4432_v50  ;;  %v6013_v11 = vpack.c.bf16 %v5134_v27, %v5133_v39 }
0x11e8   :  { %v4425_v25 = vmul.f32 %v7698_v40, %v7698_v40  ;;  %5992 = vmatprep.subr.bf16.mxu0 %v5991_v24 }
0x11e9   :  { %5994 = vmatpush3.bf16.msra.mxu0 %v5993_v51  ;;  %v4501_v51 = vrot.slane %v5114_v41, %v6547_v36 }
0x11ea   :  { %v4435_v49 = vsel %vm186_vm0, %v4425_v25, 0.0  ;;  %5996 = vmatprep.subr.bf16.mxu0 %v5995_v54 }
0x11eb   :  { %4436 = vadd.xlane.f32.xlu0 %v4435_v49 }
0x11ed   :  { %5998 = vmatpush3.bf16.msra.mxu0 %v5997_v10 }
0x11ee   :  { %6000 = vmatprep.subr.bf16.mxu0 %v5999_v58 }
0x11f1   :  { %6002 = vmatpush3.bf16.msra.mxu0 %v6001_v60 }
0x11f2   :  { %6004 = vmatprep.subr.bf16.mxu0 %v6003_v22 }
0x11f5   :  { %6006 = vmatpush3.bf16.msra.mxu0 %v6005_v45  ;;  %v5152_v45 = vld [vmem:[%s7922_s12 + $0x1] ss:$0 sm:$0xff] }
0x11f6   :  { %6008 = vmatprep.subr.bf16.mxu0 %v6007_v61 }
0x11f9   :  { %6010 = vmatpush3.bf16.msra.mxu0 %v6009_v20 }
0x11fa   :  { %6012 = vmatprep.subr.bf16.mxu0 %v6011_v44 }
0x11fd   :  { %6014 = vmatpush3.bf16.msra.mxu0 %v6013_v11 }
0x1216   :  { %v4431_v33 = vpop.xlane.xlu0 %4430 }
0x1217   :  { %v4439_v37 = vmul.f32 0.015625, %v4431_v33  ;;  %v4428_v53 = vpop.xlane.xlu1 %4427  ;;  %v4497_v33 = vrot.slane %v5114_v41, %v6542_v34 }
0x1218   :  { %v4438_v56 = vmul.f32 0.015625, %v4428_v53 }
0x1219   :  { %v4443_v42 = vadd.f32 1e-05, %v4439_v37 }
0x121a   :  { %v4442_v32 = vadd.f32 1e-05, %v4438_v56 }
0x121b   :  { %6337 = vrsqrt.f32 %v4443_v42 }
0x121c   :  { %6339 = vrsqrt.f32 %v4442_v32 }
0x1225   :  { %v6338_v59 = vpop.eup %6337 }
0x1226   :  { %v6340_v46 = vpop.eup %6339  ;;  %v4451_v43 = vmul.f32 %v6338_v59, %v7636_v12 }
0x1227   :  { %v4450_v4 = vmul.f32 %v6340_v46, %v7638_v35 }
0x1228   :  { %v4461_v1 = vmul.f32 %v5096_v18, %v4451_v43 }
0x1229   :  { %v4460_v6 = vmul.f32 %v5096_v18, %v4450_v4 }
0x122a   :  { %v7795_v50 = vadd.f32 %v5097_v23, %v4461_v1 }
0x122b   :  { %v7790_v13 = vadd.f32 %v5097_v23, %v4460_v6 }
0x122d   :  { %5115 = vmatmul.mubr.msk.f32.vlgmr.msra.gmra.mrb[58].mxu1 %vm186_vm0, %v7790_v13 }
0x122e   :  { %4586 = vmatprep.mubr.f32.mxu1 %v6380_v28 }
0x1231   :  { %5116 = vmatmul.mubr.msk.f32.gmra.mrb[60].mxu1 %vm186_vm0, %v7795_v50 }
0x1232   :  { %4592 = vmatprep.mubr.f32.mxu1 %v6380_v28 }
0x1274   :  { %v4434_v12 = vpop.xlane.xlu1 %4433 }
0x1275   :  { %v4440_v35 = vmul.f32 0.015625, %v4434_v12 }
0x1277   :  { %v4444_v25 = vadd.f32 1e-05, %v4440_v35 }
0x1278   :  { %v4437_v49 = vpop.xlane.xlu0 %4436 }
0x1279   :  { %6341 = vrsqrt.f32 %v4444_v25  ;;  %v4441_v8 = vmul.f32 0.015625, %v4437_v49 }
0x127b   :  { %v4445_v29 = vadd.f32 1e-05, %v4441_v8 }
0x127d   :  { %6343 = vrsqrt.f32 %v4445_v29 }
0x1283   :  { %v6342_v63 = vpop.eup %6341 }
0x1284   :  { %v4452_v26 = vmul.f32 %v6342_v63, %v7694_v7 }
0x1286   :  { %v4462_v16 = vmul.f32 %v5096_v18, %v4452_v26 }
0x1287   :  { %v6344_v24 = vpop.eup %6343 }
0x1288   :  { %v7819_v30 = vadd.f32 %v5097_v23, %v4462_v16  ;;  %v4453_v31 = vmul.f32 %v6344_v24, %v7698_v40 }
0x128a   :  { %5117 = vmatmul.mubr.msk.f32.gmra.mrb[62].mxu1 %vm186_vm0, %v7819_v30  ;;  %v4463_v7 = vmul.f32 %v5096_v18, %v4453_v31 }
0x128b   :  { %4598 = vmatprep.mubr.f32.mxu1 %v6380_v28 }
0x128c   :  { %v7825_v5 = vadd.f32 %v5097_v23, %v4463_v7 }
0x128e   :  { %5118 = vmatmul.mubr.msk.f32.gmra.mrb[64].mxu1 %vm186_vm0, %v7825_v5 }
0x128f   :  { %5692 = vmatprep.mubr.msk.f32.mxu1 %vm6389_vm5, %v6380_v28 }
0x1300   :  { %v4582_v40 = vpop.f32.mrb[58].mxu1 }
0x1301   :  { %v4583_v37 = vadd.f32 %v4582_v40, %v4497_v33  ;;  %v4584_v53 = vpop.f32.mrb[59].mxu1 }
0x1302   :  { %v4585_v54 = vadd.f32 %v4584_v53, %v4501_v51 }
0x1303   :  { %v4605_v56 = vmax.f32 %v4583_v37, 0.0 }
0x1304   :  { %v4606_v9 = vmax.f32 %v4585_v54, 0.0  ;;  %v4588_v2 = vpop.f32.mrb[60].mxu1 }
0x1305   :  { %v4589_v38 = vadd.f32 %v4588_v2, %v4497_v33  ;;  %v4590_v55 = vpop.f32.mrb[61].mxu1 }
0x1306   :  { %v4591_v42 = vadd.f32 %v4590_v55, %v4501_v51  ;;  %4718 = vmatprep.mubr.f32.mxu0 %v4606_v9 }
0x1307   :  { %4719 = vmatmul.mubr.f32.vlgmr.msra.gmra.mrb[46].mxu0 %v4605_v56  ;;  %v4607_v10 = vmax.f32 %v4589_v38, 0.0  ;;  %v4840_v56 = vld [vmem:[%s7925_s15] sm:$0xff]  ;;  %v4841_v38 = vld [vmem:[%s7925_s15 + $0x8] sm:$0xff] }
0x1308   :  { %v4608_v32 = vmax.f32 %v4591_v42, 0.0  ;;  %v6016_v55 = vpack.c.bf16 %v4841_v38, %v4840_v56  ;;  %v6388_v42 = vmov 0.0|0.0  }
0x1309   :  { %6015 = vmatprep.subr.bf16.mxu1 %v6388_v42 }
0x130a   :  { %4723 = vmatprep.mubr.f32.mxu0 %v4608_v32  ;;  %6017 = vmatpush3.bf16.msra.mxu1 %v6016_v55  ;;  %v4842_v32 = vld [vmem:[%s7925_s15 + $0x10] sm:$0xff] }
0x130b   :  { %4724 = vmatmul.mubr.f32.gmra.mrb[48].mxu0 %v4607_v10  ;;  %6018 = vmatprep.subr.bf16.mxu1 %v6388_v42  ;;  %v4843_v10 = vld [vmem:[%s7925_s15 + $0x18] sm:$0xff] }
0x135d   :  { %v4594_v58 = vpop.f32.mrb[62].mxu1 }
0x135e   :  { %v4595_v34 = vadd.f32 %v4594_v58, %v4497_v33  ;;  %v4596_v0 = vpop.f32.mrb[63].mxu1  ;;  %v6019_v58 = vpack.c.bf16 %v4843_v10, %v4842_v32 }
0x135f   :  { %v4597_v36 = vadd.f32 %v4596_v0, %v4501_v51  ;;  %v4845_v0 = vld [vmem:[%s7925_s15 + $0x28] sm:$0xff] }
0x1360   :  { %v4609_v57 = vmax.f32 %v4595_v34, 0.0  ;;  %v4844_v34 = vld [vmem:[%s7925_s15 + $0x20] sm:$0xff]  ;;  %6020 = vmatpush3.bf16.msra.mxu1 %v6019_v58 }
0x1361   :  { %v4610_v14 = vmax.f32 %v4597_v36, 0.0  ;;  %v4600_v47 = vpop.f32.mrb[64].mxu1  ;;  %v6022_v36 = vpack.c.bf16 %v4845_v0, %v4844_v34  ;;  %6021 = vmatprep.subr.bf16.mxu1 %v6388_v42 }
0x1362   :  { %v4601_v60 = vadd.f32 %v4600_v47, %v4497_v33  ;;  %v4602_v22 = vpop.f32.mrb[65].mxu1  ;;  %v4847_v47 = vld [vmem:[%s7925_s15 + $0x38] sm:$0xff] }
0x1363   :  { %v4603_v17 = vadd.f32 %v4602_v22, %v4501_v51  ;;  %4728 = vmatprep.mubr.f32.mxu0 %v4610_v14  ;;  %v4846_v14 = vld [vmem:[%s7925_s15 + $0x30] sm:$0xff] }
0x1364   :  { %4729 = vmatmul.mubr.f32.gmra.mrb[50].mxu0 %v4609_v57  ;;  %v4611_v3 = vmax.f32 %v4601_v60, 0.0  ;;  %6023 = vmatpush3.bf16.msra.mxu1 %v6022_v36  ;;  %v6025_v57 = vpack.c.bf16 %v4847_v47, %v4846_v14 }
0x1365   :  { %v4612_v15 = vmax.f32 %v4603_v17, 0.0  ;;  %6024 = vmatprep.subr.bf16.mxu1 %v6388_v42 }
0x1367   :  { %4733 = vmatprep.mubr.f32.mxu0 %v4612_v15 }
0x1368   :  { %4734 = vmatmul.mubr.f32.gmra.mrb[52].mxu0 %v4611_v3  ;;  %6026 = vmatpush3.bf16.msra.mxu1 %v6025_v57 }
0x13da   :  { %v5387_v48 = vpop.f32.mrb[46].mxu0 }
0x13db   :  { %v5388_v61 = vpop.f32.mrb[47].mxu0 }
0x13dc   :  { %v5389_v59 = vadd.f32 %v5388_v61, %v5387_v48 }
0x13de   :  { %v4721_v46 = vadd.f32 %v5389_v59, %v5152_v45  ;;  %v5390_v18 = vpop.f32.mrb[48].mxu0 }
0x13df   :  { %v5391_v4 = vpop.f32.mrb[49].mxu0 }
0x13e0   :  { %v5392_v43 = vadd.f32 %v5391_v4, %v5390_v18  ;;  %v4739_v23 = vadd.f32 %v4721_v46, %v7790_v13  ;;  %v5155_v4 = vld [vmem:[%s7923_s13 + $0x1] ss:$0 sm:$0xff] }
0x13e2   :  { %v4726_v6 = vadd.f32 %v5392_v43, %v5152_v45  ;;  %v4747_v1 = vsel %vm186_vm0, %v4739_v23, 0.0 }
0x13e3   :  { %4748 = vadd.xlane.f32.xlu1 %v4747_v1 }
0x13e4   :  { %v4740_v12 = vadd.f32 %v4726_v6, %v7795_v50 }
0x13e6   :  { %v4750_v35 = vsel %vm186_vm0, %v4740_v12, 0.0 }
0x13e7   :  { %4751 = vadd.xlane.f32.xlu0 %v4750_v35  ;;  %v5156_v35 = vld [vmem:[%s7924_s14 + $0x1] ss:$0 sm:$0xff] }
0x1437   :  { %v5393_v25 = vpop.f32.mrb[50].mxu0 }
0x1438   :  { %v5394_v49 = vpop.f32.mrb[51].mxu0 }
0x1439   :  { %v5395_v8 = vadd.f32 %v5394_v49, %v5393_v25 }
0x143b   :  { %v4731_v29 = vadd.f32 %v5395_v8, %v5152_v45  ;;  %v5396_v19 = vpop.f32.mrb[52].mxu0 }
0x143c   :  { %v5397_v52 = vpop.f32.mrb[53].mxu0 }
0x143d   :  { %v5398_v20 = vadd.f32 %v5397_v52, %v5396_v19  ;;  %v4741_v63 = vadd.f32 %v4731_v29, %v7819_v30 }
0x143f   :  { %v4736_v21 = vadd.f32 %v5398_v20, %v5152_v45  ;;  %v4753_v13 = vsel %vm186_vm0, %v4741_v63, 0.0 }
0x1440   :  { %4754 = vadd.xlane.f32.xlu1 %v4753_v13 }
0x1441   :  { %v4742_v62 = vadd.f32 %v4736_v21, %v7825_v5 }
0x1443   :  { %v4756_v50 = vsel %vm186_vm0, %v4742_v62, 0.0 }
0x1444   :  { %4757 = vadd.xlane.f32.xlu0 %v4756_v50 }
0x1470   :  { %v4749_v26 = vpop.xlane.xlu1 %4748 }
0x1471   :  { %v4759_v44 = vmul.f32 0.015625, %v4749_v26 }
0x1473   :  { %v4763_v39 = vsub.f32 %v4739_v23, %v4759_v44 }
0x1474   :  { %v4752_v27 = vpop.xlane.xlu0 %4751 }
0x1475   :  { %v4760_v11 = vmul.f32 0.015625, %v4752_v27  ;;  %v4767_v16 = vmul.f32 %v4763_v39, %v4763_v39 }
0x1477   :  { %v4764_v24 = vsub.f32 %v4740_v12, %v4760_v11  ;;  %v4771_v31 = vsel %vm186_vm0, %v4767_v16, 0.0 }
0x1478   :  { %4772 = vadd.xlane.f32.xlu1 %v4771_v31 }
0x1479   :  { %v4768_v30 = vmul.f32 %v4764_v24, %v4764_v24 }
0x147b   :  { %v4774_v7 = vsel %vm186_vm0, %v4768_v30, 0.0 }
0x147c   :  { %4775 = vadd.xlane.f32.xlu0 %v4774_v7 }
0x14cd   :  { %v4755_v41 = vpop.xlane.xlu1 %4754 }
0x14ce   :  { %v4761_v33 = vmul.f32 0.015625, %v4755_v41 }
0x14d0   :  { %v7847_v5 = vsub.f32 %v4741_v63, %v4761_v33 }
0x14d1   :  { %v4758_v51 = vpop.xlane.xlu0 %4757 }
0x14d2   :  { %v4762_v40 = vmul.f32 0.015625, %v4758_v51  ;;  %v4769_v37 = vmul.f32 %v7847_v5, %v7847_v5 }
0x14d4   :  { %v7851_v53 = vsub.f32 %v4742_v62, %v4762_v40  ;;  %v4777_v54 = vsel %vm186_vm0, %v4769_v37, 0.0 }
0x14d5   :  { %4778 = vadd.xlane.f32.xlu1 %v4777_v54 }
0x14d6   :  { %v4770_v9 = vmul.f32 %v7851_v53, %v7851_v53 }
0x14d8   :  { %v4780_v2 = vsel %vm186_vm0, %v4770_v9, 0.0 }
0x14d9   :  { %4781 = vadd.xlane.f32.xlu0 %v4780_v2  ;;  %v5157_v2 = vld [vmem:[%s7926_s16] ss:$0 sm:$0xff] }
0x1505   :  { %v4773_v22 = vpop.xlane.xlu1 %4772 }
0x1506   :  { %v4783_v15 = vmul.f32 0.015625, %v4773_v22 }
0x1508   :  { %v4787_v48 = vadd.f32 1e-05, %v4783_v15 }
0x1509   :  { %v4776_v60 = vpop.xlane.xlu0 %4775 }
0x150a   :  { %v4784_v17 = vmul.f32 0.015625, %v4776_v60 }
0x150c   :  { %v4788_v3 = vadd.f32 1e-05, %v4784_v17 }
0x150e   :  { %6345 = vrsqrt.f32 %v4788_v3 }
0x150f   :  { %6347 = vrsqrt.f32 %v4787_v48 }
0x1518   :  { %v6346_v28 = vpop.eup %6345 }
0x1519   :  { %v6348_v45 = vpop.eup %6347  ;;  %v4796_v61 = vmul.f32 %v6346_v28, %v4764_v24 }
0x151a   :  { %v4795_v18 = vmul.f32 %v6348_v45, %v4763_v39 }
0x151b   :  { %v4806_v23 = vmul.f32 %v5155_v4, %v4796_v61 }
0x151c   :  { %v4805_v12 = vmul.f32 %v5155_v4, %v4795_v18 }
0x151d   :  { %v4816_v49 = vadd.f32 %v5156_v35, %v4806_v23 }
0x151e   :  { %v4815_v8 = vadd.f32 %v5156_v35, %v4805_v12 }
0x151f   :  { %v4820_v29 = vsel %vm186_vm0, %v4816_v49, 0.0 }
0x1520   :  { %v4819_v19 = vsel %vm186_vm0, %v4815_v8, 0.0 }
0x1521   :  { %v4821_v20 = vadd.f32 %v4820_v29, %v4819_v19 }
0x1523   :  { %v4822_v62 = vrot.slane %v4821_v20, 4 }
0x1525   :  { %v4823_v39 = vadd.f32 %v4822_v62, %v4821_v20 }
0x1527   :  { %v4824_v24 = vrot.slane %v4823_v39, 2 }
0x1529   :  { %v4825_v7 = vadd.f32 %v4824_v24, %v4823_v39 }
0x152b   :  { %v4826_v51 = vrot.slane %v4825_v7, 1 }
0x152d   :  { %v4827_v37 = vadd.f32 %v4826_v51, %v4825_v7 }
0x1562   :  { %v4779_v59 = vpop.xlane.xlu1 %4778 }
0x1563   :  { %v4785_v46 = vmul.f32 0.015625, %v4779_v59 }
0x1565   :  { %v4789_v43 = vadd.f32 1e-05, %v4785_v46 }
0x1566   :  { %v4782_v6 = vpop.xlane.xlu0 %4781 }
0x1567   :  { %6349 = vrsqrt.f32 %v4789_v43  ;;  %v4786_v1 = vmul.f32 0.015625, %v4782_v6 }
0x1569   :  { %v4790_v25 = vadd.f32 1e-05, %v4786_v1 }
0x156b   :  { %6351 = vrsqrt.f32 %v4790_v25 }
0x1571   :  { %v6350_v52 = vpop.eup %6349 }
0x1572   :  { %v4797_v63 = vmul.f32 %v6350_v52, %v7847_v5 }
0x1574   :  { %v4807_v21 = vmul.f32 %v5155_v4, %v4797_v63 }
0x1575   :  { %v6352_v13 = vpop.eup %6351 }
0x1576   :  { %v4798_v50 = vmul.f32 %v6352_v13, %v7851_v53  ;;  %v4817_v26 = vadd.f32 %v5156_v35, %v4807_v21 }
0x1578   :  { %v4808_v44 = vmul.f32 %v5155_v4, %v4798_v50  ;;  %v4828_v11 = vsel %vm186_vm0, %v4817_v26, 0.0 }
0x157a   :  { %v4818_v27 = vadd.f32 %v5156_v35, %v4808_v44 }
0x157c   :  { %v4829_v16 = vsel %vm186_vm0, %v4818_v27, 0.0 }
0x157d   :  { %v4830_v31 = vadd.f32 %v4829_v16, %v4828_v11 }
0x157f   :  { %v4831_v30 = vrot.slane %v4830_v31, 4 }
0x1581   :  { %v4832_v41 = vadd.f32 %v4831_v30, %v4830_v31 }
0x1583   :  { %v4833_v33 = vrot.slane %v4832_v41, 2 }
0x1585   :  { %v4834_v5 = vadd.f32 %v4833_v33, %v4832_v41 }
0x1587   :  { %v4835_v40 = vrot.slane %v4834_v5, 1 }
0x1589   :  { %v4836_v53 = vadd.f32 %v4835_v40, %v4834_v5 }
0x158b   :  { %v4838_v54 = vsel %vm4837_vm6, %v4827_v37, %v4836_v53 }
0x158c   :  { %v4839_v9 = vmul.f32 0.0625, %v4838_v54 }
0x158e   :  { %5693 = vmatmul.mubr.msk.f32.vlgmr.msra.gmra.mrb[66].mxu1 %vm186_vm0, %v4839_v9 }
0x1661   :  { %v4924_v56 = vpop.f32.mrb[66].mxu1 }
0x1662   :  { %v4925_v38 = vadd.f32 %v5157_v2, %v4924_v56  ;;  %v5694_v55 = vpop.f32.mrb[67].mxu1 }
0x1664   :  { %4929 = vst.msk [vmem:[#allocation2] sm:$0x3] %vm4928_vm7, %v4925_v38 }
0x1665   :  { %6364 = shalt.err (!%p6361_p4)
}
0x1666   :  { %s6365_s10 = scalar_lea.hbm %s7927_s17, 32 }
0x1667   :  { %p6366_p5 = scmp.ne.s32.totalorder %s7927_s17, %s6365_s10  ;;  %p6369_p6 = scmp.lt.u32.totalorder %s6365_s10, %s7927_s17 }
0x1669   :  { %p6371_p7 = pnand %p6369_p6, %p6366_p5 }
0x166b   :  { %6374 = shalt.err (!%p6371_p7)
}
0x166c   :  { %4939 = dma.vmem_to_hbm [thread:$0]  %s4937_s23, 32, %s7927_s17, [#allocation3]  }
0x166d   :  { %6375 = dma.done.wait [#allocation3], 32  }
0x166e   :  { %6376 = vsyncadd [#allocation3], 4294967264 }
0x166f   :  { %4943 = vsyncpa [#allocation3], 1 }

</bundles_post_ra>
